<compile_context>
chip_gen: v7x
topology: tpu7x:2x2x1
jax: 0.10.0
libtpu: 0.0.40
codegen_flags: <defaults>
</compile_context>

<pallas_src>
import numpy as np
import jax
import jax.numpy as jnp
from jax import lax
from jax.experimental import pallas as pl
from jax.experimental.pallas import tpu as pltpu


# -----------------------------------------------------------------------------
# Fused Pallas kernel (one grid step == one batch element, end-to-end)
# -----------------------------------------------------------------------------
def _make_generator_kernel(layer_cfgs, c1):
    """layer_cfgs: tuple of (h_in, n_out, act, is_last) per stride-2 layer."""
    n_layers = len(layer_cfgs)

    def kernel(*refs):
        z_ref, w1_ref, b1_ref = refs[0], refs[1], refs[2]
        w_refs = [refs[3 + 2 * i] for i in range(n_layers)]
        b_refs = [refs[4 + 2 * i] for i in range(n_layers)]
        out_ref = refs[3 + 2 * n_layers]
        p_refs = list(refs[4 + 2 * n_layers:])      # padded activations (VMEM)

        # ---- layer 1: ConvTranspose(z, c1, k=4, s=1, p=0) on a 1x1 latent ----
        # out[kh, kw, co] = sum_ci z[ci] * W[ci, co, kh, kw] + b[co]
        z = z_ref[0, :, :]                                          # (1, Z)
        y1 = jnp.dot(z, w1_ref[...], preferred_element_type=jnp.float32)
        y1 = jnp.maximum(y1 + b1_ref[...], 0.0)                     # (1, 16*c1)
        row_w = 4 * c1                              # == K of first stride-2 layer

        # Only buffer 0 needs explicit zero pad rows (rows 0 and 5); the later
        # buffers (incl. their pad rows) are fully rewritten each step.
        zrow = jnp.zeros((1, row_w), jnp.float32)
        p_refs[0][0:1, :] = zrow
        p_refs[0][5:6, :] = zrow
        for kh in range(4):                 # 4 lane-dense full-width row stores
            p_refs[0][1 + kh:2 + kh, :] = y1[:, kh * row_w:(kh + 1) * row_w]

        # ---- stride-2 ConvTranspose layers (sub-pixel banded-matmul form) ----
        for li, (h, n_out, act, is_last) in enumerate(layer_cfgs):
            p_in = p_refs[li]
            w = w_refs[li]                          # (K, 4*n_out) flat band
            bias = b_refs[li][...]                  # (1, n_out)

            # three row-tap matmuls (K = w_in*cin, no zero lane padding)
            x_m1 = p_in[0:h, :]                     # input rows a-1 (top pad)
            x_0 = p_in[1:h + 1, :]                  # input rows a   (real rows)
            x_p1 = p_in[2:h + 2, :]                 # input rows a+1 (bottom pad)
            t_even = jnp.dot(x_m1, w[:, 0:n_out],
                             preferred_element_type=jnp.float32)
            t_odd = jnp.dot(x_p1, w[:, n_out:2 * n_out],
                            preferred_element_type=jnp.float32)
            t_mid = jnp.dot(x_0, w[:, 2 * n_out:4 * n_out],
                            preferred_element_type=jnp.float32)
            acc_even = t_even + t_mid[:, 0:n_out] + bias     # even output rows
            acc_odd = t_odd + t_mid[:, n_out:2 * n_out] + bias  # odd output rows

            # Row-parity interleave via two tiny permutation matmuls, then ONE
            # contiguous lane-dense block store.  Intermediate layers emit
            # (2h+2) rows: rows 0 / 2h+1 come out exactly zero (bias was folded
            # in BEFORE the permutation), giving the next buffer its pad rows.
            nrows = 2 * h if is_last else 2 * h + 2
            off = 0 if is_last else 1
            r = lax.broadcasted_iota(jnp.int32, (nrows, h), 0)
            m = lax.broadcasted_iota(jnp.int32, (nrows, h), 1)
            sel_e = (r == 2 * m + off).astype(jnp.float32)
            sel_o = (r == 2 * m + off + 1).astype(jnp.float32)
            inter = (jnp.dot(sel_e, acc_even, preferred_element_type=jnp.float32)
                     + jnp.dot(sel_o, acc_odd, preferred_element_type=jnp.float32))
            y = jnp.maximum(inter, 0.0) if act == "relu" else jnp.tanh(inter)
            if is_last:
                out_ref[0, :, :] = y                # (64, n_out) lane-dense slab
            else:
                p_refs[li + 1][...] = y             # (2h+2, n_out) full store

    return kernel


# pure-JAX reference for one layer (same math, no Pallas) -- correctness check
def _ref_layer(x_nhwc, w_pt, bias, *, stride, padding, act):
    Cin, Cout, k, _ = w_pt.shape
    wf = jnp.transpose(w_pt[:, :, ::-1, ::-1], (2, 3, 0, 1))   # HWIO
    pad = k - 1 - padding
    y = lax.conv_general_dilated(
        x_nhwc, wf, window_strides=(1, 1),
        padding=[(pad, pad), (pad, pad)],
        lhs_dilation=(stride, stride),
        dimension_numbers=("NHWC", "HWIO", "NHWC"))
    y = y + bias.reshape(1, 1, 1, Cout)
    return jnp.maximum(y, 0.0) if act == "relu" else jnp.tanh(y)


# -----------------------------------------------------------------------------
# Generator (LSGAN) -- deterministic synthetic parameters
# -----------------------------------------------------------------------------
class Generator:
    def __init__(self, z, ngf, c, key):
        self.z = z
        # (in_ch, out_ch, stride, padding, activation) per layer, all k=4
        self.cfg = [
            (z,       ngf * 8, 1, 0, "relu"),
            (ngf * 8, ngf * 4, 2, 1, "relu"),
            (ngf * 4, ngf * 2, 2, 1, "relu"),
            (ngf * 2, ngf,     2, 1, "relu"),
            (ngf,     c,       2, 1, "tanh"),
        ]
        self.params = []
        for (cin, cout, _, _, _) in self.cfg:
            key, kw_, kb_ = jax.random.split(key, 3)
            bound = 1.0 / np.sqrt(cin * 4 * 4)
            w = jax.random.uniform(kw_, (cin, cout, 4, 4), jnp.float32, -bound, bound)
            b = jax.random.uniform(kb_, (cout,), jnp.float32, -bound, bound)
            self.params.append((w, b))
        self._pack()

    # ---- one-time host-side weight packing ----------------------------------
    def _pack(self):
        # layer 1: (Cin, Cout, 4, 4) -> (Cin, 16*Cout), laid out (kh, kw, co)
        w1, b1 = self.params[0]
        c1 = w1.shape[1]
        w1_np = np.asarray(w1)
        self.w1p = jnp.asarray(
            np.transpose(w1_np, (0, 2, 3, 1)).reshape(self.z, 16 * c1))
        self.b1p = jnp.asarray(np.tile(np.asarray(b1), 16).reshape(1, 16 * c1))
        self.c1 = c1

        # stride-2 layers: banded sub-pixel weights over REAL input pixels only,
        # merged into 3 matmuls/layer: [even-edge | odd-edge | mid-even,mid-odd]
        self.deconv = []
        spatial = 4
        n_sl = len(self.cfg) - 1
        for idx, ((cin, cout, _, _, act), (w, b)) in enumerate(
                list(zip(self.cfg, self.params))[1:]):
            w_np, b_np = np.asarray(w), np.asarray(b)
            h_in = w_in = spatial
            is_last = (idx == n_sl - 1)
            # pad cout so the output row width is a lane-dense multiple of 128
            cout_p = cout
            while (2 * w_in * cout_p) % 128 != 0:
                cout_p += 1
            if not is_last:
                assert cout_p == cout, "intermediate channel padding unsupported"
            K = w_in * cin
            N = 2 * w_in * cout_p
            band = np.zeros((4, K, N), np.float32)
            # slot -> (rh, dh): 0 even-edge, 1 odd-edge, 2 mid-even, 3 mid-odd
            for slot, (rh, dh) in enumerate(((0, 0), (1, 1), (0, 1), (1, 0))):
                kh = 3 - rh - 2 * dh
                for wo in range(2 * w_in):
                    rw, bcol = wo % 2, wo // 2
                    for dw in range(2):
                        kw = 3 - rw - 2 * dw
                        iw = bcol + rw + dw - 1
                        if 0 <= iw < w_in:          # skip guaranteed-zero taps
                            band[slot, iw * cin:(iw + 1) * cin,
                                 wo * cout_p:wo * cout_p + cout] += w_np[:, :, kh, kw]
            w_flat = np.concatenate([band[0], band[1], band[2], band[3]], axis=1)
            b_pad = np.zeros((cout_p,), np.float32)
            b_pad[:cout] = b_np
            self.deconv.append(dict(
                w=jnp.asarray(w_flat),                         # (K, 4N)
                bias=jnp.asarray(np.tile(b_pad, 2 * w_in).reshape(1, N)),
                h_in=h_in, n_out=N, act=act, is_last=is_last,
                p_shape=(h_in + 2, K),                         # padded VMEM buffer
            ))
            spatial *= 2
        self.out_spatial = spatial                             # 64
        self.out_c = self.cfg[-1][1]                           # c
        self.out_cp = self.deconv[-1]["n_out"] // self.out_spatial  # padded c

    # ---- fused forward pass --------------------------------------------------
    def __call__(self, z_nchw):
        B = z_nchw.shape[0]
        z2 = z_nchw.astype(jnp.float32).reshape(B, 1, self.z)

        inputs = [z2, self.w1p, self.b1p]
        in_specs = [
            pl.BlockSpec((1, 1, self.z), lambda b: (b, 0, 0)),
            pl.BlockSpec(self.w1p.shape, lambda b: (0, 0)),
            pl.BlockSpec(self.b1p.shape, lambda b: (0, 0)),
        ]
        scratch_shapes = []
        layer_cfgs = []
        for d in self.deconv:
            inputs += [d["w"], d["bias"]]
            in_specs += [pl.BlockSpec(d["w"].shape, lambda b: (0, 0)),
                         pl.BlockSpec(d["bias"].shape, lambda b: (0, 0))]
            scratch_shapes.append(pltpu.VMEM(d["p_shape"], jnp.float32))
            layer_cfgs.append((d["h_in"], d["n_out"], d["act"], d["is_last"]))

        n_last = self.deconv[-1]["n_out"]                      # 64 * padded C = 256
        h_out = self.out_spatial                               # 64
        kernel = _make_generator_kernel(tuple(layer_cfgs), self.c1)

        img = pl.pallas_call(
            kernel,
            out_shape=jax.ShapeDtypeStruct((B, h_out, n_last), jnp.float32),
            grid=(B,),
            in_specs=in_specs,
            out_specs=pl.BlockSpec((1, h_out, n_last), lambda b: (b, 0, 0)),
            scratch_shapes=scratch_shapes,
            compiler_params=pltpu.CompilerParams(
                dimension_semantics=("parallel",),
                vmem_limit_bytes=32 * 1024 * 1024,
            ),
        )(*inputs)

        # img[b, ho, wo*Cp + c] == image[b, ho, wo, c]; drop the zero-padded
        # channel and convert to PyTorch NCHW layout (cheap XLA glue).
        x = img.reshape(B, h_out, self.out_spatial, self.out_cp)[..., :self.out_c]
        return jnp.transpose(x, (0, 3, 1, 2))

    # ---- pure-JAX reference (no Pallas) --------------------------------------
    def reference(self, z_nchw):
        x = jnp.transpose(z_nchw, (0, 2, 3, 1)).astype(jnp.float32)
        for (w, b), (_, _, s, p, act) in zip(self.params, self.cfg):
            x = _ref_layer(x, w, b, stride=s, padding=p, act=act)
        return jnp.transpose(x, (0, 3, 1, 2))


if __name__ == "__main__":
    key = jax.random.PRNGKey(0)
    k_param, k_z = jax.random.split(key)

    B, Z, NGF, C = 2, 16, 8, 3
    gen = Generator(Z, NGF, C, k_param)

    z = jax.random.normal(k_z, (B, Z, 1, 1), jnp.float32)   # PyTorch-style NCHW latent

    out = jax.block_until_ready(gen(z))

    assert out.shape == (B, C, 64, 64), out.shape
    assert bool(jnp.all(jnp.isfinite(out)))

    ref = jax.block_until_ready(gen.reference(z))
    np.testing.assert_allclose(np.asarray(out), np.asarray(ref), rtol=1e-3, atol=1e-3)

    print("KERNEL_OK")
</pallas_src>

<mosaic_0001>
module attributes {stable_mosaic.version = 11 : i64} {
  func.func @kernel(%arg0: i32, %arg1: memref<1x1x16xf32, #tpu.memory_space<vmem>>, %arg2: memref<16x1024xf32, #tpu.memory_space<vmem>>, %arg3: memref<1x1024xf32, #tpu.memory_space<vmem>>, %arg4: memref<256x1024xf32, #tpu.memory_space<vmem>>, %arg5: memref<1x256xf32, #tpu.memory_space<vmem>>, %arg6: memref<256x1024xf32, #tpu.memory_space<vmem>>, %arg7: memref<1x256xf32, #tpu.memory_space<vmem>>, %arg8: memref<256x1024xf32, #tpu.memory_space<vmem>>, %arg9: memref<1x256xf32, #tpu.memory_space<vmem>>, %arg10: memref<256x1024xf32, #tpu.memory_space<vmem>>, %arg11: memref<1x256xf32, #tpu.memory_space<vmem>>, %arg12: memref<1x64x256xf32, #tpu.memory_space<vmem>>, %arg13: memref<6x256xf32, #tpu.memory_space<vmem>>, %arg14: memref<10x256xf32, #tpu.memory_space<vmem>>, %arg15: memref<18x256xf32, #tpu.memory_space<vmem>>, %arg16: memref<34x256xf32, #tpu.memory_space<vmem>>) attributes {dimension_semantics = [#tpu.dimension_semantics<parallel>], iteration_bounds = array<i64: 2>, scalar_prefetch = 0 : i64, scratch_operands = 4 : i64, tpu.core_type = #tpu.core_type<tc>, window_params = [{transform_indices = @transform_0, window_bounds = array<i64: 1, 1, 16>}, {pipeline_mode = #tpu.pipeline_mode<synchronous>, transform_indices = @transform_1, window_bounds = array<i64: 16, 1024>}, {pipeline_mode = #tpu.pipeline_mode<synchronous>, transform_indices = @transform_2, window_bounds = array<i64: 1, 1024>}, {pipeline_mode = #tpu.pipeline_mode<synchronous>, transform_indices = @transform_3, window_bounds = array<i64: 256, 1024>}, {pipeline_mode = #tpu.pipeline_mode<synchronous>, transform_indices = @transform_4, window_bounds = array<i64: 1, 256>}, {pipeline_mode = #tpu.pipeline_mode<synchronous>, transform_indices = @transform_5, window_bounds = array<i64: 256, 1024>}, {pipeline_mode = #tpu.pipeline_mode<synchronous>, transform_indices = @transform_6, window_bounds = array<i64: 1, 256>}, {pipeline_mode = #tpu.pipeline_mode<synchronous>, transform_indices = @transform_7, window_bounds = array<i64: 256, 1024>}, {pipeline_mode = #tpu.pipeline_mode<synchronous>, transform_indices = @transform_8, window_bounds = array<i64: 1, 256>}, {pipeline_mode = #tpu.pipeline_mode<synchronous>, transform_indices = @transform_9, window_bounds = array<i64: 256, 1024>}, {pipeline_mode = #tpu.pipeline_mode<synchronous>, transform_indices = @transform_10, window_bounds = array<i64: 1, 256>}, {transform_indices = @transform_11, window_bounds = array<i64: 1, 64, 256>}]} {
    %c0 = arith.constant 0 : index
    %c0_0 = arith.constant 0 : index
    %c0_1 = arith.constant 0 : index
    %0 = vector.load %arg1[%c0, %c0_0, %c0_1] : memref<1x1x16xf32, #tpu.memory_space<vmem>>, vector<1x1x16xf32>
    %1 = vector.shape_cast %0 : vector<1x1x16xf32> to vector<1x16xf32>
    %c0_2 = arith.constant 0 : index
    %c0_3 = arith.constant 0 : index
    %2 = vector.load %arg2[%c0_2, %c0_3] : memref<16x1024xf32, #tpu.memory_space<vmem>>, vector<16x1024xf32>
    %cst = arith.constant dense<0.000000e+00> : vector<1x1024xf32>
    %3 = tpu.matmul %1, %2, %cst {dimension_numbers = #tpu.dot_dimension_numbers<[1], [0], [0], [1], [0, 0, 1, 1], [], []>} : vector<1x16xf32>, vector<16x1024xf32>, vector<1x1024xf32> -> vector<1x1024xf32>
    %c0_4 = arith.constant 0 : index
    %c0_5 = arith.constant 0 : index
    %4 = vector.load %arg3[%c0_4, %c0_5] : memref<1x1024xf32, #tpu.memory_space<vmem>>, vector<1x1024xf32>
    %5 = arith.addf %3, %4 : vector<1x1024xf32>
    %cst_6 = arith.constant 0.000000e+00 : f32
    %6 = vector.broadcast %cst_6 : f32 to vector<1x1024xf32>
    %7 = arith.maximumf %5, %6 : vector<1x1024xf32>
    %cst_7 = arith.constant 0.000000e+00 : f32
    %8 = vector.broadcast %cst_7 : f32 to vector<1x256xf32>
    %c0_8 = arith.constant 0 : index
    %c0_9 = arith.constant 0 : index
    %9 = vector.load %arg13[%c0_8, %c0_9] : memref<6x256xf32, #tpu.memory_space<vmem>>, vector<1x256xf32>
    tpu.vector_store %arg13[%c0_8, %c0_9], %8 {strides = array<i32>} : memref<6x256xf32, #tpu.memory_space<vmem>>, vector<1x256xf32>,
    %c5 = arith.constant 5 : index
    %c0_10 = arith.constant 0 : index
    %10 = vector.load %arg13[%c5, %c0_10] : memref<6x256xf32, #tpu.memory_space<vmem>>, vector<1x256xf32>
    tpu.vector_store %arg13[%c5, %c0_10], %8 {strides = array<i32>} : memref<6x256xf32, #tpu.memory_space<vmem>>, vector<1x256xf32>,
    %11 = vector.extract_strided_slice %7 {offsets = [0, 0], sizes = [1, 256], strides = [1, 1]} : vector<1x1024xf32> to vector<1x256xf32>
    %c1 = arith.constant 1 : index
    %c0_11 = arith.constant 0 : index
    %12 = vector.load %arg13[%c1, %c0_11] : memref<6x256xf32, #tpu.memory_space<vmem>>, vector<1x256xf32>
    tpu.vector_store %arg13[%c1, %c0_11], %11 {strides = array<i32>} : memref<6x256xf32, #tpu.memory_space<vmem>>, vector<1x256xf32>,
    %13 = vector.extract_strided_slice %7 {offsets = [0, 256], sizes = [1, 256], strides = [1, 1]} : vector<1x1024xf32> to vector<1x256xf32>
    %c2 = arith.constant 2 : index
    %c0_12 = arith.constant 0 : index
    %14 = vector.load %arg13[%c2, %c0_12] : memref<6x256xf32, #tpu.memory_space<vmem>>, vector<1x256xf32>
    tpu.vector_store %arg13[%c2, %c0_12], %13 {strides = array<i32>} : memref<6x256xf32, #tpu.memory_space<vmem>>, vector<1x256xf32>,
    %15 = vector.extract_strided_slice %7 {offsets = [0, 512], sizes = [1, 256], strides = [1, 1]} : vector<1x1024xf32> to vector<1x256xf32>
    %c3 = arith.constant 3 : index
    %c0_13 = arith.constant 0 : index
    %16 = vector.load %arg13[%c3, %c0_13] : memref<6x256xf32, #tpu.memory_space<vmem>>, vector<1x256xf32>
    tpu.vector_store %arg13[%c3, %c0_13], %15 {strides = array<i32>} : memref<6x256xf32, #tpu.memory_space<vmem>>, vector<1x256xf32>,
    %17 = vector.extract_strided_slice %7 {offsets = [0, 768], sizes = [1, 256], strides = [1, 1]} : vector<1x1024xf32> to vector<1x256xf32>
    %c4 = arith.constant 4 : index
    %c0_14 = arith.constant 0 : index
    %18 = vector.load %arg13[%c4, %c0_14] : memref<6x256xf32, #tpu.memory_space<vmem>>, vector<1x256xf32>
    tpu.vector_store %arg13[%c4, %c0_14], %17 {strides = array<i32>} : memref<6x256xf32, #tpu.memory_space<vmem>>, vector<1x256xf32>,
    %c0_15 = arith.constant 0 : index
    %c0_16 = arith.constant 0 : index
    %19 = vector.load %arg5[%c0_15, %c0_16] : memref<1x256xf32, #tpu.memory_space<vmem>>, vector<1x256xf32>
    %c0_17 = arith.constant 0 : index
    %c0_18 = arith.constant 0 : index
    %20 = vector.load %arg13[%c0_17, %c0_18] : memref<6x256xf32, #tpu.memory_space<vmem>>, vector<4x256xf32>
    %c1_19 = arith.constant 1 : index
    %c0_20 = arith.constant 0 : index
    %21 = vector.load %arg13[%c1_19, %c0_20] : memref<6x256xf32, #tpu.memory_space<vmem>>, vector<4x256xf32>
    %c2_21 = arith.constant 2 : index
    %c0_22 = arith.constant 0 : index
    %22 = vector.load %arg13[%c2_21, %c0_22] : memref<6x256xf32, #tpu.memory_space<vmem>>, vector<4x256xf32>
    %c0_23 = arith.constant 0 : index
    %c0_24 = arith.constant 0 : index
    %23 = vector.load %arg4[%c0_23, %c0_24] : memref<256x1024xf32, #tpu.memory_space<vmem>>, vector<256x256xf32>
    %cst_25 = arith.constant dense<0.000000e+00> : vector<4x256xf32>
    %24 = tpu.matmul %20, %23, %cst_25 {dimension_numbers = #tpu.dot_dimension_numbers<[1], [0], [0], [1], [0, 0, 1, 1], [], []>} : vector<4x256xf32>, vector<256x256xf32>, vector<4x256xf32> -> vector<4x256xf32>
    %c0_26 = arith.constant 0 : index
    %c256 = arith.constant 256 : index
    %25 = vector.load %arg4[%c0_26, %c256] : memref<256x1024xf32, #tpu.memory_space<vmem>>, vector<256x256xf32>
    %cst_27 = arith.constant dense<0.000000e+00> : vector<4x256xf32>
    %26 = tpu.matmul %22, %25, %cst_27 {dimension_numbers = #tpu.dot_dimension_numbers<[1], [0], [0], [1], [0, 0, 1, 1], [], []>} : vector<4x256xf32>, vector<256x256xf32>, vector<4x256xf32> -> vector<4x256xf32>
    %c0_28 = arith.constant 0 : index
    %c512 = arith.constant 512 : index
    %27 = vector.load %arg4[%c0_28, %c512] : memref<256x1024xf32, #tpu.memory_space<vmem>>, vector<256x512xf32>
    %cst_29 = arith.constant dense<0.000000e+00> : vector<4x512xf32>
    %28 = tpu.matmul %21, %27, %cst_29 {dimension_numbers = #tpu.dot_dimension_numbers<[1], [0], [0], [1], [0, 0, 1, 1], [], []>} : vector<4x256xf32>, vector<256x512xf32>, vector<4x512xf32> -> vector<4x512xf32>
    %29 = vector.extract_strided_slice %28 {offsets = [0, 0], sizes = [4, 256], strides = [1, 1]} : vector<4x512xf32> to vector<4x256xf32>
    %30 = arith.addf %24, %29 : vector<4x256xf32>
    %31 = vector.broadcast %19 : vector<1x256xf32> to vector<4x256xf32>
    %32 = arith.addf %30, %31 : vector<4x256xf32>
    %33 = vector.extract_strided_slice %28 {offsets = [0, 256], sizes = [4, 256], strides = [1, 1]} : vector<4x512xf32> to vector<4x256xf32>
    %34 = arith.addf %26, %33 : vector<4x256xf32>
    %35 = vector.broadcast %19 : vector<1x256xf32> to vector<4x256xf32>
    %36 = arith.addf %34, %35 : vector<4x256xf32>
    %37 = tpu.iota {dimensions = array<i32: 0>} : vector<10x4xi32>
    %38 = tpu.iota {dimensions = array<i32: 1>} : vector<10x4xi32>
    %c2_i32 = arith.constant 2 : i32
    %39 = vector.broadcast %c2_i32 : i32 to vector<10x4xi32>
    %40 = arith.muli %39, %38 : vector<10x4xi32>
    %c1_i32 = arith.constant 1 : i32
    %41 = vector.broadcast %c1_i32 : i32 to vector<10x4xi32>
    %42 = arith.addi %40, %41 : vector<10x4xi32>
    %43 = arith.cmpi eq, %37, %42 : vector<10x4xi32>
    %44 = arith.extui %43 : vector<10x4xi1> to vector<10x4xi32>
    %45 = arith.sitofp %44 : vector<10x4xi32> to vector<10x4xf32>
    %c2_i32_30 = arith.constant 2 : i32
    %46 = vector.broadcast %c2_i32_30 : i32 to vector<10x4xi32>
    %47 = arith.muli %46, %38 : vector<10x4xi32>
    %c1_i32_31 = arith.constant 1 : i32
    %48 = vector.broadcast %c1_i32_31 : i32 to vector<10x4xi32>
    %49 = arith.addi %47, %48 : vector<10x4xi32>
    %c1_i32_32 = arith.constant 1 : i32
    %50 = vector.broadcast %c1_i32_32 : i32 to vector<10x4xi32>
    %51 = arith.addi %49, %50 : vector<10x4xi32>
    %52 = arith.cmpi eq, %37, %51 : vector<10x4xi32>
    %53 = arith.extui %52 : vector<10x4xi1> to vector<10x4xi32>
    %54 = arith.sitofp %53 : vector<10x4xi32> to vector<10x4xf32>
    %cst_33 = arith.constant dense<0.000000e+00> : vector<10x256xf32>
    %55 = tpu.matmul %45, %32, %cst_33 {dimension_numbers = #tpu.dot_dimension_numbers<[1], [0], [0], [1], [0, 0, 1, 1], [], []>} : vector<10x4xf32>, vector<4x256xf32>, vector<10x256xf32> -> vector<10x256xf32>
    %cst_34 = arith.constant dense<0.000000e+00> : vector<10x256xf32>
    %56 = tpu.matmul %54, %36, %cst_34 {dimension_numbers = #tpu.dot_dimension_numbers<[1], [0], [0], [1], [0, 0, 1, 1], [], []>} : vector<10x4xf32>, vector<4x256xf32>, vector<10x256xf32> -> vector<10x256xf32>
    %57 = arith.addf %55, %56 : vector<10x256xf32>
    %cst_35 = arith.constant 0.000000e+00 : f32
    %58 = vector.broadcast %cst_35 : f32 to vector<10x256xf32>
    %59 = arith.maximumf %57, %58 : vector<10x256xf32>
    %c0_36 = arith.constant 0 : index
    %c0_37 = arith.constant 0 : index
    %60 = vector.load %arg14[%c0_36, %c0_37] : memref<10x256xf32, #tpu.memory_space<vmem>>, vector<10x256xf32>
    tpu.vector_store %arg14[%c0_36, %c0_37], %59 {strides = array<i32>} : memref<10x256xf32, #tpu.memory_space<vmem>>, vector<10x256xf32>,
    %c0_38 = arith.constant 0 : index
    %c0_39 = arith.constant 0 : index
    %61 = vector.load %arg7[%c0_38, %c0_39] : memref<1x256xf32, #tpu.memory_space<vmem>>, vector<1x256xf32>
    %c0_40 = arith.constant 0 : index
    %c0_41 = arith.constant 0 : index
    %62 = vector.load %arg14[%c0_40, %c0_41] : memref<10x256xf32, #tpu.memory_space<vmem>>, vector<8x256xf32>
    %c1_42 = arith.constant 1 : index
    %c0_43 = arith.constant 0 : index
    %63 = vector.load %arg14[%c1_42, %c0_43] : memref<10x256xf32, #tpu.memory_space<vmem>>, vector<8x256xf32>
    %c2_44 = arith.constant 2 : index
    %c0_45 = arith.constant 0 : index
    %64 = vector.load %arg14[%c2_44, %c0_45] : memref<10x256xf32, #tpu.memory_space<vmem>>, vector<8x256xf32>
    %c0_46 = arith.constant 0 : index
    %c0_47 = arith.constant 0 : index
    %65 = vector.load %arg6[%c0_46, %c0_47] : memref<256x1024xf32, #tpu.memory_space<vmem>>, vector<256x256xf32>
    %cst_48 = arith.constant dense<0.000000e+00> : vector<8x256xf32>
    %66 = tpu.matmul %62, %65, %cst_48 {dimension_numbers = #tpu.dot_dimension_numbers<[1], [0], [0], [1], [0, 0, 1, 1], [], []>} : vector<8x256xf32>, vector<256x256xf32>, vector<8x256xf32> -> vector<8x256xf32>
    %c0_49 = arith.constant 0 : index
    %c256_50 = arith.constant 256 : index
    %67 = vector.load %arg6[%c0_49, %c256_50] : memref<256x1024xf32, #tpu.memory_space<vmem>>, vector<256x256xf32>
    %cst_51 = arith.constant dense<0.000000e+00> : vector<8x256xf32>
    %68 = tpu.matmul %64, %67, %cst_51 {dimension_numbers = #tpu.dot_dimension_numbers<[1], [0], [0], [1], [0, 0, 1, 1], [], []>} : vector<8x256xf32>, vector<256x256xf32>, vector<8x256xf32> -> vector<8x256xf32>
    %c0_52 = arith.constant 0 : index
    %c512_53 = arith.constant 512 : index
    %69 = vector.load %arg6[%c0_52, %c512_53] : memref<256x1024xf32, #tpu.memory_space<vmem>>, vector<256x512xf32>
    %cst_54 = arith.constant dense<0.000000e+00> : vector<8x512xf32>
    %70 = tpu.matmul %63, %69, %cst_54 {dimension_numbers = #tpu.dot_dimension_numbers<[1], [0], [0], [1], [0, 0, 1, 1], [], []>} : vector<8x256xf32>, vector<256x512xf32>, vector<8x512xf32> -> vector<8x512xf32>
    %71 = vector.extract_strided_slice %70 {offsets = [0, 0], sizes = [8, 256], strides = [1, 1]} : vector<8x512xf32> to vector<8x256xf32>
    %72 = arith.addf %66, %71 : vector<8x256xf32>
    %73 = vector.broadcast %61 : vector<1x256xf32> to vector<8x256xf32>
    %74 = arith.addf %72, %73 : vector<8x256xf32>
    %75 = vector.extract_strided_slice %70 {offsets = [0, 256], sizes = [8, 256], strides = [1, 1]} : vector<8x512xf32> to vector<8x256xf32>
    %76 = arith.addf %68, %75 : vector<8x256xf32>
    %77 = vector.broadcast %61 : vector<1x256xf32> to vector<8x256xf32>
    %78 = arith.addf %76, %77 : vector<8x256xf32>
    %79 = tpu.iota {dimensions = array<i32: 0>} : vector<18x8xi32>
    %80 = tpu.iota {dimensions = array<i32: 1>} : vector<18x8xi32>
    %c2_i32_55 = arith.constant 2 : i32
    %81 = vector.broadcast %c2_i32_55 : i32 to vector<18x8xi32>
    %82 = arith.muli %81, %80 : vector<18x8xi32>
    %c1_i32_56 = arith.constant 1 : i32
    %83 = vector.broadcast %c1_i32_56 : i32 to vector<18x8xi32>
    %84 = arith.addi %82, %83 : vector<18x8xi32>
    %85 = arith.cmpi eq, %79, %84 : vector<18x8xi32>
    %86 = arith.extui %85 : vector<18x8xi1> to vector<18x8xi32>
    %87 = arith.sitofp %86 : vector<18x8xi32> to vector<18x8xf32>
    %c2_i32_57 = arith.constant 2 : i32
    %88 = vector.broadcast %c2_i32_57 : i32 to vector<18x8xi32>
    %89 = arith.muli %88, %80 : vector<18x8xi32>
    %c1_i32_58 = arith.constant 1 : i32
    %90 = vector.broadcast %c1_i32_58 : i32 to vector<18x8xi32>
    %91 = arith.addi %89, %90 : vector<18x8xi32>
    %c1_i32_59 = arith.constant 1 : i32
    %92 = vector.broadcast %c1_i32_59 : i32 to vector<18x8xi32>
    %93 = arith.addi %91, %92 : vector<18x8xi32>
    %94 = arith.cmpi eq, %79, %93 : vector<18x8xi32>
    %95 = arith.extui %94 : vector<18x8xi1> to vector<18x8xi32>
    %96 = arith.sitofp %95 : vector<18x8xi32> to vector<18x8xf32>
    %cst_60 = arith.constant dense<0.000000e+00> : vector<18x256xf32>
    %97 = tpu.matmul %87, %74, %cst_60 {dimension_numbers = #tpu.dot_dimension_numbers<[1], [0], [0], [1], [0, 0, 1, 1], [], []>} : vector<18x8xf32>, vector<8x256xf32>, vector<18x256xf32> -> vector<18x256xf32>
    %cst_61 = arith.constant dense<0.000000e+00> : vector<18x256xf32>
    %98 = tpu.matmul %96, %78, %cst_61 {dimension_numbers = #tpu.dot_dimension_numbers<[1], [0], [0], [1], [0, 0, 1, 1], [], []>} : vector<18x8xf32>, vector<8x256xf32>, vector<18x256xf32> -> vector<18x256xf32>
    %99 = arith.addf %97, %98 : vector<18x256xf32>
    %cst_62 = arith.constant 0.000000e+00 : f32
    %100 = vector.broadcast %cst_62 : f32 to vector<18x256xf32>
    %101 = arith.maximumf %99, %100 : vector<18x256xf32>
    %c0_63 = arith.constant 0 : index
    %c0_64 = arith.constant 0 : index
    %102 = vector.load %arg15[%c0_63, %c0_64] : memref<18x256xf32, #tpu.memory_space<vmem>>, vector<18x256xf32>
    tpu.vector_store %arg15[%c0_63, %c0_64], %101 {strides = array<i32>} : memref<18x256xf32, #tpu.memory_space<vmem>>, vector<18x256xf32>,
    %c0_65 = arith.constant 0 : index
    %c0_66 = arith.constant 0 : index
    %103 = vector.load %arg9[%c0_65, %c0_66] : memref<1x256xf32, #tpu.memory_space<vmem>>, vector<1x256xf32>
    %c0_67 = arith.constant 0 : index
    %c0_68 = arith.constant 0 : index
    %104 = vector.load %arg15[%c0_67, %c0_68] : memref<18x256xf32, #tpu.memory_space<vmem>>, vector<16x256xf32>
    %c1_69 = arith.constant 1 : index
    %c0_70 = arith.constant 0 : index
    %105 = vector.load %arg15[%c1_69, %c0_70] : memref<18x256xf32, #tpu.memory_space<vmem>>, vector<16x256xf32>
    %c2_71 = arith.constant 2 : index
    %c0_72 = arith.constant 0 : index
    %106 = vector.load %arg15[%c2_71, %c0_72] : memref<18x256xf32, #tpu.memory_space<vmem>>, vector<16x256xf32>
    %c0_73 = arith.constant 0 : index
    %c0_74 = arith.constant 0 : index
    %107 = vector.load %arg8[%c0_73, %c0_74] : memref<256x1024xf32, #tpu.memory_space<vmem>>, vector<256x256xf32>
    %cst_75 = arith.constant dense<0.000000e+00> : vector<16x256xf32>
    %108 = tpu.matmul %104, %107, %cst_75 {dimension_numbers = #tpu.dot_dimension_numbers<[1], [0], [0], [1], [0, 0, 1, 1], [], []>} : vector<16x256xf32>, vector<256x256xf32>, vector<16x256xf32> -> vector<16x256xf32>
    %c0_76 = arith.constant 0 : index
    %c256_77 = arith.constant 256 : index
    %109 = vector.load %arg8[%c0_76, %c256_77] : memref<256x1024xf32, #tpu.memory_space<vmem>>, vector<256x256xf32>
    %cst_78 = arith.constant dense<0.000000e+00> : vector<16x256xf32>
    %110 = tpu.matmul %106, %109, %cst_78 {dimension_numbers = #tpu.dot_dimension_numbers<[1], [0], [0], [1], [0, 0, 1, 1], [], []>} : vector<16x256xf32>, vector<256x256xf32>, vector<16x256xf32> -> vector<16x256xf32>
    %c0_79 = arith.constant 0 : index
    %c512_80 = arith.constant 512 : index
    %111 = vector.load %arg8[%c0_79, %c512_80] : memref<256x1024xf32, #tpu.memory_space<vmem>>, vector<256x512xf32>
    %cst_81 = arith.constant dense<0.000000e+00> : vector<16x512xf32>
    %112 = tpu.matmul %105, %111, %cst_81 {dimension_numbers = #tpu.dot_dimension_numbers<[1], [0], [0], [1], [0, 0, 1, 1], [], []>} : vector<16x256xf32>, vector<256x512xf32>, vector<16x512xf32> -> vector<16x512xf32>
    %113 = vector.extract_strided_slice %112 {offsets = [0, 0], sizes = [16, 256], strides = [1, 1]} : vector<16x512xf32> to vector<16x256xf32>
    %114 = arith.addf %108, %113 : vector<16x256xf32>
    %115 = vector.broadcast %103 : vector<1x256xf32> to vector<16x256xf32>
    %116 = arith.addf %114, %115 : vector<16x256xf32>
    %117 = vector.extract_strided_slice %112 {offsets = [0, 256], sizes = [16, 256], strides = [1, 1]} : vector<16x512xf32> to vector<16x256xf32>
    %118 = arith.addf %110, %117 : vector<16x256xf32>
    %119 = vector.broadcast %103 : vector<1x256xf32> to vector<16x256xf32>
    %120 = arith.addf %118, %119 : vector<16x256xf32>
    %121 = tpu.iota {dimensions = array<i32: 0>} : vector<34x16xi32>
    %122 = tpu.iota {dimensions = array<i32: 1>} : vector<34x16xi32>
    %c2_i32_82 = arith.constant 2 : i32
    %123 = vector.broadcast %c2_i32_82 : i32 to vector<34x16xi32>
    %124 = arith.muli %123, %122 : vector<34x16xi32>
    %c1_i32_83 = arith.constant 1 : i32
    %125 = vector.broadcast %c1_i32_83 : i32 to vector<34x16xi32>
    %126 = arith.addi %124, %125 : vector<34x16xi32>
    %127 = arith.cmpi eq, %121, %126 : vector<34x16xi32>
    %128 = arith.extui %127 : vector<34x16xi1> to vector<34x16xi32>
    %129 = arith.sitofp %128 : vector<34x16xi32> to vector<34x16xf32>
    %c2_i32_84 = arith.constant 2 : i32
    %130 = vector.broadcast %c2_i32_84 : i32 to vector<34x16xi32>
    %131 = arith.muli %130, %122 : vector<34x16xi32>
    %c1_i32_85 = arith.constant 1 : i32
    %132 = vector.broadcast %c1_i32_85 : i32 to vector<34x16xi32>
    %133 = arith.addi %131, %132 : vector<34x16xi32>
    %c1_i32_86 = arith.constant 1 : i32
    %134 = vector.broadcast %c1_i32_86 : i32 to vector<34x16xi32>
    %135 = arith.addi %133, %134 : vector<34x16xi32>
    %136 = arith.cmpi eq, %121, %135 : vector<34x16xi32>
    %137 = arith.extui %136 : vector<34x16xi1> to vector<34x16xi32>
    %138 = arith.sitofp %137 : vector<34x16xi32> to vector<34x16xf32>
    %cst_87 = arith.constant dense<0.000000e+00> : vector<34x256xf32>
    %139 = tpu.matmul %129, %116, %cst_87 {dimension_numbers = #tpu.dot_dimension_numbers<[1], [0], [0], [1], [0, 0, 1, 1], [], []>} : vector<34x16xf32>, vector<16x256xf32>, vector<34x256xf32> -> vector<34x256xf32>
    %cst_88 = arith.constant dense<0.000000e+00> : vector<34x256xf32>
    %140 = tpu.matmul %138, %120, %cst_88 {dimension_numbers = #tpu.dot_dimension_numbers<[1], [0], [0], [1], [0, 0, 1, 1], [], []>} : vector<34x16xf32>, vector<16x256xf32>, vector<34x256xf32> -> vector<34x256xf32>
    %141 = arith.addf %139, %140 : vector<34x256xf32>
    %cst_89 = arith.constant 0.000000e+00 : f32
    %142 = vector.broadcast %cst_89 : f32 to vector<34x256xf32>
    %143 = arith.maximumf %141, %142 : vector<34x256xf32>
    %c0_90 = arith.constant 0 : index
    %c0_91 = arith.constant 0 : index
    %144 = vector.load %arg16[%c0_90, %c0_91] : memref<34x256xf32, #tpu.memory_space<vmem>>, vector<34x256xf32>
    tpu.vector_store %arg16[%c0_90, %c0_91], %143 {strides = array<i32>} : memref<34x256xf32, #tpu.memory_space<vmem>>, vector<34x256xf32>,
    %c0_92 = arith.constant 0 : index
    %c0_93 = arith.constant 0 : index
    %145 = vector.load %arg11[%c0_92, %c0_93] : memref<1x256xf32, #tpu.memory_space<vmem>>, vector<1x256xf32>
    %c0_94 = arith.constant 0 : index
    %c0_95 = arith.constant 0 : index
    %146 = vector.load %arg16[%c0_94, %c0_95] : memref<34x256xf32, #tpu.memory_space<vmem>>, vector<32x256xf32>
    %c1_96 = arith.constant 1 : index
    %c0_97 = arith.constant 0 : index
    %147 = vector.load %arg16[%c1_96, %c0_97] : memref<34x256xf32, #tpu.memory_space<vmem>>, vector<32x256xf32>
    %c2_98 = arith.constant 2 : index
    %c0_99 = arith.constant 0 : index
    %148 = vector.load %arg16[%c2_98, %c0_99] : memref<34x256xf32, #tpu.memory_space<vmem>>, vector<32x256xf32>
    %c0_100 = arith.constant 0 : index
    %c0_101 = arith.constant 0 : index
    %149 = vector.load %arg10[%c0_100, %c0_101] : memref<256x1024xf32, #tpu.memory_space<vmem>>, vector<256x256xf32>
    %cst_102 = arith.constant dense<0.000000e+00> : vector<32x256xf32>
    %150 = tpu.matmul %146, %149, %cst_102 {dimension_numbers = #tpu.dot_dimension_numbers<[1], [0], [0], [1], [0, 0, 1, 1], [], []>} : vector<32x256xf32>, vector<256x256xf32>, vector<32x256xf32> -> vector<32x256xf32>
    %c0_103 = arith.constant 0 : index
    %c256_104 = arith.constant 256 : index
    %151 = vector.load %arg10[%c0_103, %c256_104] : memref<256x1024xf32, #tpu.memory_space<vmem>>, vector<256x256xf32>
    %cst_105 = arith.constant dense<0.000000e+00> : vector<32x256xf32>
    %152 = tpu.matmul %148, %151, %cst_105 {dimension_numbers = #tpu.dot_dimension_numbers<[1], [0], [0], [1], [0, 0, 1, 1], [], []>} : vector<32x256xf32>, vector<256x256xf32>, vector<32x256xf32> -> vector<32x256xf32>
    %c0_106 = arith.constant 0 : index
    %c512_107 = arith.constant 512 : index
    %153 = vector.load %arg10[%c0_106, %c512_107] : memref<256x1024xf32, #tpu.memory_space<vmem>>, vector<256x512xf32>
    %cst_108 = arith.constant dense<0.000000e+00> : vector<32x512xf32>
    %154 = tpu.matmul %147, %153, %cst_108 {dimension_numbers = #tpu.dot_dimension_numbers<[1], [0], [0], [1], [0, 0, 1, 1], [], []>} : vector<32x256xf32>, vector<256x512xf32>, vector<32x512xf32> -> vector<32x512xf32>
    %155 = vector.extract_strided_slice %154 {offsets = [0, 0], sizes = [32, 256], strides = [1, 1]} : vector<32x512xf32> to vector<32x256xf32>
    %156 = arith.addf %150, %155 : vector<32x256xf32>
    %157 = vector.broadcast %145 : vector<1x256xf32> to vector<32x256xf32>
    %158 = arith.addf %156, %157 : vector<32x256xf32>
    %159 = vector.extract_strided_slice %154 {offsets = [0, 256], sizes = [32, 256], strides = [1, 1]} : vector<32x512xf32> to vector<32x256xf32>
    %160 = arith.addf %152, %159 : vector<32x256xf32>
    %161 = vector.broadcast %145 : vector<1x256xf32> to vector<32x256xf32>
    %162 = arith.addf %160, %161 : vector<32x256xf32>
    %163 = tpu.iota {dimensions = array<i32: 0>} : vector<64x32xi32>
    %164 = tpu.iota {dimensions = array<i32: 1>} : vector<64x32xi32>
    %c2_i32_109 = arith.constant 2 : i32
    %165 = vector.broadcast %c2_i32_109 : i32 to vector<64x32xi32>
    %166 = arith.muli %165, %164 : vector<64x32xi32>
    %c0_i32 = arith.constant 0 : i32
    %167 = vector.broadcast %c0_i32 : i32 to vector<64x32xi32>
    %168 = arith.addi %166, %167 : vector<64x32xi32>
    %169 = arith.cmpi eq, %163, %168 : vector<64x32xi32>
    %170 = arith.extui %169 : vector<64x32xi1> to vector<64x32xi32>
    %171 = arith.sitofp %170 : vector<64x32xi32> to vector<64x32xf32>
    %c2_i32_110 = arith.constant 2 : i32
    %172 = vector.broadcast %c2_i32_110 : i32 to vector<64x32xi32>
    %173 = arith.muli %172, %164 : vector<64x32xi32>
    %c0_i32_111 = arith.constant 0 : i32
    %174 = vector.broadcast %c0_i32_111 : i32 to vector<64x32xi32>
    %175 = arith.addi %173, %174 : vector<64x32xi32>
    %c1_i32_112 = arith.constant 1 : i32
    %176 = vector.broadcast %c1_i32_112 : i32 to vector<64x32xi32>
    %177 = arith.addi %175, %176 : vector<64x32xi32>
    %178 = arith.cmpi eq, %163, %177 : vector<64x32xi32>
    %179 = arith.extui %178 : vector<64x32xi1> to vector<64x32xi32>
    %180 = arith.sitofp %179 : vector<64x32xi32> to vector<64x32xf32>
    %cst_113 = arith.constant dense<0.000000e+00> : vector<64x256xf32>
    %181 = tpu.matmul %171, %158, %cst_113 {dimension_numbers = #tpu.dot_dimension_numbers<[1], [0], [0], [1], [0, 0, 1, 1], [], []>} : vector<64x32xf32>, vector<32x256xf32>, vector<64x256xf32> -> vector<64x256xf32>
    %cst_114 = arith.constant dense<0.000000e+00> : vector<64x256xf32>
    %182 = tpu.matmul %180, %162, %cst_114 {dimension_numbers = #tpu.dot_dimension_numbers<[1], [0], [0], [1], [0, 0, 1, 1], [], []>} : vector<64x32xf32>, vector<32x256xf32>, vector<64x256xf32> -> vector<64x256xf32>
    %183 = arith.addf %181, %182 : vector<64x256xf32>
    %184 = math.tanh %183 : vector<64x256xf32>
    %c0_115 = arith.constant 0 : index
    %c0_116 = arith.constant 0 : index
    %c0_117 = arith.constant 0 : index
    %185 = vector.load %arg12[%c0_115, %c0_116, %c0_117] : memref<1x64x256xf32, #tpu.memory_space<vmem>>, vector<1x64x256xf32>
    %186 = vector.shape_cast %185 : vector<1x64x256xf32> to vector<64x256xf32>
    %187 = vector.shape_cast %184 : vector<64x256xf32> to vector<1x64x256xf32>
    tpu.vector_store %arg12[%c0_115, %c0_116, %c0_117], %187 {strides = array<i32>} : memref<1x64x256xf32, #tpu.memory_space<vmem>>, vector<1x64x256xf32>,
    return
  }
  func.func @transform_0(%arg0: i32) -> (i32, i32, i32) {
    %c0_i32 = arith.constant 0 : i32
    %c0_i32_0 = arith.constant 0 : i32
    %c0_i32_1 = arith.constant 0 : i32
    return %arg0, %c0_i32, %c0_i32_0 : i32, i32, i32
  }
  func.func @transform_1(%arg0: i32) -> (i32, i32) {
    %c0_i32 = arith.constant 0 : i32
    %c0_i32_0 = arith.constant 0 : i32
    %c0_i32_1 = arith.constant 0 : i32
    return %c0_i32, %c0_i32_0 : i32, i32
  }
  func.func @transform_2(%arg0: i32) -> (i32, i32) {
    %c0_i32 = arith.constant 0 : i32
    %c0_i32_0 = arith.constant 0 : i32
    %c0_i32_1 = arith.constant 0 : i32
    return %c0_i32, %c0_i32_0 : i32, i32
  }
  func.func @transform_3(%arg0: i32) -> (i32, i32) {
    %c0_i32 = arith.constant 0 : i32
    %c0_i32_0 = arith.constant 0 : i32
    %c0_i32_1 = arith.constant 0 : i32
    return %c0_i32, %c0_i32_0 : i32, i32
  }
  func.func @transform_4(%arg0: i32) -> (i32, i32) {
    %c0_i32 = arith.constant 0 : i32
    %c0_i32_0 = arith.constant 0 : i32
    %c0_i32_1 = arith.constant 0 : i32
    return %c0_i32, %c0_i32_0 : i32, i32
  }
  func.func @transform_5(%arg0: i32) -> (i32, i32) {
    %c0_i32 = arith.constant 0 : i32
    %c0_i32_0 = arith.constant 0 : i32
    %c0_i32_1 = arith.constant 0 : i32
    return %c0_i32, %c0_i32_0 : i32, i32
  }
  func.func @transform_6(%arg0: i32) -> (i32, i32) {
    %c0_i32 = arith.constant 0 : i32
    %c0_i32_0 = arith.constant 0 : i32
    %c0_i32_1 = arith.constant 0 : i32
    return %c0_i32, %c0_i32_0 : i32, i32
  }
  func.func @transform_7(%arg0: i32) -> (i32, i32) {
    %c0_i32 = arith.constant 0 : i32
    %c0_i32_0 = arith.constant 0 : i32
    %c0_i32_1 = arith.constant 0 : i32
    return %c0_i32, %c0_i32_0 : i32, i32
  }
  func.func @transform_8(%arg0: i32) -> (i32, i32) {
    %c0_i32 = arith.constant 0 : i32
    %c0_i32_0 = arith.constant 0 : i32
    %c0_i32_1 = arith.constant 0 : i32
    return %c0_i32, %c0_i32_0 : i32, i32
  }
  func.func @transform_9(%arg0: i32) -> (i32, i32) {
    %c0_i32 = arith.constant 0 : i32
    %c0_i32_0 = arith.constant 0 : i32
    %c0_i32_1 = arith.constant 0 : i32
    return %c0_i32, %c0_i32_0 : i32, i32
  }
  func.func @transform_10(%arg0: i32) -> (i32, i32) {
    %c0_i32 = arith.constant 0 : i32
    %c0_i32_0 = arith.constant 0 : i32
    %c0_i32_1 = arith.constant 0 : i32
    return %c0_i32, %c0_i32_0 : i32, i32
  }
  func.func @transform_11(%arg0: i32) -> (i32, i32, i32) {
    %c0_i32 = arith.constant 0 : i32
    %c0_i32_0 = arith.constant 0 : i32
    %c0_i32_1 = arith.constant 0 : i32
    return %arg0, %c0_i32, %c0_i32_0 : i32, i32, i32
  }
}

</mosaic_0001>

<bundles_post_ra>
// kernel: tpu_custom_call.1
= control target key start
LH: loop header
LB: loop body
LE: loop exit
PB: predicated region body
PF: predicated region fallthrough
CT: control target
= control target key end

     0   :  { %s7048_s0 = inlined_call_operand.hbm [shape: f32[2,1,16], index: 0, kind: input, shape index: {}]   ;;  %s7049_s1 = inlined_call_operand.hbm [shape: f32[16,1024], index: 1, kind: input, shape index: {}]   ;;  %s7050_s2 = inlined_call_operand.hbm [shape: f32[1,1024], index: 2, kind: input, shape index: {}]   ;;  %s7051_s3 = inlined_call_operand.hbm [shape: f32[256,1024], index: 3, kind: input, shape index: {}]   ;;  %s7052_s4 = inlined_call_operand.vmem [shape: f32[1,256], index: 4, kind: input, shape index: {}]   ;;  %s7053_s5 = inlined_call_operand.hbm [shape: f32[256,1024], index: 5, kind: input, shape index: {}]   ;;  %s7054_s6 = inlined_call_operand.vmem [shape: f32[1,256], index: 6, kind: input, shape index: {}]   ;;  %s7055_s7 = inlined_call_operand.hbm [shape: f32[256,1024], index: 7, kind: input, shape index: {}]   ;;  %s7056_s8 = inlined_call_operand.vmem [shape: f32[1,256], index: 8, kind: input, shape index: {}]   ;;  %s7057_s9 = inlined_call_operand.hbm [shape: f32[256,1024], index: 9, kind: input, shape index: {}]   ;;  %s7058_s10 = inlined_call_operand.vmem [shape: f32[1,256], index: 10, kind: input, shape index: {}]   ;;  %s7059_s11 = inlined_call_operand.hbm [shape: f32[2,64,256], index: 11, kind: output, shape index: {}]  }
   0x1   :  { %7064 = sst [smem:[#allocation24_spill]] %s7049_s1 }
   0x2   :  { %7065 = sst [smem:[#allocation25_spill]] %s7056_s8 }
   0x3   :  { %7066 = sst [smem:[#allocation26_spill]] %s7058_s10 }
   0x4   :  { %7067 = sst [smem:[#allocation27_spill]] %s7059_s11 }
   0x5   :  { %16 = vsyncpa [#allocation7], 0 }
   0x6   :  { %18 = vsyncpa [#allocation7 + $0x1], 0 }
   0x7   :  { %19 = vsyncpa [#allocation10], 0 }
   0x8   :  { %20 = vsyncpa [#allocation13], 0 }
   0x9   :  { %21 = vsyncpa [#allocation16], 0 }
   0xa   :  { %22 = vsyncpa [#allocation8], 0 }
   0xb   :  { %24 = vsyncpa [#allocation8 + $0x1], 0  ;;  %s6311_s17 = smov 0   ;;  %s6313_s18 = smov 0  }
   0xc   :  { %s6315_s19 = smov 0   ;;  %s6317_s20 = smov 0  }
   0xd LB: > { %s6237_s21 = smov [#allocation9]   ;;  %s6332_s23 = sadd.s32 4294967295, %s6235_s20   ;;  %s6235_s20 = sphi %s6317_s20, %s7096_s20   ;;  %s6231_s19 = sphi %s6315_s19, %s7095_s19   ;;  %s6227_s18 = sphi %s6313_s18, %s7094_s18   ;;  %s6223_s17 = sphi %s6311_s17, %s7093_s17  }
   0xe   : > { %s309_s22 = sshll.u32 %s6237_s21, 4  ;;  %p4590_p0 = scmp.ge.s32.totalorder %s6235_s20, 1  ;;  %s6337_s22 = int_to_ptr.vmem [resolvable:$true] %s309_s22 }
   0xf   : > { %p7061_p1 = scmp.eq.s32.totalorder %s6332_s23, 0  ;;  %p297_p2 = scmp.lt.s32.totalorder %s6235_s20, 3 }
  0x10   : > { %s6238_s25 = smov [#allocation12]   ;;  %s6239_s28 = smov [#allocation15]  }
  0x11   : > { %p6339_p3 = pnand %p4590_p0, %p297_p2  ;;  %s333_s26 = sshll.u32 %s6238_s25, 4  ;;  %s6352_s26 = int_to_ptr.vmem [resolvable:$true] %s333_s26 }
  0x12   : > { %s365_s29 = sshll.u32 %s6239_s28, 4  ;;  %s7070_s1 = sld [smem:[#allocation24_spill]]  ;;  %s6354_s29 = int_to_ptr.vmem [resolvable:$true] %s365_s29 }
  0x13   : > { %s7068_s24 = scalar_select %p6339_p3, 1, 0 }
  0x14   : > { %p5842_p5 = pneg %p6339_p3 }
  0x16   : > { %p6348_p6 = pnand %p5842_p5, %p7061_p1 }
  0x18   : > { %s5959_s13 = scalar_lea.hbm %s7070_s1, 2048  ;;  %p6364_p8 = pneg %p6348_p6 }
  0x19   : > { %p5960_p7 = scmp.ne.s32.totalorder %s7070_s1, %s5959_s13  ;;  %p5966_p11 = scmp.lt.u32.totalorder %s5959_s13, %s7070_s1 }
  0x1b   : > { %p5962_p9 = pnand %p6364_p8, %p5960_p7 }
  0x1d   : > { %p5963_p10 = pneg %p5962_p9 }
  0x1f   : > { %p5968_p12 = pnand %p5966_p11, %p5963_p10 }
  0x21   : > { %5971 = shalt.err (!%p5968_p12)
}
  0x22   : > { %s5972_s28 = scalar_lea.vmem %s6337_s22, 2048  ;;  %p5980_p5 = scmp.lt.s32.totalorder %s6337_s22, %s6337_s22 }
  0x23   : > { %p5973_p13 = scmp.ne.s32.totalorder %s6337_s22, %s5972_s28  ;;  %p5981_p4 = scmp.lt.s32.totalorder %s5972_s28, %s5972_s28 }
  0x25   : > { %p5975_p0 = pnand %p5973_p13, %p6364_p8  ;;  %p5982_p7 = por %p5981_p4, %p5980_p5 }
  0x27   : > { %p5976_p2 = pneg %p5975_p0 }
  0x29   : > { %p5983_p9 = pnand %p5982_p7, %p5976_p2 }
  0x2b   : > { %5986 = shalt.err (!%p5983_p9)
}
  0x2c   : > { %s6240_s30 = smov 1024   ;;  %s6241_s12 = smov 64  }
  0x2d   : > { %5845 = dma.hbm_to_vmem [thread:$0]  (!%p6348_p6), %s7070_s1, 2048, %s6337_s22, [#allocation10], %s6240_s30, %s6240_s30, %s6241_s12  }
  0x2e   : > { %s5987_s25 = scalar_lea.hbm %s7051_s3, 32768 }
  0x2f   : > { %p5988_p4 = scmp.ne.s32.totalorder %s7051_s3, %s5987_s25  ;;  %p5994_p12 = scmp.lt.u32.totalorder %s5987_s25, %s7051_s3 }
  0x31   : > { %p5990_p10 = pnand %p5988_p4, %p6364_p8 }
  0x33   : > { %p5991_p11 = pneg %p5990_p10 }
  0x35   : > { %p5996_p13 = pnand %p5994_p12, %p5991_p11 }
  0x37   : > { %5999 = shalt.err (!%p5996_p13)
}
  0x38   : > { %s6000_s22 = scalar_lea.vmem %s6352_s26, 32768  ;;  %p6008_p7 = scmp.lt.s32.totalorder %s6352_s26, %s6352_s26 }
  0x39   : > { %p6001_p0 = scmp.ne.s32.totalorder %s6352_s26, %s6000_s22  ;;  %p6009_p9 = scmp.lt.s32.totalorder %s6000_s22, %s6000_s22 }
  0x3b   : > { %p6003_p2 = pnand %p6001_p0, %p6364_p8  ;;  %p6010_p4 = por %p6009_p9, %p6008_p7 }
  0x3d   : > { %p6004_p5 = pneg %p6003_p2 }
  0x3f   : > { %p6011_p10 = pnand %p6010_p4, %p6004_p5 }
  0x41   : > { %6014 = shalt.err (!%p6011_p10)
}
  0x42   : > { %5851 = dma.hbm_to_vmem [thread:$0]  (!%p6348_p6), %s7051_s3, 32768, %s6352_s26, [#allocation13], %s6240_s30, %s6240_s30, %s6241_s12  }
  0x43   : > { %s6015_s14 = scalar_lea.hbm %s7055_s7, 32768 }
  0x44   : > { %p6016_p11 = scmp.ne.s32.totalorder %s7055_s7, %s6015_s14  ;;  %p6022_p0 = scmp.lt.u32.totalorder %s6015_s14, %s7055_s7 }
  0x46   : > { %p6018_p12 = pnand %p6016_p11, %p6364_p8 }
  0x48   : > { %p6019_p13 = pneg %p6018_p12 }
  0x4a   : > { %p6024_p2 = pnand %p6022_p0, %p6019_p13 }
  0x4c   : > { %6027 = shalt.err (!%p6024_p2)
}
  0x4d   : > { %s6028_s26 = scalar_lea.vmem %s6354_s29, 32768  ;;  %p6036_p4 = scmp.lt.s32.totalorder %s6354_s29, %s6354_s29 }
  0x4e   : > { %p6029_p5 = scmp.ne.s32.totalorder %s6354_s29, %s6028_s26  ;;  %p6037_p10 = scmp.lt.s32.totalorder %s6028_s26, %s6028_s26 }
  0x50   : > { %p6031_p7 = pnand %p6029_p5, %p6364_p8  ;;  %p6038_p11 = por %p6037_p10, %p6036_p4 }
  0x52   : > { %p6032_p9 = pneg %p6031_p7 }
  0x54   : > { %p6039_p12 = pnand %p6038_p11, %p6032_p9 }
  0x56   : > { %6042 = shalt.err (!%p6039_p12)
}
  0x57   : > { %5857 = dma.hbm_to_vmem [thread:$0]  (!%p6348_p6), %s7055_s7, 32768, %s6354_s29, [#allocation16], %s6240_s30, %s6240_s30, %s6241_s12  }
  0x58   : > { %s6242_s10 = smov [#allocation11]   ;;  %s6243_s13 = smov [#allocation14]  }
  0x59   : > { %s323_s11 = sshll.u32 %s6242_s10, 4  ;;  %s349_s14 = sshll.u32 %s6243_s13, 4  ;;  %s324_s11 = int_to_ptr.vmem [resolvable:$true] %s323_s11  ;;  %s350_s14 = int_to_ptr.vmem [resolvable:$true] %s349_s14 }
  0x5a   : > { %s6043_s25 = scalar_lea.hbm %s7050_s2, 128 }
  0x5b   : > { %p6044_p13 = scmp.ne.s32.totalorder %s7050_s2, %s6043_s25  ;;  %p6050_p5 = scmp.lt.u32.totalorder %s6043_s25, %s7050_s2 }
  0x5d   : > { %p6046_p0 = pnand %p6044_p13, %p6364_p8 }
  0x5f   : > { %p6047_p2 = pneg %p6046_p0 }
  0x61   : > { %p6052_p7 = pnand %p6050_p5, %p6047_p2 }
  0x63   : > { %6055 = shalt.err (!%p6052_p7)
}
  0x64   : > { %s6056_s29 = scalar_lea.vmem %s324_s11, 128  ;;  %p6064_p11 = scmp.lt.s32.totalorder %s324_s11, %s324_s11 }
  0x65   : > { %p6057_p9 = scmp.ne.s32.totalorder %s324_s11, %s6056_s29  ;;  %p6065_p12 = scmp.lt.s32.totalorder %s6056_s29, %s6056_s29 }
  0x67   : > { %p6059_p4 = pnand %p6057_p9, %p6364_p8  ;;  %p6066_p1 = por %p6065_p12, %p6064_p11 }
  0x69   : > { %p6060_p10 = pneg %p6059_p4 }
  0x6b   : > { %p6067_p3 = pnand %p6066_p1, %p6060_p10 }
  0x6d   : > { %6070 = shalt.err (!%p6067_p3)
}
  0x6e   : > { %5848 = dma.hbm_to_vmem [thread:$0]  (!%p6348_p6), %s7050_s2, 128, %s324_s11, [#allocation10]  }
  0x6f   : > { %s6071_s15 = scalar_lea.hbm %s7053_s5, 32768 }
  0x70   : > { %p6072_p13 = scmp.ne.s32.totalorder %s7053_s5, %s6071_s15  ;;  %p6078_p3 = scmp.lt.u32.totalorder %s6071_s15, %s7053_s5 }
  0x72   : > { %p6074_p0 = pnand %p6072_p13, %p6364_p8 }
  0x74   : > { %p6075_p1 = pneg %p6074_p0 }
  0x76   : > { %p6080_p2 = pnand %p6078_p3, %p6075_p1 }
  0x78   : > { %6083 = shalt.err (!%p6080_p2)
}
  0x79   : > { %s6084_s22 = scalar_lea.vmem %s350_s14, 32768  ;;  %p6092_p4 = scmp.lt.s32.totalorder %s350_s14, %s350_s14 }
  0x7a   : > { %p6085_p5 = scmp.ne.s32.totalorder %s350_s14, %s6084_s22  ;;  %p6093_p10 = scmp.lt.s32.totalorder %s6084_s22, %s6084_s22 }
  0x7c   : > { %p6087_p7 = pnand %p6085_p5, %p6364_p8  ;;  %p6094_p11 = por %p6093_p10, %p6092_p4 }
  0x7e   : > { %p6088_p9 = pneg %p6087_p7 }
  0x80   : > { %p6095_p12 = pnand %p6094_p11, %p6088_p9 }
  0x82   : > { %6098 = shalt.err (!%p6095_p12)
}
  0x83   : > { %5854 = dma.hbm_to_vmem [thread:$0]  (!%p6348_p6), %s7053_s5, 32768, %s350_s14, [#allocation13], %s6240_s30, %s6240_s30, %s6241_s12  }
  0x84   : > { %s6244_s8 = smov [#allocation17]   ;;  %s6099_s15 = scalar_lea.hbm %s7057_s9, 32768 }
  0x85   : > { %s381_s10 = sshll.u32 %s6244_s8, 4  ;;  %p6100_p13 = scmp.ne.s32.totalorder %s7057_s9, %s6099_s15  ;;  %s382_s10 = int_to_ptr.vmem [resolvable:$true] %s381_s10 }
  0x86   : > { %p6106_p3 = scmp.lt.u32.totalorder %s6099_s15, %s7057_s9 }
  0x87   : > { %p6102_p0 = pnand %p6100_p13, %p6364_p8 }
  0x89   : > { %p6103_p1 = pneg %p6102_p0 }
  0x8b   : > { %p6108_p2 = pnand %p6106_p3, %p6103_p1 }
  0x8d   : > { %6111 = shalt.err (!%p6108_p2)
}
  0x8e   : > { %s6112_s14 = scalar_lea.vmem %s382_s10, 32768  ;;  %p6120_p4 = scmp.lt.s32.totalorder %s382_s10, %s382_s10 }
  0x8f   : > { %p6113_p5 = scmp.ne.s32.totalorder %s382_s10, %s6112_s14  ;;  %p6121_p10 = scmp.lt.s32.totalorder %s6112_s14, %s6112_s14 }
  0x91   : > { %p6115_p7 = pnand %p6113_p5, %p6364_p8  ;;  %p6122_p11 = por %p6121_p10, %p6120_p4 }
  0x93   : > { %p6116_p9 = pneg %p6115_p7 }
  0x95   : > { %p6123_p12 = pnand %p6122_p11, %p6116_p9 }
  0x97   : > { %6126 = shalt.err (!%p6123_p12)
}
  0x98   : > { %5860 = dma.hbm_to_vmem [thread:$0]  (!%p6348_p6), %s7057_s9, 32768, %s382_s10, [#allocation16], %s6240_s30, %s6240_s30, %s6241_s12  }
  0x99   : > { %s4589_s27 = sadd.s32 4294967294, %s6235_s20   ;;  %s6502_s16 = sadd.s32 1, %s6235_s20  }
  0x9a   : > { %s34_s29 = ssub.s32 %s6235_s20, %s6502_s16  ;;  %s37_s8 = sadd.s32 1, %s6231_s19 }
  0x9b   : > { %p35_p8 = scmp.eq.s32.totalorder %s34_s29, 0  ;;  %p44_p13 = scmp.ne.s32.totalorder %s6231_s19, %s6227_s18 }
  0x9c   : > { %p45_p0 = scmp.eq.s32.totalorder %s6235_s20, 0  ;;  %p50_p1 = scmp.ne.s32.totalorder %s6227_s18, %s6223_s17 }
  0x9d   : > { %s6513_s1 = scalar_select %p35_p8, %s6231_s19, %s37_s8  }
  0x9e   : > { %p6515_p3 = por %p45_p0, %p44_p13  ;;  %p7073_p2 = scmp.eq.s32.totalorder %s6332_s23, 0 }
  0x9f   : > { %p284_p5 = scmp.eq.s32.totalorder %s6332_s23, 1  ;;  %p290_p7 = scmp.eq.s32.totalorder %s4589_s27, 1 }
  0xa0   : > { %p6521_p6 = por %p7073_p2, %p50_p1  ;;  %p5875_p9 = scmp.lt.s32.totalorder %s6235_s20, 2 }
  0xa1   : > { %s398_s12 = sand.u32 1, %s6231_s19   ;;  %p6528_p4 = por %p284_p5, %p44_p13 }
  0xa2   : > { %p6532_p10 = por %p290_p7, %p50_p1  ;;  %s4598_s21 = sshll.u32 %s6235_s20, 4 }
  0xa3   : > { %s7075_s10 = scalar_select %p6528_p4, 1, 0 }
  0xa4   : > { %s7076_s15 = scalar_select %p6532_p10, 1, 0 }
  0xa5   : > { %s401_s25 = scalar_lea.vmem [#allocation6], %s398_s12  ;;  %s6540_s22 = scalar_lea.hbm %s7048_s0, %s4598_s21 }
  0xa6   : > { %s408_s28 = sshll.u32 %s401_s25, 4  ;;  %p6546_p11 = pnand %p5875_p9, %p6515_p3  ;;  %s6542_s28 = int_to_ptr.vmem [resolvable:$true] %s408_s28 }
  0xa7   : > { %s399_s27 = scalar_lea.sflag [#allocation7], %s398_s12  ;;  %s6127_s29 = scalar_lea.hbm %s6540_s22, 16 }
  0xa8   : > { %p6128_p12 = scmp.ne.s32.totalorder %s6540_s22, %s6127_s29  ;;  %p6129_p8 = pneg %p6546_p11 }
  0xa9   : > { %s6132_s25 = scalar_lea.hbm %s7048_s0, 32  ;;  %p6133_p1 = scmp.lt.u32.totalorder %s6540_s22, %s7048_s0 }
  0xaa   : > { %p6130_p13 = pnand %p6129_p8, %p6128_p12  ;;  %p6134_p3 = scmp.lt.u32.totalorder %s6132_s25, %s6127_s29 }
  0xab   : > { %p6136_p5 = scmp.lt.u32.totalorder %s6127_s29, %s6540_s22 }
  0xac   : > { %p6131_p0 = pneg %p6130_p13  ;;  %p6135_p2 = por %p6134_p3, %p6133_p1 }
  0xae   : > { %p6137_p7 = por %p6136_p5, %p6135_p2 }
  0xb0   : > { %p6138_p9 = pnand %p6137_p7, %p6131_p0 }
  0xb2   : > { %6141 = shalt.err (!%p6138_p9)
}
  0xb3   : > { %s6142_s12 = scalar_lea.vmem %s6542_s28, 16  ;;  %s6245_s14 = smov [#allocation6]  }
  0xb4   : > { %p6143_p12 = scmp.ne.s32.totalorder %s6542_s28, %s6142_s12  ;;  %s6147_s8 = sshll.u32 %s6245_s14, 4  ;;  %s6148_s8 = int_to_ptr.vmem [resolvable:$false] %s6147_s8 }
  0xb5   : > { %s6149_s21 = scalar_lea.vmem %s6148_s8, 32  ;;  %p6150_p4 = scmp.lt.s32.totalorder %s6542_s28, %s6148_s8 }
  0xb6   : > { %p6145_p13 = pnand %p6143_p12, %p6129_p8  ;;  %p6151_p1 = scmp.lt.s32.totalorder %s6149_s21, %s6142_s12 }
  0xb8   : > { %p6146_p10 = pneg %p6145_p13  ;;  %p6152_p3 = por %p6151_p1, %p6150_p4 }
  0xba   : > { %p6153_p2 = pnand %p6152_p3, %p6146_p10 }
  0xbc   : > { %6156 = shalt.err (!%p6153_p2)
}
  0xbd   : > { %5864 = dma.hbm_to_vmem [thread:$0]  (!%p6546_p11), %s6540_s22, 16, %s6542_s28, %s399_s27  }
  0xbe   : > { %p7078_p0 = scmp.ne.s32.totalorder %s7068_s24, 0 }
  0xbf   : > { %s6578_s29 = sand.u32 (!%p7078_p0), 1, %s6227_s18  }
  0xc0   : > { %417 = sbr.rel (%p7078_p0) target bundleno = 2610 (0xa32), region = 64  ;;  %s420_s25 = scalar_lea.sflag (!%p7078_p0), [#allocation7], %s6578_s29 }
  0xc1   : > { %s422_s13 = scalar_lea.vmem (!%p7078_p0), [#allocation6], %s6578_s29 }
  0xc7   : > { %6202 = dma.done.wait (%p6521_p6), %s420_s25, 16  }
  0xc8   : > { %6204 = vsyncadd (%p6521_p6), %s420_s25, 4294967280  ;;  %p7079_p4 = scmp.eq.s32.totalorder %s6332_s23, 0 }
  0xca   : > { %6206 = dma.done.wait (%p7079_p4), [#allocation10], 2176   ;;  %p7080_p10 = pmov %p7079_p4 }
  0xcb   : > { %p7081_p11 = pmov %p7079_p4 }
  0xcc   : > { %6208 = vsyncadd (%p7080_p10), [#allocation10], 4294965120 }
  0xcd   : > { %6210 = dma.done.wait (%p7081_p11), [#allocation13], 65536   ;;  %p7082_p8 = pmov %p7079_p4 }
  0xce   : > { %p7083_p5 = pmov %p7079_p4 }
  0xcf   : > { %6212 = vsyncadd (%p7082_p8), [#allocation13], 4294901760 }
  0xd0   : > { %6214 = dma.done.wait (%p7083_p5), [#allocation16], 65536   ;;  %p7084_p7 = pmov %p7079_p4 }
  0xd1   : > { %v6246_v0 = vmov 0.0   ;;  %v486_v1 = vld [vmem:[#allocation9 + $0x8] sm:$0xff]  ;;  %v488_v3 = vld [vmem:[#allocation9 + $0x18] sm:$0xff]  ;;  %v485_v6 = vld [vmem:[#allocation9] sm:$0xff]  ;;  %vm543_vm0 = vcmask 130048   ;;  %vm1533_vm3 = vcmask 1043456  }
  0xd2   : > { %6216 = vsyncadd (%p7084_p7), [#allocation16], 4294901760  ;;  %611 = vmatprep.mubr.f32.mxu0 %v6246_v0  ;;  %682 = vmatprep.mubr.f32.mxu1 %v6246_v0  ;;  %v494_v2 = vld [vmem:[#allocation9 + $0x48] sm:$0xff]  ;;  %v496_v5 = vld [vmem:[#allocation9 + $0x58] sm:$0xff]  ;;  %vm1526_vm4 = vcmask 31744   ;;  %vm1985_vm8 = vcmask 1046528  }
  0xd3   : > { %v4678_v4 = vpack.c.bf16 %v494_v2, %v486_v1  ;;  %v493_v7 = vld [vmem:[#allocation9 + $0x40] sm:$0xff]  ;;  %v4682_v8 = vpack.c.bf16 %v496_v5, %v488_v3  ;;  %v487_v10 = vld [vmem:[#allocation9 + $0x10] sm:$0xff]  ;;  %v484_v12 = vld [vmem:[%s422_s13] sm:$0x1]  ;;  %vm2224_vm9 = vcmask 1045504   ;;  %vm2313_vm10 = vcmask 64512  }
  0xd4   : > { %v4680_v9 = vpack.c.bf16 %v493_v7, %v485_v6  ;;  %v495_v11 = vld [vmem:[#allocation9 + $0x50] sm:$0xff]  ;;  %v490_v14 = vld [vmem:[#allocation9 + $0x28] sm:$0xff]  ;;  %v492_v16 = vld [vmem:[#allocation9 + $0x38] sm:$0xff]  ;;  %s7087_s26 = sld [smem:[#allocation25_spill]]  ;;  %s7088_s8 = sld [smem:[#allocation26_spill]] }
  0xd5   : > { %4679 = vmatprep.subr.bf16.mxu0 %v4678_v4  ;;  %v4684_v13 = vpack.c.bf16 %v495_v11, %v487_v10  ;;  %v498_v15 = vld [vmem:[#allocation9 + $0x68] sm:$0xff]  ;;  %4683 = vmatprep.subr.bf16.mxu1 %v4682_v8  ;;  %v500_v18 = vld [vmem:[#allocation9 + $0x78] sm:$0xff]  ;;  %v489_v19 = vld [vmem:[#allocation9 + $0x20] sm:$0xff]  ;;  %s4606_s21 = sshll.u32 %s6578_s29, 7  ;;  %s4677_s13 = sshll.u32 %s6332_s23, 11 }
  0xd6   : > { %4681 = vmatpush1.bf16.msra.mxu0 %v4680_v9  ;;  %v4686_v17 = vpack.c.bf16 %v498_v15, %v490_v14  ;;  %v497_v20 = vld [vmem:[#allocation9 + $0x60] sm:$0xff]  ;;  %v4690_v21 = vpack.c.bf16 %v500_v18, %v492_v16  ;;  %v491_v23 = vld [vmem:[#allocation9 + $0x30] sm:$0xff]  ;;  %v1067_v32 = vld [vmem:[#allocation12 + $0x20] sm:$0xff]  ;;  %s6979_s25 = scalar_lea.vmem [#allocation18], %s4606_s21  ;;  %s7089_s22 = sld [smem:[#allocation27_spill]] }
  0xd7   : > { %4685 = vmatpush1.bf16.msra.mxu1 %v4684_v13  ;;  %v4688_v22 = vpack.c.bf16 %v497_v20, %v489_v19  ;;  %v499_v24 = vld [vmem:[#allocation9 + $0x70] sm:$0xff]  ;;  %v1070_v28 = vld [vmem:[#allocation12 + $0x38] sm:$0xff]  ;;  %v1071_v33 = vld [vmem:[#allocation12 + $0x60] sm:$0xff]  ;;  %s4462_s24 = sshll.u32 %s6979_s25, 4  ;;  %s4449_s27 = scalar_lea.sflag [#allocation8], %s6578_s29  ;;  %s7002_s24 = int_to_ptr.vmem [resolvable:$true] %s4462_s24 }
  0xd8   : > { %v1068_v25 = vld [vmem:[#allocation12 + $0x28] sm:$0xff]  ;;  %4687 = vmatprep.subr.bf16.mxu0 %v4686_v17  ;;  %v4692_v26 = vpack.c.bf16 %v499_v24, %v491_v23  ;;  %v1074_v29 = vld [vmem:[#allocation12 + $0x78] sm:$0xff]  ;;  %4691 = vmatprep.subr.bf16.mxu1 %v4690_v21  ;;  %v1069_v34 = vld [vmem:[#allocation12 + $0x30] sm:$0xff]  ;;  %v4696_v35 = vpack.c.bf16 %v1071_v33, %v1067_v32  ;;  %s6157_s23 = scalar_lea.vmem %s7002_s24, 2048  ;;  %p7090_p9 = scmp.ne.s32.totalorder %s7075_s10, 0 }
  0xd9   : > { %v1072_v27 = vld [vmem:[#allocation12 + $0x68] sm:$0xff]  ;;  %4607 = vmatmul.mubr.msk.f32.vlgmr.msra.gmra.mrb[0].mxu0 %vm543_vm0, %v484_v12  ;;  %v4758_v31 = vpack.c.bf16 %v1074_v29, %v1070_v28  ;;  %v1073_v36 = vld [vmem:[#allocation12 + $0x70] sm:$0xff]  ;;  %v1078_v41 = vld [vmem:[#allocation12 + $0xb8] sm:$0xff]  ;;  %p6158_p6 = scmp.ne.s32.totalorder %s7002_s24, %s6157_s23 }
  0xda   : > { %v4694_v30 = vpack.c.bf16 %v1072_v27, %v1068_v25  ;;  %4608 = vmatmul.mubr.msk.f32.vlgmr.msra.gmra.mrb[0].mxu1 %vm543_vm0, %v484_v12  ;;  %4689 = vmatpush1.bf16.msra.mxu0 %v4688_v22  ;;  %v1076_v37 = vld [vmem:[#allocation12 + $0xa8] sm:$0xff]  ;;  %v4760_v39 = vpack.c.bf16 %v1073_v36, %v1069_v34  ;;  %v1082_v42 = vld [vmem:[#allocation12 + $0xf8] sm:$0xff]  ;;  %v1075_v43 = vld [vmem:[#allocation12 + $0xa0] sm:$0xff] }
  0xdb   : > { %v1080_v38 = vld [vmem:[#allocation12 + $0xe8] sm:$0xff]  ;;  %4693 = vmatpush1.bf16.msra.mxu1 %v4692_v26  ;;  %753 = vmatprep.mubr.f32.mxu0 %v6246_v0  ;;  %v4762_v44 = vpack.c.bf16 %v1082_v42, %v1078_v41  ;;  %v1079_v45 = vld [vmem:[#allocation12 + $0xe0] sm:$0xff]  ;;  %v1077_v46 = vld [vmem:[#allocation12 + $0xb0] sm:$0xff]  ;;  %p6159_p12 = pnand %p6158_p6, %p7090_p9 }
  0xdc   : > { %v4698_v40 = vpack.c.bf16 %v1080_v38, %v1076_v37  ;;  %824 = vmatprep.mubr.f32.mxu1 %v6246_v0  ;;  %4695 = vmatprep.subr.bf16.mxu0 %v4694_v30  ;;  %v1081_v47 = vld [vmem:[#allocation12 + $0xf0] sm:$0xff]  ;;  %v1084_v48 = vld [vmem:[#allocation12 + $0x128] sm:$0xff]  ;;  %v1086_v50 = vld [vmem:[#allocation12 + $0x138] sm:$0xff]  ;;  %v4700_v51 = vpack.c.bf16 %v1079_v45, %v1075_v43  ;;  %s7000_s11 = scalar_lea.hbm %s7089_s22, %s4677_s13 }
  0xdd   : > { %4609 = vmatmul.mubr.msk.f32.vlgmr.msra.gmra.mrb[2].mxu0 %vm543_vm0, %v484_v12  ;;  %4759 = vmatprep.subr.bf16.mxu1 %v4758_v31  ;;  %v1088_v49 = vld [vmem:[#allocation12 + $0x168] sm:$0xff]  ;;  %v1090_v52 = vld [vmem:[#allocation12 + $0x178] sm:$0xff]  ;;  %v4764_v53 = vpack.c.bf16 %v1081_v47, %v1077_v46  ;;  %v1083_v55 = vld [vmem:[#allocation12 + $0x120] sm:$0xff]  ;;  %p6160_p13 = pneg %p6159_p12 }
  0xde   : > { %4610 = vmatmul.mubr.msk.f32.vlgmr.msra.gmra.mrb[2].mxu1 %vm543_vm0, %v484_v12  ;;  %4697 = vmatpush1.bf16.msra.mxu0 %v4696_v35  ;;  %v4702_v54 = vpack.c.bf16 %v1088_v49, %v1084_v48  ;;  %v1087_v56 = vld [vmem:[#allocation12 + $0x160] sm:$0xff]  ;;  %v1085_v57 = vld [vmem:[#allocation12 + $0x130] sm:$0xff]  ;;  %v4766_v58 = vpack.c.bf16 %v1090_v52, %v1086_v50  ;;  %v1092_v60 = vld [vmem:[#allocation12 + $0x1a8] sm:$0xff] }
  0xdf   : > { %4761 = vmatpush1.bf16.msra.mxu1 %v4760_v39  ;;  %4699 = vmatprep.subr.bf16.mxu0 %v4698_v40  ;;  %v1089_v59 = vld [vmem:[#allocation12 + $0x170] sm:$0xff]  ;;  %v1096_v61 = vld [vmem:[#allocation12 + $0x1e8] sm:$0xff]  ;;  %v1094_v62 = vld [vmem:[#allocation12 + $0x1b8] sm:$0xff]  ;;  %v4704_v1 = vpack.c.bf16 %v1087_v56, %v1083_v55 }
  0xe0   : > { %4763 = vmatprep.subr.bf16.mxu1 %v4762_v44  ;;  %v1098_v63 = vld [vmem:[#allocation12 + $0x1f8] sm:$0xff]  ;;  %v4768_v2 = vpack.c.bf16 %v1089_v59, %v1085_v57  ;;  %v4706_v3 = vpack.c.bf16 %v1096_v61, %v1092_v60  ;;  %v1091_v4 = vld [vmem:[#allocation12 + $0x1a0] sm:$0xff]  ;;  %v1093_v6 = vld [vmem:[#allocation12 + $0x1b0] sm:$0xff] }
  0xe1   : > { %v1095_v5 = vld [vmem:[#allocation12 + $0x1e0] sm:$0xff]  ;;  %v4770_v7 = vpack.c.bf16 %v1098_v63, %v1094_v62  ;;  %v1097_v8 = vld [vmem:[#allocation12 + $0x1f0] sm:$0xff]  ;;  %v1100_v9 = vld [vmem:[#allocation12 + $0x228] sm:$0xff] }
  0xe2   : > { %4701 = vmatpush1.bf16.msra.mxu0 %v4700_v51  ;;  %v1104_v10 = vld [vmem:[#allocation12 + $0x268] sm:$0xff]  ;;  %v1102_v11 = vld [vmem:[#allocation12 + $0x238] sm:$0xff]  ;;  %v4708_v13 = vpack.c.bf16 %v1095_v5, %v1091_v4  ;;  %v4772_v14 = vpack.c.bf16 %v1097_v8, %v1093_v6  ;;  %v1099_v16 = vld [vmem:[#allocation12 + $0x220] sm:$0xff] }
  0xe3   : > { %4765 = vmatpush1.bf16.msra.mxu1 %v4764_v53  ;;  %4703 = vmatprep.subr.bf16.mxu0 %v4702_v54  ;;  %v1106_v12 = vld [vmem:[#allocation12 + $0x278] sm:$0xff]  ;;  %v4710_v15 = vpack.c.bf16 %v1104_v10, %v1100_v9  ;;  %v1103_v17 = vld [vmem:[#allocation12 + $0x260] sm:$0xff]  ;;  %v1101_v18 = vld [vmem:[#allocation12 + $0x230] sm:$0xff] }
  0xe4   : > { %4767 = vmatprep.subr.bf16.mxu1 %v4766_v58  ;;  %v4774_v19 = vpack.c.bf16 %v1106_v12, %v1102_v11  ;;  %v1105_v20 = vld [vmem:[#allocation12 + $0x270] sm:$0xff]  ;;  %v1108_v21 = vld [vmem:[#allocation12 + $0x2a8] sm:$0xff]  ;;  %v1110_v23 = vld [vmem:[#allocation12 + $0x2b8] sm:$0xff]  ;;  %v4712_v25 = vpack.c.bf16 %v1103_v17, %v1099_v16 }
  0xe5   : > { %v1112_v22 = vld [vmem:[#allocation12 + $0x2e8] sm:$0xff]  ;;  %v1114_v24 = vld [vmem:[#allocation12 + $0x2f8] sm:$0xff]  ;;  %v4776_v26 = vpack.c.bf16 %v1105_v20, %v1101_v18  ;;  %v1107_v28 = vld [vmem:[#allocation12 + $0x2a0] sm:$0xff] }
  0xe6   : > { %4705 = vmatpush1.bf16.msra.mxu0 %v4704_v1  ;;  %v4714_v27 = vpack.c.bf16 %v1112_v22, %v1108_v21  ;;  %v1111_v29 = vld [vmem:[#allocation12 + $0x2e0] sm:$0xff]  ;;  %v1109_v30 = vld [vmem:[#allocation12 + $0x2b0] sm:$0xff]  ;;  %v4778_v31 = vpack.c.bf16 %v1114_v24, %v1110_v23  ;;  %v1116_v33 = vld [vmem:[#allocation12 + $0x328] sm:$0xff] }
  0xe7   : > { %4769 = vmatpush1.bf16.msra.mxu1 %v4768_v2  ;;  %4707 = vmatprep.subr.bf16.mxu0 %v4706_v3  ;;  %v1113_v32 = vld [vmem:[#allocation12 + $0x2f0] sm:$0xff]  ;;  %v1120_v34 = vld [vmem:[#allocation12 + $0x368] sm:$0xff]  ;;  %v1118_v35 = vld [vmem:[#allocation12 + $0x338] sm:$0xff]  ;;  %v4716_v37 = vpack.c.bf16 %v1111_v29, %v1107_v28 }
  0xe8   : > { %4771 = vmatprep.subr.bf16.mxu1 %v4770_v7  ;;  %v1122_v36 = vld [vmem:[#allocation12 + $0x378] sm:$0xff]  ;;  %v4780_v38 = vpack.c.bf16 %v1113_v32, %v1109_v30  ;;  %v4718_v39 = vpack.c.bf16 %v1120_v34, %v1116_v33  ;;  %v1115_v40 = vld [vmem:[#allocation12 + $0x320] sm:$0xff]  ;;  %v1117_v42 = vld [vmem:[#allocation12 + $0x330] sm:$0xff] }
  0xe9   : > { %v1119_v41 = vld [vmem:[#allocation12 + $0x360] sm:$0xff]  ;;  %v4782_v43 = vpack.c.bf16 %v1122_v36, %v1118_v35  ;;  %v1121_v44 = vld [vmem:[#allocation12 + $0x370] sm:$0xff]  ;;  %v1124_v45 = vld [vmem:[#allocation12 + $0x3a8] sm:$0xff] }
  0xea   : > { %4709 = vmatpush1.bf16.msra.mxu0 %v4708_v13  ;;  %v1128_v46 = vld [vmem:[#allocation12 + $0x3e8] sm:$0xff]  ;;  %v1126_v47 = vld [vmem:[#allocation12 + $0x3b8] sm:$0xff]  ;;  %v4720_v49 = vpack.c.bf16 %v1119_v41, %v1115_v40  ;;  %v4784_v50 = vpack.c.bf16 %v1121_v44, %v1117_v42  ;;  %v1123_v52 = vld [vmem:[#allocation12 + $0x3a0] sm:$0xff] }
  0xeb   : > { %4773 = vmatpush1.bf16.msra.mxu1 %v4772_v14  ;;  %4711 = vmatprep.subr.bf16.mxu0 %v4710_v15  ;;  %v1130_v48 = vld [vmem:[#allocation12 + $0x3f8] sm:$0xff]  ;;  %v4722_v51 = vpack.c.bf16 %v1128_v46, %v1124_v45  ;;  %v1127_v53 = vld [vmem:[#allocation12 + $0x3e0] sm:$0xff]  ;;  %v1125_v54 = vld [vmem:[#allocation12 + $0x3b0] sm:$0xff] }
  0xec   : > { %4775 = vmatprep.subr.bf16.mxu1 %v4774_v19  ;;  %v4786_v55 = vpack.c.bf16 %v1130_v48, %v1126_v47  ;;  %v1129_v56 = vld [vmem:[#allocation12 + $0x3f0] sm:$0xff]  ;;  %v1132_v57 = vld [vmem:[#allocation12 + $0x428] sm:$0xff]  ;;  %v1134_v59 = vld [vmem:[#allocation12 + $0x438] sm:$0xff]  ;;  %v4724_v61 = vpack.c.bf16 %v1127_v53, %v1123_v52 }
  0xed   : > { %v1136_v58 = vld [vmem:[#allocation12 + $0x468] sm:$0xff]  ;;  %v1138_v60 = vld [vmem:[#allocation12 + $0x478] sm:$0xff]  ;;  %v4788_v62 = vpack.c.bf16 %v1129_v56, %v1125_v54  ;;  %v1131_v1 = vld [vmem:[#allocation12 + $0x420] sm:$0xff] }
  0xee   : > { %4713 = vmatpush1.bf16.msra.mxu0 %v4712_v25  ;;  %v4726_v63 = vpack.c.bf16 %v1136_v58, %v1132_v57  ;;  %v1135_v2 = vld [vmem:[#allocation12 + $0x460] sm:$0xff]  ;;  %v1133_v3 = vld [vmem:[#allocation12 + $0x430] sm:$0xff]  ;;  %v4790_v4 = vpack.c.bf16 %v1138_v60, %v1134_v59  ;;  %v1140_v6 = vld [vmem:[#allocation12 + $0x4a8] sm:$0xff] }
  0xef   : > { %4777 = vmatpush1.bf16.msra.mxu1 %v4776_v26  ;;  %4715 = vmatprep.subr.bf16.mxu0 %v4714_v27  ;;  %v1137_v5 = vld [vmem:[#allocation12 + $0x470] sm:$0xff]  ;;  %v1144_v7 = vld [vmem:[#allocation12 + $0x4e8] sm:$0xff]  ;;  %v1142_v8 = vld [vmem:[#allocation12 + $0x4b8] sm:$0xff]  ;;  %v4728_v10 = vpack.c.bf16 %v1135_v2, %v1131_v1  ;;  %v503_v27 = vlaneseq }
  0xf0   : > { %4779 = vmatprep.subr.bf16.mxu1 %v4778_v31  ;;  %v1146_v9 = vld [vmem:[#allocation12 + $0x4f8] sm:$0xff]  ;;  %v4792_v11 = vpack.c.bf16 %v1137_v5, %v1133_v3  ;;  %v4730_v12 = vpack.c.bf16 %v1144_v7, %v1140_v6  ;;  %v1139_v13 = vld [vmem:[#allocation12 + $0x4a0] sm:$0xff]  ;;  %v1141_v16 = vld [vmem:[#allocation12 + $0x4b0] sm:$0xff] }
  0xf1   : > { %v1143_v14 = vld [vmem:[#allocation12 + $0x4e0] sm:$0xff]  ;;  %v4794_v15 = vpack.c.bf16 %v1146_v9, %v1142_v8  ;;  %v1145_v17 = vld [vmem:[#allocation12 + $0x4f0] sm:$0xff]  ;;  %v1148_v20 = vld [vmem:[#allocation12 + $0x528] sm:$0xff]  ;;  %vm6607_vm1 = vcmp.lt.s32.totalorder %v503_v27, 256 }
  0xf2   : > { %4717 = vmatpush1.bf16.msra.mxu0 %v4716_v37  ;;  %v4732_v18 = vpack.c.bf16 %v1143_v14, %v1139_v13  ;;  %v4796_v19 = vpack.c.bf16 %v1145_v17, %v1141_v16  ;;  %v1152_v21 = vld [vmem:[#allocation12 + $0x568] sm:$0xff]  ;;  %v1150_v22 = vld [vmem:[#allocation12 + $0x538] sm:$0xff]  ;;  %v1147_v25 = vld [vmem:[#allocation12 + $0x520] sm:$0xff]  ;;  %843 = vst.msk [vmem:[#allocation2] ss:$8 sm:$0x3] %vm6607_vm1, %v6246_v0 }
  0xf3   : > { %4781 = vmatpush1.bf16.msra.mxu1 %v4780_v38  ;;  %4719 = vmatprep.subr.bf16.mxu0 %v4718_v39  ;;  %v4734_v23 = vpack.c.bf16 %v1152_v21, %v1148_v20  ;;  %v1154_v24 = vld [vmem:[#allocation12 + $0x578] sm:$0xff]  ;;  %v1151_v26 = vld [vmem:[#allocation12 + $0x560] sm:$0xff]  ;;  %v1149_v30 = vld [vmem:[#allocation12 + $0x530] sm:$0xff]  ;;  %846 = vst.msk [vmem:[#allocation2 + $0x5] ss:$8 sm:$0x3] %vm6607_vm1, %v6246_v0 }
  0xf4   : > { %4783 = vmatprep.subr.bf16.mxu1 %v4782_v43  ;;  %v4798_v28 = vpack.c.bf16 %v1154_v24, %v1150_v22  ;;  %v4736_v29 = vpack.c.bf16 %v1151_v26, %v1147_v25  ;;  %v1153_v31 = vld [vmem:[#allocation12 + $0x570] sm:$0xff]  ;;  %v1156_v34 = vld [vmem:[#allocation12 + $0x5a8] sm:$0xff]  ;;  %v1158_v36 = vld [vmem:[#allocation12 + $0x5b8] sm:$0xff] }
  0xf5   : > { %v4800_v32 = vpack.c.bf16 %v1153_v31, %v1149_v30  ;;  %v1160_v35 = vld [vmem:[#allocation12 + $0x5e8] sm:$0xff]  ;;  %v1162_v38 = vld [vmem:[#allocation12 + $0x5f8] sm:$0xff]  ;;  %v1155_v39 = vld [vmem:[#allocation12 + $0x5a0] sm:$0xff] }
  0xf6   : > { %4721 = vmatpush1.bf16.msra.mxu0 %v4720_v49  ;;  %v4738_v37 = vpack.c.bf16 %v1160_v35, %v1156_v34  ;;  %v1159_v40 = vld [vmem:[#allocation12 + $0x5e0] sm:$0xff]  ;;  %v4802_v41 = vpack.c.bf16 %v1162_v38, %v1158_v36  ;;  %v1157_v43 = vld [vmem:[#allocation12 + $0x5b0] sm:$0xff]  ;;  %v1164_v46 = vld [vmem:[#allocation12 + $0x628] sm:$0xff] }
  0xf7   : > { %4785 = vmatpush1.bf16.msra.mxu1 %v4784_v50  ;;  %4723 = vmatprep.subr.bf16.mxu0 %v4722_v51  ;;  %v4740_v42 = vpack.c.bf16 %v1159_v40, %v1155_v39  ;;  %v1161_v44 = vld [vmem:[#allocation12 + $0x5f0] sm:$0xff]  ;;  %v1168_v47 = vld [vmem:[#allocation12 + $0x668] sm:$0xff]  ;;  %v1166_v48 = vld [vmem:[#allocation12 + $0x638] sm:$0xff]  ;;  %v6618_v39 = vshrl.u32 %v503_v27, 7 }
  0xf8   : > { %4787 = vmatprep.subr.bf16.mxu1 %v4786_v55  ;;  %v4804_v45 = vpack.c.bf16 %v1161_v44, %v1157_v43  ;;  %v4742_v49 = vpack.c.bf16 %v1168_v47, %v1164_v46  ;;  %v1170_v50 = vld [vmem:[#allocation12 + $0x678] sm:$0xff]  ;;  %v1163_v51 = vld [vmem:[#allocation12 + $0x620] sm:$0xff]  ;;  %v1165_v55 = vld [vmem:[#allocation12 + $0x630] sm:$0xff] }
  0xf9   : > { %v1167_v52 = vld [vmem:[#allocation12 + $0x660] sm:$0xff]  ;;  %v4806_v53 = vpack.c.bf16 %v1170_v50, %v1166_v48  ;;  %v1169_v56 = vld [vmem:[#allocation12 + $0x670] sm:$0xff]  ;;  %v1172_v58 = vld [vmem:[#allocation12 + $0x6a8] sm:$0xff]  ;;  %v6621_v40 = vsub.s32 0, %v6618_v39  ;;  %v6625_v43 = vsub.s32 1, %v6618_v39  ;;  %v517_v44 = vsub.s32 3, %v6618_v39 }
  0xfa   : > { %4725 = vmatpush1.bf16.msra.mxu0 %v4724_v61  ;;  %v4744_v54 = vpack.c.bf16 %v1167_v52, %v1163_v51  ;;  %v4808_v57 = vpack.c.bf16 %v1169_v56, %v1165_v55  ;;  %v1176_v59 = vld [vmem:[#allocation12 + $0x6e8] sm:$0xff]  ;;  %v1174_v60 = vld [vmem:[#allocation12 + $0x6b8] sm:$0xff]  ;;  %v1175_v1 = vld [vmem:[#allocation12 + $0x6e0] sm:$0xff]  ;;  %v521_v48 = vsub.s32 4, %v6618_v39  ;;  %v529_v51 = vsub.s32 6, %v6618_v39 }
  0xfb   : > { %4789 = vmatpush1.bf16.msra.mxu1 %v4788_v62  ;;  %4727 = vmatprep.subr.bf16.mxu0 %v4726_v63  ;;  %v4746_v61 = vpack.c.bf16 %v1176_v59, %v1172_v58  ;;  %v1178_v62 = vld [vmem:[#allocation12 + $0x6f8] sm:$0xff]  ;;  %v1171_v63 = vld [vmem:[#allocation12 + $0x6a0] sm:$0xff]  ;;  %v1177_v5 = vld [vmem:[#allocation12 + $0x6f0] sm:$0xff]  ;;  %v525_v52 = vsub.s32 5, %v6618_v39 }
  0xfc   : > { %4791 = vmatprep.subr.bf16.mxu1 %v4790_v4  ;;  %v4810_v2 = vpack.c.bf16 %v1178_v62, %v1174_v60  ;;  %v4748_v3 = vpack.c.bf16 %v1175_v1, %v1171_v63  ;;  %v1173_v4 = vld [vmem:[#allocation12 + $0x6b0] sm:$0xff]  ;;  %v1180_v7 = vld [vmem:[#allocation12 + $0x728] sm:$0xff]  ;;  %v1182_v9 = vld [vmem:[#allocation12 + $0x738] sm:$0xff] }
  0xfd   : > { %v4812_v6 = vpack.c.bf16 %v1177_v5, %v1173_v4  ;;  %v1184_v8 = vld [vmem:[#allocation12 + $0x768] sm:$0xff]  ;;  %v1183_v13 = vld [vmem:[#allocation12 + $0x760] sm:$0xff]  ;;  %v1181_v16 = vld [vmem:[#allocation12 + $0x730] sm:$0xff] }
  0xfe   : > { %4729 = vmatpush1.bf16.msra.mxu0 %v4728_v10  ;;  %v4750_v10 = vpack.c.bf16 %v1184_v8, %v1180_v7  ;;  %v1185_v17 = vld [vmem:[#allocation12 + $0x770] sm:$0xff]  ;;  %v1192_v20 = vld [vmem:[#allocation12 + $0x7e8] sm:$0xff]  ;;  %v1190_v21 = vld [vmem:[#allocation12 + $0x7b8] sm:$0xff] }
  0xff   : > { %4793 = vmatpush1.bf16.msra.mxu1 %v4792_v11  ;;  %4731 = vmatprep.subr.bf16.mxu0 %v4730_v12  ;;  %v1186_v11 = vld [vmem:[#allocation12 + $0x778] sm:$0xff]  ;;  %v1179_v12 = vld [vmem:[#allocation12 + $0x720] sm:$0xff]  ;;  %v1193_v30 = vld [vmem:[#allocation12 + $0x7f0] sm:$0xff] }
 0x100   : > { %4795 = vmatprep.subr.bf16.mxu1 %v4794_v15  ;;  %v4814_v14 = vpack.c.bf16 %v1186_v11, %v1182_v9  ;;  %v4752_v15 = vpack.c.bf16 %v1183_v13, %v1179_v12  ;;  %v1194_v22 = vld [vmem:[#allocation12 + $0x7f8] sm:$0xff]  ;;  %v1187_v25 = vld [vmem:[#allocation12 + $0x7a0] sm:$0xff]  ;;  %v942_v34 = vld [vmem:[#allocation12 + $0x48] sm:$0xff] }
 0x101   : > { %v4818_v24 = vpack.c.bf16 %v1194_v22, %v1190_v21  ;;  %v1191_v26 = vld [vmem:[#allocation12 + $0x7e0] sm:$0xff]  ;;  %v1004_v35 = vld [vmem:[#allocation12 + $0x18] sm:$0xff]  ;;  %v1009_v33 = vld [vmem:[#allocation12 + $0xd0] sm:$0xff] }
 0x102   : > { %4733 = vmatpush1.bf16.msra.mxu0 %v4732_v18  ;;  %v1188_v18 = vld [vmem:[#allocation12 + $0x7a8] sm:$0xff] }
 0x103   : > { %4797 = vmatpush1.bf16.msra.mxu1 %v4796_v19  ;;  %4735 = vmatprep.subr.bf16.mxu0 %v4734_v23  ;;  %v4816_v19 = vpack.c.bf16 %v1185_v17, %v1181_v16  ;;  %v4754_v23 = vpack.c.bf16 %v1192_v20, %v1188_v18 }
 0x104   : > { %4799 = vmatprep.subr.bf16.mxu1 %v4798_v28  ;;  %v1189_v28 = vld [vmem:[#allocation12 + $0x7b0] sm:$0xff] }
 0x105   : > { %v4820_v31 = vpack.c.bf16 %v1193_v30, %v1189_v28 }
 0x106   : > { %4737 = vmatpush1.bf16.msra.mxu0 %v4736_v29  ;;  %v4756_v29 = vpack.c.bf16 %v1191_v26, %v1187_v25 }
 0x107   : > { %4801 = vmatpush1.bf16.msra.mxu1 %v4800_v32  ;;  %4739 = vmatprep.subr.bf16.mxu0 %v4738_v37  ;;  %v940_v32 = vld [vmem:[#allocation12 + $0x8] sm:$0xff]  ;;  %v1006_v37 = vld [vmem:[#allocation12 + $0x58] sm:$0xff] }
 0x108   : > { %4803 = vmatprep.subr.bf16.mxu1 %v4802_v41  ;;  %v4822_v36 = vpack.c.bf16 %v942_v34, %v940_v32  ;;  %v4886_v38 = vpack.c.bf16 %v1006_v37, %v1004_v35  ;;  %v501_v41 = vld [vmem:[#allocation11] sm:$0xff]  ;;  %v941_v37 = vld [vmem:[#allocation12 + $0x40] sm:$0xff] }
 0x109   : > { %v506_v47 = vrot.slane %v501_v41, %v6621_v40  ;;  %v510_v50 = vrot.slane %v501_v41, %v6625_v43  ;;  %v522_v60 = vrot.slane %v501_v41, %v521_v48  ;;  %v530_v1 = vrot.slane %v501_v41, %v529_v51  ;;  %v1010_v48 = vld [vmem:[#allocation12 + $0xd8] sm:$0xff] }
 0x10a   : > { %4741 = vmatpush1.bf16.msra.mxu0 %v4740_v42  ;;  %v513_v42 = vsub.s32 2, %v6618_v39 }
 0x10b   : > { %4805 = vmatpush1.bf16.msra.mxu1 %v4804_v45  ;;  %4743 = vmatprep.subr.bf16.mxu0 %v4742_v49  ;;  %v6247_v45 = vmov 1966171168  }
 0x10c   : > { %4807 = vmatprep.subr.bf16.mxu1 %v4806_v53  ;;  %v852_v46 = vunpack.c.l.s4 %v6247_v45  ;;  %v514_v49 = vrot.slane %v501_v41, %v513_v42  ;;  %v518_v53 = vrot.slane %v501_v41, %v517_v44  ;;  %v944_v42 = vld [vmem:[#allocation12 + $0x88] sm:$0xff]  ;;  %v1008_v45 = vld [vmem:[#allocation12 + $0x98] sm:$0xff] }
 0x10d   : > { %v946_v44 = vld [vmem:[#allocation12 + $0xc8] sm:$0xff] }
 0x10e   : > { %4745 = vmatpush1.bf16.msra.mxu0 %v4744_v54  ;;  %v533_v54 = vsub.s32 7, %v6618_v39  ;;  %v853_v56 = vunpack.c.0.s8 %v852_v46 }
 0x10f   : > { %4809 = vmatpush1.bf16.msra.mxu1 %v4808_v57  ;;  %4747 = vmatprep.subr.bf16.mxu0 %v4746_v61 }
 0x110   : > { %4811 = vmatprep.subr.bf16.mxu1 %v4810_v2  ;;  %v526_v2 = vrot.slane %v501_v41, %v525_v52  ;;  %v534_v5 = vrot.slane %v501_v41, %v533_v54  ;;  %v856_v8 = vsub.s32 %v853_v56, %v6618_v39  ;;  %v1005_v41 = vld [vmem:[#allocation12 + $0x50] sm:$0xff]  ;;  %v943_v54 = vld [vmem:[#allocation12 + $0x80] sm:$0xff] }
 0x111   : > { %v1007_v56 = vld [vmem:[#allocation12 + $0x90] sm:$0xff] }
 0x112   : > { %4749 = vmatpush1.bf16.msra.mxu0 %v4748_v3 }
 0x113   : > { %4813 = vmatpush1.bf16.msra.mxu1 %v4812_v6  ;;  %4751 = vmatprep.subr.bf16.mxu0 %v4750_v10 }
 0x114   : > { %4815 = vmatprep.subr.bf16.mxu1 %v4814_v14 }
 0x116   : > { %4753 = vmatpush1.bf16.msra.mxu0 %v4752_v15 }
 0x117   : > { %4817 = vmatpush1.bf16.msra.mxu1 %v4816_v19  ;;  %4755 = vmatprep.subr.bf16.mxu0 %v4754_v23 }
 0x118   : > { %4819 = vmatprep.subr.bf16.mxu1 %v4818_v24 }
 0x11a   : > { %4757 = vmatpush1.bf16.msra.mxu0 %v4756_v29 }
 0x11b   : > { %4821 = vmatpush1.bf16.msra.mxu1 %v4820_v31  ;;  %4823 = vmatprep.subr.bf16.mxu0 %v4822_v36  ;;  %v939_v36 = vld [vmem:[#allocation12] sm:$0xff] }
 0x11c   : > { %4887 = vmatprep.subr.bf16.mxu1 %v4886_v38  ;;  %v1003_v38 = vld [vmem:[#allocation12 + $0x10] sm:$0xff]  ;;  %v4824_v51 = vpack.c.bf16 %v941_v37, %v939_v36  ;;  %v960_v36 = vld [vmem:[#allocation12 + $0x288] sm:$0xff] }
 0x11d   : > { %v4888_v52 = vpack.c.bf16 %v1005_v41, %v1003_v38  ;;  %v962_v37 = vld [vmem:[#allocation12 + $0x2c8] sm:$0xff]  ;;  %v1024_v38 = vld [vmem:[#allocation12 + $0x298] sm:$0xff] }
 0x11e   : > { %v1026_v41 = vld [vmem:[#allocation12 + $0x2d8] sm:$0xff] }
 0x1ac   : > { %v613_v55 = vpop.f32.mrb[0].mxu0 }
 0x1ad   : > { %v614_v57 = vadd.f32 %v613_v55, %v506_v47  ;;  %v684_v58 = vpop.f32.mrb[0].mxu1  ;;  %v615_v59 = vpop.f32.mrb[1].mxu0  ;;  %v945_v55 = vld [vmem:[#allocation12 + $0xc0] sm:$0xff] }
 0x1ae   : > { %v685_v61 = vadd.f32 %v684_v58, %v514_v49  ;;  %v616_v62 = vadd.f32 %v615_v59, %v510_v50  ;;  %v686_v63 = vpop.f32.mrb[1].mxu1  ;;  %v4826_v58 = vpack.c.bf16 %v946_v44, %v944_v42  ;;  %v4890_v59 = vpack.c.bf16 %v1010_v48, %v1008_v45  ;;  %v959_v45 = vld [vmem:[#allocation12 + $0x280] sm:$0xff] }
 0x1af   : > { %v831_v3 = vmax.f32 %v614_v57, 0.0  ;;  %v687_v4 = vadd.f32 %v686_v63, %v518_v53  ;;  %v948_v57 = vld [vmem:[#allocation12 + $0x108] sm:$0xff]  ;;  %v4906_v48 = vpack.c.bf16 %v1026_v41, %v1024_v38  ;;  %v1044_v41 = vld [vmem:[#allocation12 + $0x518] sm:$0xff] }
 0x1b0   : > { %v833_v6 = vmax.f32 %v685_v61, 0.0  ;;  %v832_v7 = vmax.f32 %v616_v62, 0.0  ;;  %v755_v9 = vpop.f32.mrb[2].mxu0  ;;  %v1012_v61 = vld [vmem:[#allocation12 + $0x118] sm:$0xff]  ;;  %v982_v38 = vld [vmem:[#allocation12 + $0x548] sm:$0xff] }
 0x1b1   : > { %v834_v10 = vmax.f32 %v687_v4, 0.0  ;;  %v756_v11 = vadd.f32 %v755_v9, %v522_v60  ;;  %v826_v12 = vpop.f32.mrb[2].mxu1  ;;  %v757_v13 = vpop.f32.mrb[3].mxu0  ;;  %v950_v60 = vld [vmem:[#allocation12 + $0x148] sm:$0xff]  ;;  %v1014_v62 = vld [vmem:[#allocation12 + $0x158] sm:$0xff]  ;;  %v947_v4 = vld [vmem:[#allocation12 + $0x100] sm:$0xff] }
 0x1b2   : > { %v850_v14 = vcombine.low %v831_v3, %v832_v7  ;;  %v827_v15 = vadd.f32 %v826_v12, %v530_v1  ;;  %v758_v16 = vadd.f32 %v757_v13, %v526_v2  ;;  %v828_v17 = vpop.f32.mrb[3].mxu1  ;;  %v4828_v2 = vpack.c.bf16 %v945_v55, %v943_v54  ;;  %v1013_v9 = vld [vmem:[#allocation12 + $0x150] sm:$0xff]  ;;  %v1016_v12 = vld [vmem:[#allocation12 + $0x198] sm:$0xff] }
 0x1b3   : > { %v871_v18 = vcombine.low %v833_v6, %v834_v10  ;;  %v835_v19 = vmax.f32 %v756_v11, 0.0  ;;  %v829_v20 = vadd.f32 %v828_v17, %v534_v5  ;;  %v4892_v3 = vpack.c.bf16 %v1009_v33, %v1007_v56  ;;  %v949_v5 = vld [vmem:[#allocation12 + $0x140] sm:$0xff]  ;;  %v952_v10 = vld [vmem:[#allocation12 + $0x188] sm:$0xff]  ;;  %v1018_v13 = vld [vmem:[#allocation12 + $0x1d8] sm:$0xff] }
 0x1b4   : > { %v857_v21 = vrot.slane %v850_v14, %v856_v8  ;;  %v837_v22 = vmax.f32 %v827_v15, 0.0  ;;  %v836_v23 = vmax.f32 %v758_v16, 0.0  ;;  %v4830_v6 = vpack.c.bf16 %v950_v60, %v948_v57  ;;  %v954_v11 = vld [vmem:[#allocation12 + $0x1c8] sm:$0xff]  ;;  %v951_v16 = vld [vmem:[#allocation12 + $0x180] sm:$0xff]  ;;  %v1030_v54 = vld [vmem:[#allocation12 + $0x358] sm:$0xff] }
 0x1b5   : > { %v878_v24 = vrot.slane %v871_v18, %v856_v8  ;;  %v838_v25 = vmax.f32 %v829_v20, 0.0  ;;  %v4894_v7 = vpack.c.bf16 %v1014_v62, %v1012_v61  ;;  %v4832_v14 = vpack.c.bf16 %v949_v5, %v947_v4  ;;  %v953_v17 = vld [vmem:[#allocation12 + $0x1c0] sm:$0xff]  ;;  %v1015_v20 = vld [vmem:[#allocation12 + $0x190] sm:$0xff]  ;;  %v968_v62 = vld [vmem:[#allocation12 + $0x388] sm:$0xff] }
 0x1b6   : > { %v864_v26 = vrot.slane %v857_v21, %v856_v8  ;;  %v892_v28 = vcombine.low %v835_v19, %v836_v23  ;;  %v4834_v18 = vpack.c.bf16 %v954_v11, %v952_v10  ;;  %v4898_v19 = vpack.c.bf16 %v1018_v13, %v1016_v12  ;;  %v1017_v21 = vld [vmem:[#allocation12 + $0x1d0] sm:$0xff]  ;;  %v958_v23 = vld [vmem:[#allocation12 + $0x248] sm:$0xff]  ;;  %v963_v33 = vld [vmem:[#allocation12 + $0x300] sm:$0xff] }
 0x1b7   : > { %v885_v29 = vrot.slane %v878_v24, %v856_v8  ;;  %v913_v30 = vcombine.low %v837_v22, %v838_v25  ;;  %v956_v22 = vld [vmem:[#allocation12 + $0x208] sm:$0xff]  ;;  %v1020_v24 = vld [vmem:[#allocation12 + $0x218] sm:$0xff]  ;;  %v965_v57 = vld [vmem:[#allocation12 + $0x340] sm:$0xff] }
 0x1b8   : > { %867 = vst.msk [vmem:[#allocation2 + $0x1] ss:$8 sm:$0x3] %vm6607_vm1, %v864_v26  ;;  %v899_v31 = vrot.slane %v892_v28, %v856_v8  ;;  %v1022_v25 = vld [vmem:[#allocation12 + $0x258] sm:$0xff]  ;;  %v4836_v26 = vpack.c.bf16 %v953_v17, %v951_v16  ;;  %v4900_v28 = vpack.c.bf16 %v1017_v21, %v1015_v20  ;;  %v1027_v60 = vld [vmem:[#allocation12 + $0x310] sm:$0xff]  ;;  %v967_v5 = vld [vmem:[#allocation12 + $0x380] sm:$0xff] }
 0x1b9   : > { %888 = vst.msk [vmem:[#allocation2 + $0x2] ss:$8 sm:$0x3] %vm6607_vm1, %v885_v29  ;;  %v920_v32 = vrot.slane %v913_v30, %v856_v8  ;;  %v955_v29 = vld [vmem:[#allocation12 + $0x200] sm:$0xff]  ;;  %v1029_v61 = vld [vmem:[#allocation12 + $0x350] sm:$0xff]  ;;  %v972_v11 = vld [vmem:[#allocation12 + $0x408] sm:$0xff] }
 0x1ba   : > { %v906_v34 = vrot.slane %v899_v31, %v856_v8  ;;  %v957_v30 = vld [vmem:[#allocation12 + $0x240] sm:$0xff]  ;;  %v4838_v31 = vpack.c.bf16 %v958_v23, %v956_v22  ;;  %v4912_v4 = vpack.c.bf16 %v1029_v61, %v1027_v60  ;;  %v1033_v10 = vld [vmem:[#allocation12 + $0x3d0] sm:$0xff]  ;;  %v974_v12 = vld [vmem:[#allocation12 + $0x448] sm:$0xff] }
 0x1bb   : > { %v927_v35 = vrot.slane %v920_v32, %v856_v8  ;;  %v1011_v8 = vld [vmem:[#allocation12 + $0x110] sm:$0xff]  ;;  %v4902_v32 = vpack.c.bf16 %v1022_v25, %v1020_v24  ;;  %v4840_v42 = vpack.c.bf16 %v957_v30, %v955_v29  ;;  %v1036_v13 = vld [vmem:[#allocation12 + $0x418] sm:$0xff]  ;;  %v971_v17 = vld [vmem:[#allocation12 + $0x400] sm:$0xff] }
 0x1bc   : > { %909 = vst.msk [vmem:[#allocation2 + $0x3] ss:$8 sm:$0x3] %vm6607_vm1, %v906_v34  ;;  %v4896_v15 = vpack.c.bf16 %v1013_v9, %v1011_v8  ;;  %v1019_v34 = vld [vmem:[#allocation12 + $0x210] sm:$0xff]  ;;  %v976_v23 = vld [vmem:[#allocation12 + $0x488] sm:$0xff]  ;;  %v1040_v25 = vld [vmem:[#allocation12 + $0x498] sm:$0xff] }
 0x1bd   : > { %930 = vst.msk [vmem:[#allocation2 + $0x4] ss:$8 sm:$0x3] %vm6607_vm1, %v927_v35  ;;  %v1021_v35 = vld [vmem:[#allocation12 + $0x250] sm:$0xff]  ;;  %v978_v24 = vld [vmem:[#allocation12 + $0x4c8] sm:$0xff]  ;;  %v975_v30 = vld [vmem:[#allocation12 + $0x480] sm:$0xff] }
 0x1be   : > { %v4904_v44 = vpack.c.bf16 %v1021_v35, %v1019_v34  ;;  %v1031_v9 = vld [vmem:[#allocation12 + $0x390] sm:$0xff] }
 0x1bf   : > { %v4916_v16 = vpack.c.bf16 %v1033_v10, %v1031_v9  ;;  %v1035_v21 = vld [vmem:[#allocation12 + $0x410] sm:$0xff] }
 0x1c0   : > { %v1037_v22 = vld [vmem:[#allocation12 + $0x450] sm:$0xff] }
 0x1c1   : > { %v4920_v29 = vpack.c.bf16 %v1037_v22, %v1035_v21  ;;  %v1039_v35 = vld [vmem:[#allocation12 + $0x490] sm:$0xff] }
 0x1c2   : > { %v1047_v61 = vld [vmem:[#allocation12 + $0x590] sm:$0xff] }
 0x1c3   : > { %v934_v1 = vld [vmem:[#allocation2 + $0x8] sm:$0xf] }
 0x1c4   : > { %v936_v46 = vld [vmem:[#allocation2 + $0x8] sm:$0x1e]  ;;  %v935_v47 = vld [vmem:[#allocation2] sm:$0x1e] }
 0x1c5   : > { %v1198_v49 = vrot.slane %v936_v46, 1  ;;  %v1197_v50 = vrot.slane %v935_v47, 1  ;;  %v938_v53 = vld [vmem:[#allocation2 + $0x8] sm:$0x3c]  ;;  %v961_v46 = vld [vmem:[#allocation12 + $0x2c0] sm:$0xff]  ;;  %v4842_v47 = vpack.c.bf16 %v962_v37, %v960_v36  ;;  %v980_v37 = vld [vmem:[#allocation12 + $0x508] sm:$0xff] }
 0x1c6   : > { %v1430_v63 = vrot.slane %v938_v53, 2  ;;  %v1028_v53 = vld [vmem:[#allocation12 + $0x318] sm:$0xff]  ;;  %v4844_v55 = vpack.c.bf16 %v961_v46, %v959_v45  ;;  %v1041_v36 = vld [vmem:[#allocation12 + $0x4d0] sm:$0xff]  ;;  %v979_v46 = vld [vmem:[#allocation12 + $0x500] sm:$0xff] }
 0x1c7   : > { %1265 = vmatprep.mubr.f32.mxu0 %v1198_v49  ;;  %1336 = vmatprep.mubr.f32.mxu1 %v1198_v49  ;;  %v1023_v49 = vld [vmem:[#allocation12 + $0x290] sm:$0xff]  ;;  %v4924_v45 = vpack.c.bf16 %v1041_v36, %v1039_v35 }
 0x1c8   : > { %1266 = vmatmul.mubr.f32.vlgmr.msra.gmra.mrb[4].mxu0 %v1197_v50  ;;  %1337 = vmatmul.mubr.f32.vlgmr.msra.gmra.mrb[4].mxu1 %v1197_v50  ;;  %v1025_v50 = vld [vmem:[#allocation12 + $0x2d0] sm:$0xff] }
 0x1c9   : > { %4825 = vmatpush1.bf16.msra.mxu0 %v4824_v51  ;;  %4889 = vmatpush1.bf16.msra.mxu1 %v4888_v52  ;;  %v964_v51 = vld [vmem:[#allocation12 + $0x308] sm:$0xff]  ;;  %v4908_v56 = vpack.c.bf16 %v1025_v50, %v1023_v49  ;;  %v1043_v50 = vld [vmem:[#allocation12 + $0x510] sm:$0xff] }
 0x1ca   : > { %1407 = vmatprep.mubr.f32.mxu0 %v934_v1  ;;  %1497 = vmatprep.mubr.f32.mxu1 %v1430_v63  ;;  %v966_v52 = vld [vmem:[#allocation12 + $0x348] sm:$0xff]  ;;  %v1032_v1 = vld [vmem:[#allocation12 + $0x398] sm:$0xff]  ;;  %v1051_v10 = vld [vmem:[#allocation12 + $0x610] sm:$0xff] }
 0x1cb   : > { %4827 = vmatprep.subr.bf16.mxu0 %v4826_v58  ;;  %4891 = vmatprep.subr.bf16.mxu1 %v4890_v59  ;;  %v4846_v58 = vpack.c.bf16 %v966_v52, %v964_v51  ;;  %v4910_v59 = vpack.c.bf16 %v1030_v54, %v1028_v53  ;;  %v970_v63 = vld [vmem:[#allocation12 + $0x3c8] sm:$0xff]  ;;  %v1045_v51 = vld [vmem:[#allocation12 + $0x550] sm:$0xff]  ;;  %v1048_v54 = vld [vmem:[#allocation12 + $0x598] sm:$0xff] }
 0x1cc   : > { %v984_v52 = vld [vmem:[#allocation12 + $0x588] sm:$0xff]  ;;  %v1055_v22 = vld [vmem:[#allocation12 + $0x690] sm:$0xff] }
 0x1cd   : > { %4829 = vmatpush1.bf16.msra.mxu0 %v4828_v2  ;;  %4893 = vmatpush1.bf16.msra.mxu1 %v4892_v3  ;;  %v1034_v2 = vld [vmem:[#allocation12 + $0x3d8] sm:$0xff]  ;;  %v4848_v3 = vpack.c.bf16 %v965_v57, %v963_v33  ;;  %v986_v53 = vld [vmem:[#allocation12 + $0x5c8] sm:$0xff]  ;;  %v4928_v33 = vpack.c.bf16 %v1045_v51, %v1043_v50  ;;  %v983_v57 = vld [vmem:[#allocation12 + $0x580] sm:$0xff] }
 0x1ce   : > { %4831 = vmatprep.subr.bf16.mxu0 %v4830_v6  ;;  %4895 = vmatprep.subr.bf16.mxu1 %v4894_v7  ;;  %v969_v6 = vld [vmem:[#allocation12 + $0x3c0] sm:$0xff]  ;;  %v4850_v7 = vpack.c.bf16 %v970_v63, %v968_v62  ;;  %v4914_v8 = vpack.c.bf16 %v1034_v2, %v1032_v1  ;;  %v1049_v62 = vld [vmem:[#allocation12 + $0x5d0] sm:$0xff]  ;;  %v988_v63 = vld [vmem:[#allocation12 + $0x608] sm:$0xff] }
 0x1cf   : > { %v990_v1 = vld [vmem:[#allocation12 + $0x648] sm:$0xff]  ;;  %v1052_v2 = vld [vmem:[#allocation12 + $0x618] sm:$0xff]  ;;  %v1059_v36 = vld [vmem:[#allocation12 + $0x710] sm:$0xff] }
 0x1d0   : > { %v1001_v50 = vld [vmem:[#allocation12 + $0x7c0] sm:$0xff]  ;;  %v1063_v51 = vld [vmem:[#allocation12 + $0x790] sm:$0xff] }
 0x1d1   : > { %4833 = vmatpush1.bf16.msra.mxu0 %v4832_v14  ;;  %4897 = vmatpush1.bf16.msra.mxu1 %v4896_v15  ;;  %v1038_v14 = vld [vmem:[#allocation12 + $0x458] sm:$0xff]  ;;  %v4852_v15 = vpack.c.bf16 %v969_v6, %v967_v5  ;;  %v4932_v5 = vpack.c.bf16 %v1049_v62, %v1047_v61  ;;  %v987_v6 = vld [vmem:[#allocation12 + $0x600] sm:$0xff] }
 0x1d2   : > { %4835 = vmatprep.subr.bf16.mxu0 %v4834_v18  ;;  %4899 = vmatprep.subr.bf16.mxu1 %v4898_v19  ;;  %v973_v18 = vld [vmem:[#allocation12 + $0x440] sm:$0xff]  ;;  %v4854_v19 = vpack.c.bf16 %v974_v12, %v972_v11  ;;  %v4918_v20 = vpack.c.bf16 %v1038_v14, %v1036_v13  ;;  %v1053_v11 = vld [vmem:[#allocation12 + $0x650] sm:$0xff]  ;;  %v992_v12 = vld [vmem:[#allocation12 + $0x688] sm:$0xff] }
 0x1d3   : > { %v994_v13 = vld [vmem:[#allocation12 + $0x6c8] sm:$0xff]  ;;  %v1056_v14 = vld [vmem:[#allocation12 + $0x698] sm:$0xff]  ;;  %v1857_v61 = vld [vmem:[#allocation14 + $0x60] sm:$0xff] }
 0x1d5   : > { %4837 = vmatpush1.bf16.msra.mxu0 %v4836_v26  ;;  %4901 = vmatpush1.bf16.msra.mxu1 %v4900_v28  ;;  %v1042_v26 = vld [vmem:[#allocation12 + $0x4d8] sm:$0xff]  ;;  %v4856_v28 = vpack.c.bf16 %v973_v18, %v971_v17  ;;  %v4936_v17 = vpack.c.bf16 %v1053_v11, %v1051_v10  ;;  %v991_v18 = vld [vmem:[#allocation12 + $0x680] sm:$0xff] }
 0x1d6   : > { %4839 = vmatprep.subr.bf16.mxu0 %v4838_v31  ;;  %4903 = vmatprep.subr.bf16.mxu1 %v4902_v32  ;;  %v977_v31 = vld [vmem:[#allocation12 + $0x4c0] sm:$0xff]  ;;  %v4858_v32 = vpack.c.bf16 %v978_v24, %v976_v23  ;;  %v4922_v34 = vpack.c.bf16 %v1042_v26, %v1040_v25  ;;  %v1057_v23 = vld [vmem:[#allocation12 + $0x6d0] sm:$0xff]  ;;  %v996_v24 = vld [vmem:[#allocation12 + $0x708] sm:$0xff] }
 0x1d7   : > { %v998_v25 = vld [vmem:[#allocation12 + $0x748] sm:$0xff]  ;;  %v1060_v26 = vld [vmem:[#allocation12 + $0x718] sm:$0xff]  ;;  %v1873_v10 = vld [vmem:[#allocation14 + $0x160] sm:$0xff] }
 0x1d9   : > { %4841 = vmatpush1.bf16.msra.mxu0 %v4840_v42  ;;  %4905 = vmatpush1.bf16.msra.mxu1 %v4904_v44  ;;  %v1046_v42 = vld [vmem:[#allocation12 + $0x558] sm:$0xff]  ;;  %v4860_v44 = vpack.c.bf16 %v977_v31, %v975_v30  ;;  %v4940_v30 = vpack.c.bf16 %v1057_v23, %v1055_v22  ;;  %v995_v31 = vld [vmem:[#allocation12 + $0x700] sm:$0xff]  ;;  %v1894_v23 = vld [vmem:[#allocation14 + $0x2a8] sm:$0xff] }
 0x1da   : > { %4843 = vmatprep.subr.bf16.mxu0 %v4842_v47  ;;  %4907 = vmatprep.subr.bf16.mxu1 %v4906_v48  ;;  %v981_v47 = vld [vmem:[#allocation12 + $0x540] sm:$0xff]  ;;  %v4862_v48 = vpack.c.bf16 %v982_v38, %v980_v37  ;;  %v4926_v49 = vpack.c.bf16 %v1046_v42, %v1044_v41  ;;  %v1061_v37 = vld [vmem:[#allocation12 + $0x750] sm:$0xff]  ;;  %v1000_v38 = vld [vmem:[#allocation12 + $0x788] sm:$0xff] }
 0x1db   : > { %v1002_v41 = vld [vmem:[#allocation12 + $0x7c8] sm:$0xff]  ;;  %v1064_v42 = vld [vmem:[#allocation12 + $0x798] sm:$0xff]  ;;  %v1889_v22 = vld [vmem:[#allocation14 + $0x260] sm:$0xff] }
 0x1dd   : > { %4845 = vmatpush1.bf16.msra.mxu0 %v4844_v55  ;;  %4909 = vmatpush1.bf16.msra.mxu1 %v4908_v56  ;;  %v1050_v55 = vld [vmem:[#allocation12 + $0x5d8] sm:$0xff]  ;;  %v4864_v56 = vpack.c.bf16 %v981_v47, %v979_v46  ;;  %v4944_v46 = vpack.c.bf16 %v1061_v37, %v1059_v36  ;;  %v999_v47 = vld [vmem:[#allocation12 + $0x780] sm:$0xff]  ;;  %v1910_v37 = vld [vmem:[#allocation14 + $0x3a8] sm:$0xff] }
 0x1de   : > { %4847 = vmatprep.subr.bf16.mxu0 %v4846_v58  ;;  %4911 = vmatprep.subr.bf16.mxu1 %v4910_v59  ;;  %v985_v58 = vld [vmem:[#allocation12 + $0x5c0] sm:$0xff]  ;;  %v4866_v59 = vpack.c.bf16 %v986_v53, %v984_v52  ;;  %v4930_v60 = vpack.c.bf16 %v1050_v55, %v1048_v54  ;;  %v1065_v52 = vld [vmem:[#allocation12 + $0x7d0] sm:$0xff]  ;;  %v4884_v53 = vpack.c.bf16 %v1001_v50, %v999_v47  ;;  %v937_v55 = vld [vmem:[#allocation2] sm:$0x3c] }
 0x1df   : > { %v4948_v54 = vpack.c.bf16 %v1065_v52, %v1063_v51  ;;  %v1905_v36 = vld [vmem:[#allocation14 + $0x360] sm:$0xff]  ;;  %v1922_v47 = vld [vmem:[#allocation14 + $0x468] sm:$0xff] }
 0x1e0   : > { %v1917_v50 = vld [vmem:[#allocation14 + $0x420] sm:$0xff]  ;;  %v1926_v52 = vld [vmem:[#allocation14 + $0x4a8] sm:$0xff] }
 0x1e1   : > { %4849 = vmatpush1.bf16.msra.mxu0 %v4848_v3  ;;  %4913 = vmatpush1.bf16.msra.mxu1 %v4912_v4  ;;  %v1054_v3 = vld [vmem:[#allocation12 + $0x658] sm:$0xff]  ;;  %v4868_v4 = vpack.c.bf16 %v985_v58, %v983_v57  ;;  %v1854_v57 = vld [vmem:[#allocation14 + $0x28] sm:$0xff]  ;;  %v1921_v51 = vld [vmem:[#allocation14 + $0x460] sm:$0xff] }
 0x1e2   : > { %4851 = vmatprep.subr.bf16.mxu0 %v4850_v7  ;;  %4915 = vmatprep.subr.bf16.mxu1 %v4914_v8  ;;  %v989_v7 = vld [vmem:[#allocation12 + $0x640] sm:$0xff]  ;;  %v4870_v8 = vpack.c.bf16 %v990_v1, %v988_v63  ;;  %v4934_v9 = vpack.c.bf16 %v1054_v3, %v1052_v2  ;;  %v1858_v58 = vld [vmem:[#allocation14 + $0x68] sm:$0xff] }
 0x1e3   : > { %v1862_v63 = vld [vmem:[#allocation14 + $0xa8] sm:$0xff]  ;;  %v1861_v3 = vld [vmem:[#allocation14 + $0xa0] sm:$0xff] }
 0x1e4   : > { %v1866_v1 = vld [vmem:[#allocation14 + $0xe8] sm:$0xff] }
 0x1e5   : > { %4853 = vmatpush1.bf16.msra.mxu0 %v4852_v15  ;;  %4917 = vmatpush1.bf16.msra.mxu1 %v4916_v16  ;;  %v1058_v15 = vld [vmem:[#allocation12 + $0x6d8] sm:$0xff]  ;;  %v4872_v16 = vpack.c.bf16 %v989_v7, %v987_v6  ;;  %v4954_v2 = vpack.c.bf16 %v1866_v1, %v1862_v63  ;;  %v1870_v6 = vld [vmem:[#allocation14 + $0x128] sm:$0xff] }
 0x1e6   : > { %4855 = vmatprep.subr.bf16.mxu0 %v4854_v19  ;;  %4919 = vmatprep.subr.bf16.mxu1 %v4918_v20  ;;  %v993_v19 = vld [vmem:[#allocation12 + $0x6c0] sm:$0xff]  ;;  %v4874_v20 = vpack.c.bf16 %v994_v13, %v992_v12  ;;  %v4938_v21 = vpack.c.bf16 %v1058_v15, %v1056_v14  ;;  %v1874_v7 = vld [vmem:[#allocation14 + $0x168] sm:$0xff] }
 0x1e7   : > { %v1878_v12 = vld [vmem:[#allocation14 + $0x1a8] sm:$0xff]  ;;  %v1877_v15 = vld [vmem:[#allocation14 + $0x1a0] sm:$0xff] }
 0x1e8   : > { %v1882_v13 = vld [vmem:[#allocation14 + $0x1e8] sm:$0xff] }
 0x1e9   : > { %4857 = vmatpush1.bf16.msra.mxu0 %v4856_v28  ;;  %4921 = vmatpush1.bf16.msra.mxu1 %v4920_v29  ;;  %v1062_v28 = vld [vmem:[#allocation12 + $0x758] sm:$0xff]  ;;  %v4876_v29 = vpack.c.bf16 %v993_v19, %v991_v18  ;;  %v4962_v14 = vpack.c.bf16 %v1882_v13, %v1878_v12  ;;  %v1890_v18 = vld [vmem:[#allocation14 + $0x268] sm:$0xff] }
 0x1ea   : > { %4859 = vmatprep.subr.bf16.mxu0 %v4858_v32  ;;  %4923 = vmatprep.subr.bf16.mxu1 %v4922_v34  ;;  %v997_v32 = vld [vmem:[#allocation12 + $0x740] sm:$0xff]  ;;  %v4878_v34 = vpack.c.bf16 %v998_v25, %v996_v24  ;;  %v4942_v35 = vpack.c.bf16 %v1062_v28, %v1060_v26  ;;  %v1898_v24 = vld [vmem:[#allocation14 + $0x2e8] sm:$0xff] }
 0x1eb   : > { %v4970_v26 = vpack.c.bf16 %v1898_v24, %v1894_v23  ;;  %v1893_v28 = vld [vmem:[#allocation14 + $0x2a0] sm:$0xff]  ;;  %v1942_v63 = vld [vmem:[#allocation14 + $0x5a8] sm:$0xff]  ;;  %v1855_v24 = vld [vmem:[#allocation14 + $0x30] sm:$0xff] }
 0x1ec   : > { %v1946_v1 = vld [vmem:[#allocation14 + $0x5e8] sm:$0xff] }
 0x1ed   : > { %4861 = vmatpush1.bf16.msra.mxu0 %v4860_v44  ;;  %4925 = vmatpush1.bf16.msra.mxu1 %v4924_v45  ;;  %v1066_v44 = vld [vmem:[#allocation12 + $0x7d8] sm:$0xff]  ;;  %v4880_v45 = vpack.c.bf16 %v997_v32, %v995_v31  ;;  %v1906_v31 = vld [vmem:[#allocation14 + $0x368] sm:$0xff] }
 0x1ee   : > { %4863 = vmatprep.subr.bf16.mxu0 %v4862_v48  ;;  %4927 = vmatprep.subr.bf16.mxu1 %v4926_v49  ;;  %v4882_v48 = vpack.c.bf16 %v1002_v41, %v1000_v38  ;;  %v4946_v49 = vpack.c.bf16 %v1066_v44, %v1064_v42  ;;  %v1914_v38 = vld [vmem:[#allocation14 + $0x3e8] sm:$0xff]  ;;  %v1909_v44 = vld [vmem:[#allocation14 + $0x3a0] sm:$0xff] }
 0x1ef   : > { %v4978_v42 = vpack.c.bf16 %v1914_v38, %v1910_v37 }
 0x1f1   : > { %4865 = vmatpush1.bf16.msra.mxu0 %v4864_v56  ;;  %4929 = vmatpush1.bf16.msra.mxu1 %v4928_v33  ;;  %v1429_v56 = vrot.slane %v937_v55, 2  ;;  %v933_v33 = vld [vmem:[#allocation2] sm:$0xf] }
 0x1f2   : > { %4867 = vmatprep.subr.bf16.mxu0 %v4866_v59  ;;  %4931 = vmatprep.subr.bf16.mxu1 %v4930_v60  ;;  %v4950_v59 = vpack.c.bf16 %v1858_v58, %v1854_v57  ;;  %v1853_v60 = vld [vmem:[#allocation14 + $0x20] sm:$0xff]  ;;  %v1934_v57 = vld [vmem:[#allocation14 + $0x528] sm:$0xff] }
 0x1f3   : > { %v4952_v62 = vpack.c.bf16 %v1857_v61, %v1853_v60  ;;  %v1938_v58 = vld [vmem:[#allocation14 + $0x568] sm:$0xff]  ;;  %v1933_v61 = vld [vmem:[#allocation14 + $0x520] sm:$0xff] }
 0x1f4   : > { %v4990_v60 = vpack.c.bf16 %v1938_v58, %v1934_v57  ;;  %v1900_v57 = vld [vmem:[#allocation14 + $0x2f8] sm:$0xff] }
 0x1f5   : > { %4869 = vmatpush1.bf16.msra.mxu0 %v4868_v4  ;;  %4933 = vmatpush1.bf16.msra.mxu1 %v4932_v5  ;;  %v1865_v4 = vld [vmem:[#allocation14 + $0xe0] sm:$0xff] }
 0x1f6   : > { %4871 = vmatprep.subr.bf16.mxu0 %v4870_v8  ;;  %4935 = vmatprep.subr.bf16.mxu1 %v4934_v9  ;;  %v4956_v5 = vpack.c.bf16 %v1865_v4, %v1861_v3  ;;  %v4958_v8 = vpack.c.bf16 %v1874_v7, %v1870_v6  ;;  %v1869_v9 = vld [vmem:[#allocation14 + $0x120] sm:$0xff]  ;;  %v4994_v3 = vpack.c.bf16 %v1946_v1, %v1942_v63  ;;  %v1510_v4 = vand.u32 127, %v503_v27  ;;  %v1908_v63 = vld [vmem:[#allocation14 + $0x378] sm:$0xff] }
 0x1f7   : > { %v4960_v11 = vpack.c.bf16 %v1873_v10, %v1869_v9  ;;  %v932_v7 = vld [vmem:[%s7052_s4] sm:$0x3]  ;;  %v6661_v27 = vadd.s32 8, %v6618_v39 }
 0x1f8   : > { %v1422_v9 = vrot.slane %v932_v7, %v6625_v43  ;;  %v1418_v10 = vrot.slane %v932_v7, %v6621_v40  ;;  %v1912_v7 = vld [vmem:[#allocation14 + $0x3b8] sm:$0xff] }
 0x1f9   : > { %4873 = vmatpush1.bf16.msra.mxu0 %v4872_v16  ;;  %4937 = vmatpush1.bf16.msra.mxu1 %v4936_v17  ;;  %v1881_v16 = vld [vmem:[#allocation14 + $0x1e0] sm:$0xff]  ;;  %v1886_v17 = vld [vmem:[#allocation14 + $0x228] sm:$0xff] }
 0x1fa   : > { %4875 = vmatprep.subr.bf16.mxu0 %v4874_v20  ;;  %4939 = vmatprep.subr.bf16.mxu1 %v4938_v21  ;;  %v4964_v19 = vpack.c.bf16 %v1881_v16, %v1877_v15  ;;  %v4966_v20 = vpack.c.bf16 %v1890_v18, %v1886_v17  ;;  %v1885_v21 = vld [vmem:[#allocation14 + $0x220] sm:$0xff]  ;;  %v1856_v15 = vld [vmem:[#allocation14 + $0x38] sm:$0xff] }
 0x1fb   : > { %v4968_v25 = vpack.c.bf16 %v1889_v22, %v1885_v21  ;;  %v1860_v16 = vld [vmem:[#allocation14 + $0x78] sm:$0xff] }
 0x1fc   : > { %v5014_v21 = vpack.c.bf16 %v1860_v16, %v1856_v15  ;;  %v1924_v15 = vld [vmem:[#allocation14 + $0x478] sm:$0xff] }
 0x1fd   : > { %4877 = vmatpush1.bf16.msra.mxu0 %v4876_v29  ;;  %4941 = vmatpush1.bf16.msra.mxu1 %v4940_v30  ;;  %v1897_v29 = vld [vmem:[#allocation14 + $0x2e0] sm:$0xff]  ;;  %v1902_v30 = vld [vmem:[#allocation14 + $0x328] sm:$0xff] }
 0x1fe   : > { %4879 = vmatprep.subr.bf16.mxu0 %v4878_v34  ;;  %4943 = vmatprep.subr.bf16.mxu1 %v4942_v35  ;;  %v4972_v32 = vpack.c.bf16 %v1897_v29, %v1893_v28  ;;  %v4974_v34 = vpack.c.bf16 %v1906_v31, %v1902_v30  ;;  %v1901_v35 = vld [vmem:[#allocation14 + $0x320] sm:$0xff]  ;;  %v1868_v28 = vld [vmem:[#allocation14 + $0xf8] sm:$0xff] }
 0x1ff   : > { %v4976_v41 = vpack.c.bf16 %v1905_v36, %v1901_v35  ;;  %v1872_v35 = vld [vmem:[#allocation14 + $0x138] sm:$0xff] }
 0x200   : > { %v1876_v36 = vld [vmem:[#allocation14 + $0x178] sm:$0xff] }
 0x201   : > { %4881 = vmatpush1.bf16.msra.mxu0 %v4880_v45  ;;  %4945 = vmatpush1.bf16.msra.mxu1 %v4944_v46  ;;  %v1913_v45 = vld [vmem:[#allocation14 + $0x3e0] sm:$0xff]  ;;  %v1918_v46 = vld [vmem:[#allocation14 + $0x428] sm:$0xff] }
 0x202   : > { %4883 = vmatprep.subr.bf16.mxu0 %v4882_v48  ;;  %4947 = vmatprep.subr.bf16.mxu1 %v4946_v49  ;;  %v4980_v48 = vpack.c.bf16 %v1913_v45, %v1909_v44  ;;  %v4982_v49 = vpack.c.bf16 %v1922_v47, %v1918_v46  ;;  %v1875_v44 = vld [vmem:[#allocation14 + $0x170] sm:$0xff]  ;;  %v1880_v45 = vld [vmem:[#allocation14 + $0x1b8] sm:$0xff] }
 0x203   : > { %v1884_v46 = vld [vmem:[#allocation14 + $0x1f8] sm:$0xff] }
 0x205   : > { %4885 = vmatpush1.bf16.msra.mxu0 %v4884_v53  ;;  %4949 = vmatpush1.bf16.msra.mxu1 %v4948_v54  ;;  %v1930_v53 = vld [vmem:[#allocation14 + $0x4e8] sm:$0xff]  ;;  %v4984_v54 = vpack.c.bf16 %v1921_v51, %v1917_v50  ;;  %v1883_v50 = vld [vmem:[#allocation14 + $0x1f0] sm:$0xff]  ;;  %v1888_v51 = vld [vmem:[#allocation14 + $0x238] sm:$0xff] }
 0x206   : > { %4951 = vmatprep.subr.bf16.mxu1 %v4950_v59  ;;  %v4986_v55 = vpack.c.bf16 %v1930_v53, %v1926_v52  ;;  %v1892_v52 = vld [vmem:[#allocation14 + $0x278] sm:$0xff] }
 0x208   : > { %1408 = vmatmul.mubr.f32.vlgmr.msra.gmra.mrb[4].mxu0 %v933_v33  ;;  %1498 = vmatmul.mubr.f32.vlgmr.msra.gmra.mrb[4].mxu1 %v1429_v56  ;;  %v1925_v56 = vld [vmem:[#allocation14 + $0x4a0] sm:$0xff] }
 0x209   : > { %1604 = vmatprep.mubr.f32.mxu0 %v6246_v0  ;;  %4953 = vmatpush1.bf16.msra.mxu1 %v4952_v62  ;;  %v1929_v33 = vld [vmem:[#allocation14 + $0x4e0] sm:$0xff] }
 0x20a   : > { %4955 = vmatprep.subr.bf16.mxu1 %v4954_v2  ;;  %v4988_v59 = vpack.c.bf16 %v1929_v33, %v1925_v56  ;;  %v1937_v62 = vld [vmem:[#allocation14 + $0x560] sm:$0xff]  ;;  %v1891_v56 = vld [vmem:[#allocation14 + $0x270] sm:$0xff]  ;;  %v1896_v33 = vld [vmem:[#allocation14 + $0x2b8] sm:$0xff] }
 0x20b   : > { %v4992_v2 = vpack.c.bf16 %v1937_v62, %v1933_v61  ;;  %v1899_v61 = vld [vmem:[#allocation14 + $0x2f0] sm:$0xff]  ;;  %v1904_v62 = vld [vmem:[#allocation14 + $0x338] sm:$0xff] }
 0x20d   : > { %4957 = vmatpush1.bf16.msra.mxu1 %v4956_v5  ;;  %v6645_v5 = vmul.u32 2, %v1510_v4  ;;  %v1907_v4 = vld [vmem:[#allocation14 + $0x370] sm:$0xff] }
 0x20e   : > { %4959 = vmatprep.subr.bf16.mxu1 %v4958_v8 }
 0x20f   : > { %v6648_v6 = vadd.s32 1, %v6645_v5 }
 0x211   : > { %4961 = vmatpush1.bf16.msra.mxu1 %v4960_v11  ;;  %v6654_v8 = vadd.s32 1, %v6648_v6  ;;  %vm1513_vm6 = vcmp.eq.s32.totalorder %v6618_v39, %v6648_v6  ;;  %vm1514_vm7 = vcmp.eq.s32.totalorder %v6661_v27, %v6648_v6 }
 0x212   : > { %4963 = vmatprep.subr.bf16.mxu1 %v4962_v14  ;;  %v6680_v29 = vsel %vm1513_vm6, 1.0, %v6246_v0  ;;  %v6688_v37 = vsel %vm1514_vm7, 1.0, %v6246_v0  ;;  %vm4114_vm6 = vcmp.eq.s32.totalorder %v6661_v27, %v6645_v5 }
 0x213   : > { %vm1520_vm2 = vcmp.eq.s32.totalorder %v6618_v39, %v6654_v8  ;;  %vm1521_vm5 = vcmp.eq.s32.totalorder %v6661_v27, %v6654_v8 }
 0x214   : > { %v6672_v23 = vsel %vm1521_vm5, 1.0, %v6246_v0  ;;  %vm4113_vm5 = vcmp.eq.s32.totalorder %v6618_v39, %v6645_v5 }
 0x215   : > { %4965 = vmatpush1.bf16.msra.mxu1 %v4964_v19  ;;  %v6664_v19 = vsel %vm1520_vm2, 1.0, %v6246_v0  ;;  %vm4146_vm2 = vcmask 261120  }
 0x216   : > { %4967 = vmatprep.subr.bf16.mxu1 %v4966_v20 }
 0x219   : > { %4969 = vmatpush1.bf16.msra.mxu1 %v4968_v25  ;;  %v1859_v25 = vld [vmem:[#allocation14 + $0x70] sm:$0xff] }
 0x21a   : > { %4971 = vmatprep.subr.bf16.mxu1 %v4970_v26  ;;  %v1864_v26 = vld [vmem:[#allocation14 + $0xb8] sm:$0xff]  ;;  %v5016_v30 = vpack.c.bf16 %v1859_v25, %v1855_v24 }
 0x21b   : > { %v5018_v31 = vpack.c.bf16 %v1868_v28, %v1864_v26  ;;  %v1927_v26 = vld [vmem:[#allocation14 + $0x4b0] sm:$0xff] }
 0x21c   : > { %v1931_v28 = vld [vmem:[#allocation14 + $0x4f0] sm:$0xff] }
 0x21d   : > { %4973 = vmatpush1.bf16.msra.mxu1 %v4972_v32  ;;  %v1863_v32 = vld [vmem:[#allocation14 + $0xb0] sm:$0xff] }
 0x21e   : > { %4975 = vmatprep.subr.bf16.mxu1 %v4974_v34  ;;  %v1867_v34 = vld [vmem:[#allocation14 + $0xf0] sm:$0xff] }
 0x21f   : > { %v5020_v38 = vpack.c.bf16 %v1867_v34, %v1863_v32  ;;  %v5052_v32 = vpack.c.bf16 %v1931_v28, %v1927_v26  ;;  %v1971_v26 = vld [vmem:[#allocation14 + $0x770] sm:$0xff]  ;;  %v1974_v28 = vld [vmem:[#allocation14 + $0x7a8] sm:$0xff] }
 0x221   : > { %4977 = vmatpush1.bf16.msra.mxu1 %v4976_v41  ;;  %v5022_v41 = vpack.c.bf16 %v1876_v36, %v1872_v35  ;;  %v1935_v35 = vld [vmem:[#allocation14 + $0x530] sm:$0xff] }
 0x222   : > { %4979 = vmatprep.subr.bf16.mxu1 %v4978_v42  ;;  %v1871_v42 = vld [vmem:[#allocation14 + $0x130] sm:$0xff] }
 0x223   : > { %v5024_v47 = vpack.c.bf16 %v1875_v44, %v1871_v42  ;;  %v1939_v36 = vld [vmem:[#allocation14 + $0x570] sm:$0xff] }
 0x224   : > { %v5056_v42 = vpack.c.bf16 %v1939_v36, %v1935_v35 }
 0x225   : > { %4981 = vmatpush1.bf16.msra.mxu1 %v4980_v48  ;;  %v5026_v48 = vpack.c.bf16 %v1884_v46, %v1880_v45  ;;  %v1941_v45 = vld [vmem:[#allocation14 + $0x5a0] sm:$0xff] }
 0x226   : > { %4983 = vmatprep.subr.bf16.mxu1 %v4982_v49  ;;  %v1879_v49 = vld [vmem:[#allocation14 + $0x1b0] sm:$0xff]  ;;  %v1945_v46 = vld [vmem:[#allocation14 + $0x5e0] sm:$0xff] }
 0x227   : > { %v5028_v53 = vpack.c.bf16 %v1883_v50, %v1879_v49  ;;  %v1947_v49 = vld [vmem:[#allocation14 + $0x5f0] sm:$0xff] }
 0x229   : > { %4985 = vmatpush1.bf16.msra.mxu1 %v4984_v54  ;;  %v5030_v54 = vpack.c.bf16 %v1892_v52, %v1888_v51  ;;  %v1950_v51 = vld [vmem:[#allocation14 + $0x628] sm:$0xff] }
 0x22a   : > { %4987 = vmatprep.subr.bf16.mxu1 %v4986_v55  ;;  %v1887_v55 = vld [vmem:[#allocation14 + $0x230] sm:$0xff]  ;;  %v1954_v52 = vld [vmem:[#allocation14 + $0x668] sm:$0xff] }
 0x22b   : > { %v5032_v58 = vpack.c.bf16 %v1891_v56, %v1887_v55  ;;  %v1956_v55 = vld [vmem:[#allocation14 + $0x678] sm:$0xff]  ;;  %v1949_v56 = vld [vmem:[#allocation14 + $0x620] sm:$0xff] }
 0x22d   : > { %4989 = vmatpush1.bf16.msra.mxu1 %v4988_v59  ;;  %v5034_v59 = vpack.c.bf16 %v1900_v57, %v1896_v33  ;;  %v1953_v33 = vld [vmem:[#allocation14 + $0x660] sm:$0xff] }
 0x22e   : > { %4991 = vmatprep.subr.bf16.mxu1 %v4990_v60  ;;  %v1895_v60 = vld [vmem:[#allocation14 + $0x2b0] sm:$0xff] }
 0x22f   : > { %v5036_v1 = vpack.c.bf16 %v1899_v61, %v1895_v60  ;;  %v1955_v60 = vld [vmem:[#allocation14 + $0x670] sm:$0xff] }
 0x231   : > { %4993 = vmatpush1.bf16.msra.mxu1 %v4992_v2  ;;  %v5038_v2 = vpack.c.bf16 %v1908_v63, %v1904_v62  ;;  %v1958_v62 = vld [vmem:[#allocation14 + $0x6a8] sm:$0xff] }
 0x232   : > { %4995 = vmatprep.subr.bf16.mxu1 %v4994_v3  ;;  %v1903_v3 = vld [vmem:[#allocation14 + $0x330] sm:$0xff]  ;;  %v1962_v63 = vld [vmem:[#allocation14 + $0x6e8] sm:$0xff] }
 0x2db   : > { %v1409_v11 = vpop.f32.mrb[4].mxu0  ;;  %v1499_v12 = vpop.f32.mrb[4].mxu1 }
 0x2dc   : > { %v1411_v13 = vpop.f32.mrb[5].mxu0  ;;  %v1501_v14 = vpop.f32.mrb[5].mxu1  ;;  %v1504_v18 = vadd.f32 %v1499_v12, %v1418_v10  ;;  %v1425_v22 = vadd.f32 %v1418_v10, %v1409_v11  ;;  %v5040_v10 = vpack.c.bf16 %v1907_v4, %v1903_v3  ;;  %v1911_v12 = vld [vmem:[#allocation14 + $0x3b0] sm:$0xff]  ;;  %v1964_v3 = vld [vmem:[#allocation14 + $0x6f8] sm:$0xff]  ;;  %v1957_v4 = vld [vmem:[#allocation14 + $0x6a0] sm:$0xff] }
 0x2dd   : > { %v1505_v17 = vadd.f32 %v1501_v14, %v1422_v9  ;;  %v1426_v20 = vadd.f32 %v1422_v9, %v1411_v13  ;;  %v1916_v9 = vld [vmem:[#allocation14 + $0x3f8] sm:$0xff]  ;;  %v1915_v13 = vld [vmem:[#allocation14 + $0x3f0] sm:$0xff] }
 0x2de   : > { %v5042_v11 = vpack.c.bf16 %v1916_v9, %v1912_v7  ;;  %v1920_v14 = vld [vmem:[#allocation14 + $0x438] sm:$0xff]  ;;  %v5044_v16 = vpack.c.bf16 %v1915_v13, %v1911_v12  ;;  %v1961_v7 = vld [vmem:[#allocation14 + $0x6e0] sm:$0xff]  ;;  %v1963_v12 = vld [vmem:[#allocation14 + $0x6f0] sm:$0xff] }
 0x2df   : > { %4615 = vmatprep.subr.msk.mxu0 %vm1533_vm3, %v1505_v17  ;;  %v5046_v17 = vpack.c.bf16 %v1924_v15, %v1920_v14  ;;  %v1966_v14 = vld [vmem:[#allocation14 + $0x728] sm:$0xff] }
 0x2e0   : > { %4616 = vmatpush1.msk.msra.mxu0 %vm1533_vm3, %v1504_v18  ;;  %v1919_v18 = vld [vmem:[#allocation14 + $0x430] sm:$0xff]  ;;  %v1970_v15 = vld [vmem:[#allocation14 + $0x768] sm:$0xff] }
 0x2e1   : > { %4617 = vmatmul.mubr.msk.f32.vlgmr.msra.gmra.mrb[6].mxu0 %vm1526_vm4, %v6664_v19  ;;  %4619 = vmatprep.subr.msk.mxu0 %vm1533_vm3, %v1426_v20  ;;  %v1923_v20 = vld [vmem:[#allocation14 + $0x470] sm:$0xff] }
 0x2e2   : > { %4620 = vmatpush1.msk.msra.mxu0 %vm1533_vm3, %v1425_v22  ;;  %1610 = vmatprep.mubr.f32.mxu0 %v6246_v0  ;;  %v1932_v22 = vld [vmem:[#allocation14 + $0x4f8] sm:$0xff]  ;;  %v5048_v24 = vpack.c.bf16 %v1923_v20, %v1919_v18  ;;  %v1965_v20 = vld [vmem:[#allocation14 + $0x720] sm:$0xff] }
 0x2e3   : > { %5015 = vmatprep.subr.bf16.mxu0 %v5014_v21  ;;  %v1928_v21 = vld [vmem:[#allocation14 + $0x4b8] sm:$0xff] }
 0x2e4   : > { %v5050_v25 = vpack.c.bf16 %v1932_v22, %v1928_v21  ;;  %v1972_v18 = vld [vmem:[#allocation14 + $0x778] sm:$0xff]  ;;  %v1969_v21 = vld [vmem:[#allocation14 + $0x760] sm:$0xff] }
 0x2e5   : > { %4618 = vmatmul.mubr.msk.f32.gmra.mrb[8].mxu0 %vm1526_vm4, %v6672_v23 }
 0x2e6   : > { %1693 = vmatprep.mubr.f32.mxu0 %v6246_v0 }
 0x2e9   : > { %4621 = vmatmul.mubr.msk.f32.vlgmr.msra.gmra.mrb[6].mxu0 %vm1526_vm4, %v6680_v29 }
 0x2ea   : > { %1699 = vmatprep.mubr.f32.mxu0 %v6246_v0  ;;  %5017 = vmatpush1.bf16.msra.mxu0 %v5016_v30  ;;  %v1936_v30 = vld [vmem:[#allocation14 + $0x538] sm:$0xff] }
 0x2eb   : > { %5019 = vmatprep.subr.bf16.mxu0 %v5018_v31  ;;  %v1940_v31 = vld [vmem:[#allocation14 + $0x578] sm:$0xff] }
 0x2ec   : > { %v5054_v34 = vpack.c.bf16 %v1940_v31, %v1936_v30  ;;  %v1978_v31 = vld [vmem:[#allocation14 + $0x7e8] sm:$0xff] }
 0x2ed   : > { %4622 = vmatmul.mubr.msk.f32.gmra.mrb[8].mxu0 %vm1526_vm4, %v6688_v37  ;;  %v5010_v35 = vpack.c.bf16 %v1978_v31, %v1974_v28  ;;  %v1795_v28 = vld [vmem:[#allocation14 + $0xd0] sm:$0xff] }
 0x2ee   : > { %5021 = vmatpush1.bf16.msra.mxu0 %v5020_v38  ;;  %v1944_v38 = vld [vmem:[#allocation14 + $0x5b8] sm:$0xff] }
 0x2ef   : > { %5023 = vmatprep.subr.bf16.mxu0 %v5022_v41  ;;  %v1948_v41 = vld [vmem:[#allocation14 + $0x5f8] sm:$0xff] }
 0x2f0   : > { %v5058_v44 = vpack.c.bf16 %v1948_v41, %v1944_v38  ;;  %v1973_v38 = vld [vmem:[#allocation14 + $0x7a0] sm:$0xff] }
 0x2f1   : > { %v1977_v41 = vld [vmem:[#allocation14 + $0x7e0] sm:$0xff] }
 0x2f2   : > { %5025 = vmatpush1.bf16.msra.mxu0 %v5024_v47  ;;  %v1943_v47 = vld [vmem:[#allocation14 + $0x5b0] sm:$0xff] }
 0x2f3   : > { %5027 = vmatprep.subr.bf16.mxu0 %v5026_v48  ;;  %v4996_v48 = vpack.c.bf16 %v1945_v46, %v1941_v45  ;;  %v5060_v50 = vpack.c.bf16 %v1947_v49, %v1943_v47  ;;  %v1979_v45 = vld [vmem:[#allocation14 + $0x7f0] sm:$0xff]  ;;  %v1726_v47 = vld [vmem:[#allocation14 + $0x8] sm:$0xff]  ;;  %v1790_v49 = vld [vmem:[#allocation14 + $0x18] sm:$0xff] }
 0x2f5   : > { %4997 = vmatpush1.bf16.msra.mxu1 %v4996_v48  ;;  %v1728_v48 = vld [vmem:[#allocation14 + $0x48] sm:$0xff] }
 0x2f6   : > { %5029 = vmatpush1.bf16.msra.mxu0 %v5028_v53  ;;  %v1952_v53 = vld [vmem:[#allocation14 + $0x638] sm:$0xff] }
 0x2f7   : > { %5031 = vmatprep.subr.bf16.mxu0 %v5030_v54  ;;  %v4998_v54 = vpack.c.bf16 %v1954_v52, %v1950_v51  ;;  %v5062_v57 = vpack.c.bf16 %v1956_v55, %v1952_v53  ;;  %v1792_v51 = vld [vmem:[#allocation14 + $0x58] sm:$0xff] }
 0x2f8   : > { %v5142_v52 = vpack.c.bf16 %v1792_v51, %v1790_v49  ;;  %v1799_v51 = vld [vmem:[#allocation14 + $0x150] sm:$0xff] }
 0x2f9   : > { %4999 = vmatprep.subr.bf16.mxu1 %v4998_v54 }
 0x2fa   : > { %5033 = vmatpush1.bf16.msra.mxu0 %v5032_v58  ;;  %v5000_v58 = vpack.c.bf16 %v1953_v33, %v1949_v56 }
 0x2fb   : > { %5035 = vmatprep.subr.bf16.mxu0 %v5034_v59  ;;  %v1951_v59 = vld [vmem:[#allocation14 + $0x630] sm:$0xff] }
 0x2fc   : > { %v5064_v61 = vpack.c.bf16 %v1955_v60, %v1951_v59  ;;  %5001 = vmatpush1.bf16.msra.mxu1 %v5000_v58  ;;  %v1725_v60 = vld [vmem:[#allocation14] sm:$0xff] }
 0x2fe   : > { %5037 = vmatpush1.bf16.msra.mxu0 %v5036_v1  ;;  %v1960_v1 = vld [vmem:[#allocation14 + $0x6b8] sm:$0xff] }
 0x2ff   : > { %5039 = vmatprep.subr.bf16.mxu0 %v5038_v2  ;;  %v5002_v2 = vpack.c.bf16 %v1962_v63, %v1958_v62  ;;  %v5066_v9 = vpack.c.bf16 %v1964_v3, %v1960_v1  ;;  %v1789_v63 = vld [vmem:[#allocation14 + $0x10] sm:$0xff] }
 0x300   : > { %v1791_v1 = vld [vmem:[#allocation14 + $0x50] sm:$0xff] }
 0x301   : > { %5003 = vmatprep.subr.bf16.mxu1 %v5002_v2 }
 0x302   : > { %5041 = vmatpush1.bf16.msra.mxu0 %v5040_v10  ;;  %v5004_v10 = vpack.c.bf16 %v1961_v7, %v1957_v4  ;;  %v1730_v4 = vld [vmem:[#allocation14 + $0x88] sm:$0xff] }
 0x303   : > { %5043 = vmatprep.subr.bf16.mxu0 %v5042_v11  ;;  %v1959_v11 = vld [vmem:[#allocation14 + $0x6b0] sm:$0xff] }
 0x304   : > { %v5068_v13 = vpack.c.bf16 %v1963_v12, %v1959_v11  ;;  %5005 = vmatpush1.bf16.msra.mxu1 %v5004_v10  ;;  %v1732_v11 = vld [vmem:[#allocation14 + $0xc8] sm:$0xff] }
 0x306   : > { %5045 = vmatpush1.bf16.msra.mxu0 %v5044_v16  ;;  %v1968_v16 = vld [vmem:[#allocation14 + $0x738] sm:$0xff] }
 0x307   : > { %5047 = vmatprep.subr.bf16.mxu0 %v5046_v17  ;;  %v5006_v17 = vpack.c.bf16 %v1970_v15, %v1966_v14  ;;  %v5070_v22 = vpack.c.bf16 %v1972_v18, %v1968_v16  ;;  %v1794_v15 = vld [vmem:[#allocation14 + $0x98] sm:$0xff] }
 0x308   : > { %v1796_v16 = vld [vmem:[#allocation14 + $0xd8] sm:$0xff] }
 0x309   : > { %5007 = vmatprep.subr.bf16.mxu1 %v5006_v17 }
 0x30a   : > { %5049 = vmatpush1.bf16.msra.mxu0 %v5048_v24  ;;  %v5008_v24 = vpack.c.bf16 %v1969_v21, %v1965_v20  ;;  %v5144_v20 = vpack.c.bf16 %v1791_v1, %v1789_v63  ;;  %v1801_v63 = vld [vmem:[#allocation14 + $0x190] sm:$0xff] }
 0x30b   : > { %5051 = vmatprep.subr.bf16.mxu0 %v5050_v25  ;;  %v1967_v25 = vld [vmem:[#allocation14 + $0x730] sm:$0xff] }
 0x30c   : > { %v5072_v30 = vpack.c.bf16 %v1971_v26, %v1967_v25  ;;  %5009 = vmatpush1.bf16.msra.mxu1 %v5008_v24  ;;  %v1731_v24 = vld [vmem:[#allocation14 + $0xc0] sm:$0xff]  ;;  %v1793_v26 = vld [vmem:[#allocation14 + $0x90] sm:$0xff] }
 0x30d   : > { %5011 = vmatprep.subr.bf16.mxu1 %v5010_v35  ;;  %v5146_v35 = vpack.c.bf16 %v1796_v16, %v1794_v15  ;;  %v1803_v1 = vld [vmem:[#allocation14 + $0x1d0] sm:$0xff] }
 0x30e   : > { %5053 = vmatpush1.bf16.msra.mxu0 %v5052_v32  ;;  %v1976_v32 = vld [vmem:[#allocation14 + $0x7b8] sm:$0xff]  ;;  %v1805_v15 = vld [vmem:[#allocation14 + $0x210] sm:$0xff] }
 0x30f   : > { %5055 = vmatprep.subr.bf16.mxu0 %v5054_v34  ;;  %v1980_v34 = vld [vmem:[#allocation14 + $0x7f8] sm:$0xff]  ;;  %v1807_v16 = vld [vmem:[#allocation14 + $0x250] sm:$0xff] }
 0x310   : > { %v5074_v36 = vpack.c.bf16 %v1980_v34, %v1976_v32  ;;  %v5082_v34 = vpack.c.bf16 %v1732_v11, %v1730_v4  ;;  %v1806_v4 = vld [vmem:[#allocation14 + $0x218] sm:$0xff]  ;;  %v1741_v11 = vld [vmem:[#allocation14 + $0x200] sm:$0xff] }
 0x312   : > { %5057 = vmatpush1.bf16.msra.mxu0 %v5056_v42  ;;  %v1975_v42 = vld [vmem:[#allocation14 + $0x7b0] sm:$0xff] }
 0x313   : > { %5059 = vmatprep.subr.bf16.mxu0 %v5058_v44  ;;  %v5012_v44 = vpack.c.bf16 %v1977_v41, %v1973_v38  ;;  %v5076_v46 = vpack.c.bf16 %v1979_v45, %v1975_v42  ;;  %v1798_v38 = vld [vmem:[#allocation14 + $0x118] sm:$0xff]  ;;  %v5148_v45 = vpack.c.bf16 %v1795_v28, %v1793_v26  ;;  %v1747_v26 = vld [vmem:[#allocation14 + $0x2c0] sm:$0xff] }
 0x314   : > { %v1800_v41 = vld [vmem:[#allocation14 + $0x158] sm:$0xff] }
 0x315   : > { %5013 = vmatpush1.bf16.msra.mxu1 %v5012_v44  ;;  %v5150_v49 = vpack.c.bf16 %v1800_v41, %v1798_v38  ;;  %v1816_v38 = vld [vmem:[#allocation14 + $0x358] sm:$0xff] }
 0x316   : > { %5061 = vmatpush1.bf16.msra.mxu0 %v5060_v50  ;;  %v5078_v50 = vpack.c.bf16 %v1728_v48, %v1726_v47  ;;  %v1735_v47 = vld [vmem:[#allocation14 + $0x140] sm:$0xff] }
 0x317   : > { %5063 = vmatprep.subr.bf16.mxu0 %v5062_v57 }
 0x318   : > { %5079 = vmatprep.subr.bf16.mxu1 %v5078_v50  ;;  %v1797_v50 = vld [vmem:[#allocation14 + $0x110] sm:$0xff] }
 0x31a   : > { %5065 = vmatpush1.bf16.msra.mxu0 %v5064_v61  ;;  %v1727_v61 = vld [vmem:[#allocation14 + $0x40] sm:$0xff] }
 0x31b   : > { %5067 = vmatprep.subr.bf16.mxu0 %v5066_v9  ;;  %v5080_v18 = vpack.c.bf16 %v1727_v61, %v1725_v60  ;;  %v1737_v60 = vld [vmem:[#allocation14 + $0x180] sm:$0xff] }
 0x31c   : > { %v1739_v61 = vld [vmem:[#allocation14 + $0x1c0] sm:$0xff] }
 0x31e   : > { %5069 = vmatpush1.bf16.msra.mxu0 %v5068_v13 }
 0x31f   : > { %5071 = vmatprep.subr.bf16.mxu0 %v5070_v22  ;;  %v1729_v22 = vld [vmem:[#allocation14 + $0x80] sm:$0xff] }
 0x320   : > { %v5084_v44 = vpack.c.bf16 %v1731_v24, %v1729_v22  ;;  %v5160_v24 = vpack.c.bf16 %v1807_v16, %v1805_v15  ;;  %v1762_v15 = vld [vmem:[#allocation14 + $0x488] sm:$0xff] }
 0x321   : > { %v1764_v16 = vld [vmem:[#allocation14 + $0x4c8] sm:$0xff] }
 0x322   : > { %5073 = vmatpush1.bf16.msra.mxu0 %v5072_v30  ;;  %v1734_v30 = vld [vmem:[#allocation14 + $0x108] sm:$0xff] }
 0x323   : > { %5075 = vmatprep.subr.bf16.mxu0 %v5074_v36  ;;  %v1736_v36 = vld [vmem:[#allocation14 + $0x148] sm:$0xff] }
 0x324   : > { %v5086_v48 = vpack.c.bf16 %v1736_v36, %v1734_v30  ;;  %v1814_v36 = vld [vmem:[#allocation14 + $0x318] sm:$0xff] }
 0x326   : > { %5077 = vmatpush1.bf16.msra.mxu0 %v5076_v46  ;;  %v1733_v46 = vld [vmem:[#allocation14 + $0x100] sm:$0xff] }
 0x327   : > { %5143 = vmatprep.subr.bf16.mxu0 %v5142_v52  ;;  %v1738_v52 = vld [vmem:[#allocation14 + $0x188] sm:$0xff] }
 0x3bc   : > { %v6692_v53 = vpop.f32.mrb[6].mxu0 }
 0x3bd   : > { %v1706_v54 = vmax.f32 %v6692_v53, 0.0  ;;  %v1697_v55 = vpop.f32.mrb[7].mxu0  ;;  %v2668_v53 = vld [vmem:[#allocation15 + $0x168] sm:$0xff] }
 0x3be   : > { %v1707_v56 = vmax.f32 %v1697_v55, 0.0  ;;  %v1740_v55 = vld [vmem:[#allocation14 + $0x1c8] sm:$0xff] }
 0x3bf   : > { %1710 = vst [vmem:[#allocation3] sm:$0xff] %v1706_v54 }
 0x3c0   : > { %1711 = vst [vmem:[#allocation3 + $0x8] sm:$0xff] %v1707_v56  ;;  %v1701_v33 = vpop.f32.mrb[8].mxu0 }
 0x3c1   : > { %v1708_v57 = vmax.f32 %v1701_v33, 0.0  ;;  %v1703_v58 = vpop.f32.mrb[9].mxu0  ;;  %v1802_v33 = vld [vmem:[#allocation14 + $0x198] sm:$0xff] }
 0x3c2   : > { %v1709_v59 = vmax.f32 %v1703_v58, 0.0  ;;  %v5088_v58 = vpack.c.bf16 %v1735_v47, %v1733_v46  ;;  %v5166_v47 = vpack.c.bf16 %v1816_v38, %v1814_v36 }
 0x3c3   : > { %1712 = vst [vmem:[#allocation3 + $0x10] sm:$0x3] %v1708_v57  ;;  %v1804_v57 = vld [vmem:[#allocation14 + $0x1d8] sm:$0xff] }
 0x3c4   : > { %1713 = vst [vmem:[#allocation3 + $0x18] sm:$0x3] %v1709_v59  ;;  %v5152_v59 = vpack.c.bf16 %v1799_v51, %v1797_v50  ;;  %v1754_v50 = vld [vmem:[#allocation14 + $0x388] sm:$0xff] }
 0x3c5   : > { %v1756_v51 = vld [vmem:[#allocation14 + $0x3c8] sm:$0xff] }
 0x3c6   : > { %v1717_v2 = vld [vmem:[#allocation3] sm:$0xfe] }
 0x3c7   : > { %v1718_v62 = vld [vmem:[#allocation3 + $0x8] sm:$0xfe]  ;;  %v1986_v17 = vrot.slane %v1717_v2, 1  ;;  %v1742_v2 = vld [vmem:[#allocation14 + $0x208] sm:$0xff] }
 0x3c8   : > { %v1989_v12 = vrot.slane %v1718_v62, 1  ;;  %v1722_v14 = vld [vmem:[#allocation3 + $0x8] sm:$0xfc]  ;;  %v5154_v62 = vpack.c.bf16 %v1804_v57, %v1802_v33 }
 0x3c9   : > { %v2228_v32 = vrot.slane %v1722_v14, 2 }
 0x3ca   : > { %v1719_v3 = vld [vmem:[#allocation3 + $0x10] sm:$0x1] }
 0x3cb   : > { %v1720_v7 = vld [vmem:[#allocation3 + $0x18] sm:$0x1]  ;;  %v1987_v9 = vrot.slane %v1719_v3, 1 }
 0x3cc   : > { %v1724_v10 = vld [vmem:[#allocation3 + $0x18] sm:$0x3]  ;;  %v1990_v13 = vrot.slane %v1720_v7, 1  ;;  %v1808_v7 = vld [vmem:[#allocation14 + $0x258] sm:$0xff] }
 0x3cd   : > { %v2229_v21 = vrot.slane %v1724_v10, 2  ;;  %v1988_v31 = vsel %vm1985_vm8, %v1986_v17, %v1987_v9  ;;  %v1744_v3 = vld [vmem:[#allocation14 + $0x248] sm:$0xff]  ;;  %v5092_v9 = vpack.c.bf16 %v1739_v61, %v1737_v60  ;;  %v5156_v10 = vpack.c.bf16 %v1803_v1, %v1801_v63 }
 0x3ce   : > { %v1991_v25 = vsel %vm1985_vm8, %v1989_v12, %v1990_v13  ;;  %v1743_v12 = vld [vmem:[#allocation14 + $0x240] sm:$0xff]  ;;  %v5094_v13 = vpack.c.bf16 %v1744_v3, %v1742_v2  ;;  %v5158_v14 = vpack.c.bf16 %v1808_v7, %v1806_v4  ;;  %v1746_v17 = vld [vmem:[#allocation14 + $0x288] sm:$0xff]  ;;  %v5106_v60 = vpack.c.bf16 %v1756_v51, %v1754_v50  ;;  %v1822_v2 = vld [vmem:[#allocation14 + $0x418] sm:$0xff] }
 0x3cf   : > { %2058 = vmatprep.mubr.f32.mxu1 %v1991_v25  ;;  %2129 = vmatprep.mubr.f32.mxu0 %v1991_v25  ;;  %v2230_v42 = vsel %vm2224_vm9, %v2228_v32, %v2229_v21  ;;  %v1812_v21 = vld [vmem:[#allocation14 + $0x2d8] sm:$0xff]  ;;  %v5096_v22 = vpack.c.bf16 %v1743_v12, %v1741_v11  ;;  %v1745_v25 = vld [vmem:[#allocation14 + $0x280] sm:$0xff]  ;;  %v1811_v32 = vld [vmem:[#allocation14 + $0x2d0] sm:$0xff] }
 0x3d0   : > { %2059 = vmatmul.mubr.f32.vlgmr.msra.gmra.mrb[6].mxu1 %v1988_v31  ;;  %2130 = vmatmul.mubr.f32.vlgmr.msra.gmra.mrb[10].mxu0 %v1988_v31  ;;  %v1809_v31 = vld [vmem:[#allocation14 + $0x290] sm:$0xff]  ;;  %v5100_v41 = vpack.c.bf16 %v1747_v26, %v1745_v25  ;;  %v1758_v63 = vld [vmem:[#allocation14 + $0x408] sm:$0xff]  ;;  %v1824_v3 = vld [vmem:[#allocation14 + $0x458] sm:$0xff]  ;;  %v5114_v25 = vpack.c.bf16 %v1764_v16, %v1762_v15 }
 0x3d1   : > { %5081 = vmatpush1.bf16.msra.mxu1 %v5080_v18  ;;  %5145 = vmatpush1.bf16.msra.mxu0 %v5144_v20  ;;  %v1748_v18 = vld [vmem:[#allocation14 + $0x2c8] sm:$0xff]  ;;  %v1810_v20 = vld [vmem:[#allocation14 + $0x298] sm:$0xff]  ;;  %v5174_v12 = vpack.c.bf16 %v1824_v3, %v1822_v2 }
 0x3d2   : > { %2200 = vmatprep.mubr.f32.mxu1 %v1707_v56  ;;  %2297 = vmatprep.mubr.f32.mxu0 %v2230_v42  ;;  %v5090_v56 = vpack.c.bf16 %v1740_v55, %v1738_v52  ;;  %v5098_v28 = vpack.c.bf16 %v1748_v18, %v1746_v17  ;;  %v5162_v30 = vpack.c.bf16 %v1812_v21, %v1810_v20  ;;  %v1818_v52 = vld [vmem:[#allocation14 + $0x398] sm:$0xff]  ;;  %v1760_v1 = vld [vmem:[#allocation14 + $0x448] sm:$0xff] }
 0x3d3   : > { %5083 = vmatprep.subr.bf16.mxu1 %v5082_v34  ;;  %5147 = vmatprep.subr.bf16.mxu0 %v5146_v35  ;;  %v1750_v34 = vld [vmem:[#allocation14 + $0x308] sm:$0xff]  ;;  %v5164_v42 = vpack.c.bf16 %v1811_v32, %v1809_v31  ;;  %v1820_v55 = vld [vmem:[#allocation14 + $0x3d8] sm:$0xff]  ;;  %v5110_v11 = vpack.c.bf16 %v1760_v1, %v1758_v63 }
 0x3d4   : > { %v1752_v35 = vld [vmem:[#allocation14 + $0x348] sm:$0xff]  ;;  %v5170_v61 = vpack.c.bf16 %v1820_v55, %v1818_v52  ;;  %v1826_v17 = vld [vmem:[#allocation14 + $0x498] sm:$0xff] }
 0x3d5   : > { %5085 = vmatpush1.bf16.msra.mxu1 %v5084_v44  ;;  %5149 = vmatpush1.bf16.msra.mxu0 %v5148_v45  ;;  %v1749_v44 = vld [vmem:[#allocation14 + $0x300] sm:$0xff]  ;;  %v5102_v46 = vpack.c.bf16 %v1752_v35, %v1750_v34  ;;  %v1828_v18 = vld [vmem:[#allocation14 + $0x4d8] sm:$0xff]  ;;  %v1766_v31 = vld [vmem:[#allocation14 + $0x508] sm:$0xff] }
 0x3d6   : > { %5087 = vmatprep.subr.bf16.mxu1 %v5086_v48  ;;  %5151 = vmatprep.subr.bf16.mxu0 %v5150_v49  ;;  %v1751_v45 = vld [vmem:[#allocation14 + $0x340] sm:$0xff]  ;;  %v1813_v48 = vld [vmem:[#allocation14 + $0x310] sm:$0xff]  ;;  %v5178_v26 = vpack.c.bf16 %v1828_v18, %v1826_v17  ;;  %v1768_v32 = vld [vmem:[#allocation14 + $0x548] sm:$0xff] }
 0x3d7   : > { %v1815_v49 = vld [vmem:[#allocation14 + $0x350] sm:$0xff]  ;;  %v5104_v33 = vpack.c.bf16 %v1751_v45, %v1749_v44  ;;  %v1830_v34 = vld [vmem:[#allocation14 + $0x518] sm:$0xff]  ;;  %v5118_v44 = vpack.c.bf16 %v1768_v32, %v1766_v31 }
 0x3d8   : > { %v5168_v57 = vpack.c.bf16 %v1815_v49, %v1813_v48  ;;  %v1832_v35 = vld [vmem:[#allocation14 + $0x558] sm:$0xff]  ;;  %v1770_v48 = vld [vmem:[#allocation14 + $0x588] sm:$0xff] }
 0x3d9   : > { %5089 = vmatpush1.bf16.msra.mxu1 %v5088_v58  ;;  %5153 = vmatpush1.bf16.msra.mxu0 %v5152_v59  ;;  %v1753_v58 = vld [vmem:[#allocation14 + $0x380] sm:$0xff]  ;;  %v5182_v45 = vpack.c.bf16 %v1832_v35, %v1830_v34  ;;  %v1772_v49 = vld [vmem:[#allocation14 + $0x5c8] sm:$0xff]  ;;  %v1834_v50 = vld [vmem:[#allocation14 + $0x598] sm:$0xff] }
 0x3da   : > { %5091 = vmatprep.subr.bf16.mxu1 %v5090_v56  ;;  %5155 = vmatprep.subr.bf16.mxu0 %v5154_v62  ;;  %v1755_v59 = vld [vmem:[#allocation14 + $0x3c0] sm:$0xff]  ;;  %v1817_v56 = vld [vmem:[#allocation14 + $0x390] sm:$0xff]  ;;  %v1836_v51 = vld [vmem:[#allocation14 + $0x5d8] sm:$0xff] }
 0x3db   : > { %v1819_v62 = vld [vmem:[#allocation14 + $0x3d0] sm:$0xff]  ;;  %v5108_v4 = vpack.c.bf16 %v1755_v59, %v1753_v58  ;;  %v5122_v58 = vpack.c.bf16 %v1772_v49, %v1770_v48  ;;  %v5186_v59 = vpack.c.bf16 %v1836_v51, %v1834_v50  ;;  %v1838_v63 = vld [vmem:[#allocation14 + $0x618] sm:$0xff] }
 0x3dc   : > { %v5172_v7 = vpack.c.bf16 %v1819_v62, %v1817_v56  ;;  %v1774_v56 = vld [vmem:[#allocation14 + $0x608] sm:$0xff]  ;;  %v1840_v1 = vld [vmem:[#allocation14 + $0x658] sm:$0xff] }
 0x3dd   : > { %5093 = vmatpush1.bf16.msra.mxu1 %v5092_v9  ;;  %5157 = vmatpush1.bf16.msra.mxu0 %v5156_v10  ;;  %v1757_v9 = vld [vmem:[#allocation14 + $0x400] sm:$0xff]  ;;  %v1776_v62 = vld [vmem:[#allocation14 + $0x648] sm:$0xff]  ;;  %v1842_v15 = vld [vmem:[#allocation14 + $0x698] sm:$0xff] }
 0x3de   : > { %5095 = vmatprep.subr.bf16.mxu1 %v5094_v13  ;;  %5159 = vmatprep.subr.bf16.mxu0 %v5158_v14  ;;  %v1759_v10 = vld [vmem:[#allocation14 + $0x440] sm:$0xff]  ;;  %v1821_v13 = vld [vmem:[#allocation14 + $0x410] sm:$0xff]  ;;  %v1844_v16 = vld [vmem:[#allocation14 + $0x6d8] sm:$0xff] }
 0x3df   : > { %v1823_v14 = vld [vmem:[#allocation14 + $0x450] sm:$0xff]  ;;  %v5112_v20 = vpack.c.bf16 %v1759_v10, %v1757_v9  ;;  %v5126_v9 = vpack.c.bf16 %v1776_v62, %v1774_v56  ;;  %v5190_v10 = vpack.c.bf16 %v1840_v1, %v1838_v63  ;;  %v1846_v31 = vld [vmem:[#allocation14 + $0x718] sm:$0xff] }
 0x3e0   : > { %v5176_v21 = vpack.c.bf16 %v1823_v14, %v1821_v13  ;;  %v1778_v13 = vld [vmem:[#allocation14 + $0x688] sm:$0xff]  ;;  %v1848_v32 = vld [vmem:[#allocation14 + $0x758] sm:$0xff] }
 0x3e1   : > { %5097 = vmatpush1.bf16.msra.mxu1 %v5096_v22  ;;  %5161 = vmatpush1.bf16.msra.mxu0 %v5160_v24  ;;  %v1761_v22 = vld [vmem:[#allocation14 + $0x480] sm:$0xff]  ;;  %v1780_v14 = vld [vmem:[#allocation14 + $0x6c8] sm:$0xff]  ;;  %v1850_v48 = vld [vmem:[#allocation14 + $0x798] sm:$0xff] }
 0x3e2   : > { %5099 = vmatprep.subr.bf16.mxu1 %v5098_v28  ;;  %5163 = vmatprep.subr.bf16.mxu0 %v5162_v30  ;;  %v1763_v24 = vld [vmem:[#allocation14 + $0x4c0] sm:$0xff]  ;;  %v1825_v28 = vld [vmem:[#allocation14 + $0x490] sm:$0xff]  ;;  %v1852_v49 = vld [vmem:[#allocation14 + $0x7d8] sm:$0xff] }
 0x3e3   : > { %v1827_v30 = vld [vmem:[#allocation14 + $0x4d0] sm:$0xff]  ;;  %v5116_v36 = vpack.c.bf16 %v1763_v24, %v1761_v22  ;;  %v5130_v22 = vpack.c.bf16 %v1780_v14, %v1778_v13  ;;  %v5194_v24 = vpack.c.bf16 %v1844_v16, %v1842_v15  ;;  %v1721_v62 = vld [vmem:[#allocation3] sm:$0xfc]  ;;  %v2660_v13 = vld [vmem:[#allocation15 + $0xe8] sm:$0xff] }
 0x3e4   : > { %v5180_v38 = vpack.c.bf16 %v1827_v30, %v1825_v28  ;;  %v1782_v28 = vld [vmem:[#allocation14 + $0x708] sm:$0xff]  ;;  %v2225_v1 = vrot.slane %v1721_v62, 2  ;;  %v2655_v15 = vld [vmem:[#allocation15 + $0xa0] sm:$0xff] }
 0x3e5   : > { %5101 = vmatpush1.bf16.msra.mxu1 %v5100_v41  ;;  %5165 = vmatpush1.bf16.msra.mxu0 %v5164_v42  ;;  %v1765_v41 = vld [vmem:[#allocation14 + $0x500] sm:$0xff]  ;;  %v1784_v30 = vld [vmem:[#allocation14 + $0x748] sm:$0xff] }
 0x3e6   : > { %5103 = vmatprep.subr.bf16.mxu1 %v5102_v46  ;;  %5167 = vmatprep.subr.bf16.mxu0 %v5166_v47  ;;  %v1767_v42 = vld [vmem:[#allocation14 + $0x540] sm:$0xff]  ;;  %v1829_v46 = vld [vmem:[#allocation14 + $0x510] sm:$0xff]  ;;  %v2716_v62 = vld [vmem:[#allocation15 + $0x468] sm:$0xff] }
 0x3e7   : > { %v1831_v47 = vld [vmem:[#allocation14 + $0x550] sm:$0xff]  ;;  %v5120_v52 = vpack.c.bf16 %v1767_v42, %v1765_v41  ;;  %v5134_v41 = vpack.c.bf16 %v1784_v30, %v1782_v28  ;;  %v5198_v42 = vpack.c.bf16 %v1848_v32, %v1846_v31  ;;  %v2659_v16 = vld [vmem:[#allocation15 + $0xe0] sm:$0xff]  ;;  %v2680_v31 = vld [vmem:[#allocation15 + $0x228] sm:$0xff] }
 0x3e8   : > { %v5184_v55 = vpack.c.bf16 %v1831_v47, %v1829_v46  ;;  %v1786_v46 = vld [vmem:[#allocation14 + $0x788] sm:$0xff]  ;;  %v2671_v28 = vld [vmem:[#allocation15 + $0x1a0] sm:$0xff] }
 0x3e9   : > { %5105 = vmatpush1.bf16.msra.mxu1 %v5104_v33  ;;  %5169 = vmatpush1.bf16.msra.mxu0 %v5168_v57  ;;  %v1769_v33 = vld [vmem:[#allocation14 + $0x580] sm:$0xff]  ;;  %v1788_v47 = vld [vmem:[#allocation14 + $0x7c8] sm:$0xff] }
 0x3ea   : > { %5107 = vmatprep.subr.bf16.mxu1 %v5106_v60  ;;  %5171 = vmatprep.subr.bf16.mxu0 %v5170_v61  ;;  %v1771_v57 = vld [vmem:[#allocation14 + $0x5c0] sm:$0xff]  ;;  %v1833_v60 = vld [vmem:[#allocation14 + $0x590] sm:$0xff]  ;;  %v2684_v32 = vld [vmem:[#allocation15 + $0x268] sm:$0xff] }
 0x3eb   : > { %v1835_v61 = vld [vmem:[#allocation14 + $0x5d0] sm:$0xff]  ;;  %v5124_v2 = vpack.c.bf16 %v1771_v57, %v1769_v33  ;;  %v5202_v33 = vpack.c.bf16 %v1852_v49, %v1850_v48  ;;  %v1787_v57 = vld [vmem:[#allocation14 + $0x7c0] sm:$0xff]  ;;  %v2696_v48 = vld [vmem:[#allocation15 + $0x328] sm:$0xff] }
 0x3ec   : > { %v5188_v3 = vpack.c.bf16 %v1835_v61, %v1833_v60  ;;  %v1723_v60 = vld [vmem:[#allocation3 + $0x10] sm:$0x3]  ;;  %v2700_v49 = vld [vmem:[#allocation15 + $0x368] sm:$0xff] }
 0x3ed   : > { %5109 = vmatpush1.bf16.msra.mxu1 %v5108_v4  ;;  %5173 = vmatpush1.bf16.msra.mxu0 %v5172_v7  ;;  %v1773_v4 = vld [vmem:[#allocation14 + $0x600] sm:$0xff]  ;;  %v2226_v63 = vrot.slane %v1723_v60, 2 }
 0x3ee   : > { %5111 = vmatprep.subr.bf16.mxu1 %v5110_v11  ;;  %5175 = vmatprep.subr.bf16.mxu0 %v5174_v12  ;;  %v1775_v7 = vld [vmem:[#allocation14 + $0x640] sm:$0xff]  ;;  %v1837_v11 = vld [vmem:[#allocation14 + $0x610] sm:$0xff] }
 0x3ef   : > { %v1839_v12 = vld [vmem:[#allocation14 + $0x650] sm:$0xff]  ;;  %v5128_v17 = vpack.c.bf16 %v1775_v7, %v1773_v4  ;;  %v2652_v4 = vld [vmem:[#allocation15 + $0x68] sm:$0xff]  ;;  %v2675_v30 = vld [vmem:[#allocation15 + $0x1e0] sm:$0xff] }
 0x3f0   : > { %v5192_v18 = vpack.c.bf16 %v1839_v12, %v1837_v11  ;;  %v2656_v12 = vld [vmem:[#allocation15 + $0xa8] sm:$0xff]  ;;  %v2703_v60 = vld [vmem:[#allocation15 + $0x3a0] sm:$0xff] }
 0x3f1   : > { %5113 = vmatpush1.bf16.msra.mxu1 %v5112_v20  ;;  %5177 = vmatpush1.bf16.msra.mxu0 %v5176_v21  ;;  %v1777_v20 = vld [vmem:[#allocation14 + $0x680] sm:$0xff]  ;;  %v5210_v14 = vpack.c.bf16 %v2660_v13, %v2656_v12  ;;  %v2728_v13 = vld [vmem:[#allocation15 + $0x528] sm:$0xff] }
 0x3f2   : > { %5115 = vmatprep.subr.bf16.mxu1 %v5114_v25  ;;  %5179 = vmatprep.subr.bf16.mxu0 %v5178_v26  ;;  %v1779_v21 = vld [vmem:[#allocation14 + $0x6c0] sm:$0xff]  ;;  %v1841_v25 = vld [vmem:[#allocation14 + $0x690] sm:$0xff] }
 0x3f3   : > { %v1843_v26 = vld [vmem:[#allocation14 + $0x6d0] sm:$0xff]  ;;  %v5132_v34 = vpack.c.bf16 %v1779_v21, %v1777_v20  ;;  %v2663_v20 = vld [vmem:[#allocation15 + $0x120] sm:$0xff] }
 0x3f4   : > { %v5196_v35 = vpack.c.bf16 %v1843_v26, %v1841_v25  ;;  %v2667_v21 = vld [vmem:[#allocation15 + $0x160] sm:$0xff]  ;;  %v2676_v25 = vld [vmem:[#allocation15 + $0x1e8] sm:$0xff] }
 0x3f5   : > { %5117 = vmatpush1.bf16.msra.mxu1 %v5116_v36  ;;  %5181 = vmatpush1.bf16.msra.mxu0 %v5180_v38  ;;  %v1781_v36 = vld [vmem:[#allocation14 + $0x700] sm:$0xff] }
 0x3f6   : > { %5119 = vmatprep.subr.bf16.mxu1 %v5118_v44  ;;  %5183 = vmatprep.subr.bf16.mxu0 %v5182_v45  ;;  %v1783_v38 = vld [vmem:[#allocation14 + $0x740] sm:$0xff]  ;;  %v1845_v44 = vld [vmem:[#allocation14 + $0x710] sm:$0xff] }
 0x3f7   : > { %v1847_v45 = vld [vmem:[#allocation14 + $0x750] sm:$0xff]  ;;  %v5136_v50 = vpack.c.bf16 %v1783_v38, %v1781_v36  ;;  %v2679_v36 = vld [vmem:[#allocation15 + $0x220] sm:$0xff] }
 0x3f8   : > { %v5200_v51 = vpack.c.bf16 %v1847_v45, %v1845_v44  ;;  %v2683_v38 = vld [vmem:[#allocation15 + $0x260] sm:$0xff] }
 0x3f9   : > { %5121 = vmatpush1.bf16.msra.mxu1 %v5120_v52  ;;  %5185 = vmatpush1.bf16.msra.mxu0 %v5184_v55  ;;  %v1785_v52 = vld [vmem:[#allocation14 + $0x780] sm:$0xff]  ;;  %v5138_v55 = vpack.c.bf16 %v1788_v47, %v1786_v46  ;;  %v5224_v44 = vpack.c.bf16 %v2683_v38, %v2679_v36 }
 0x3fa   : > { %5123 = vmatprep.subr.bf16.mxu1 %v5122_v58  ;;  %5187 = vmatprep.subr.bf16.mxu0 %v5186_v59  ;;  %v1849_v58 = vld [vmem:[#allocation14 + $0x790] sm:$0xff]  ;;  %v5140_v61 = vpack.c.bf16 %v1787_v57, %v1785_v52  ;;  %v2687_v46 = vld [vmem:[#allocation15 + $0x2a0] sm:$0xff]  ;;  %v2708_v57 = vld [vmem:[#allocation15 + $0x3e8] sm:$0xff] }
 0x3fb   : > { %v1851_v59 = vld [vmem:[#allocation14 + $0x7d0] sm:$0xff]  ;;  %v2691_v47 = vld [vmem:[#allocation15 + $0x2e0] sm:$0xff] }
 0x3fc   : > { %v5204_v56 = vpack.c.bf16 %v1851_v59, %v1849_v58  ;;  %v2695_v52 = vld [vmem:[#allocation15 + $0x320] sm:$0xff] }
 0x3fd   : > { %5125 = vmatpush1.bf16.msra.mxu1 %v5124_v2  ;;  %5189 = vmatpush1.bf16.msra.mxu0 %v5188_v3  ;;  %v2227_v2 = vsel %vm2224_vm9, %v2225_v1, %v2226_v63  ;;  %v2648_v3 = vld [vmem:[#allocation15 + $0x28] sm:$0xff]  ;;  %v2723_v12 = vld [vmem:[#allocation15 + $0x4e0] sm:$0xff] }
 0x3fe   : > { %5127 = vmatprep.subr.bf16.mxu1 %v5126_v9  ;;  %5191 = vmatprep.subr.bf16.mxu0 %v5190_v10  ;;  %v5206_v7 = vpack.c.bf16 %v2652_v4, %v2648_v3  ;;  %v2647_v9 = vld [vmem:[#allocation15 + $0x20] sm:$0xff]  ;;  %v2720_v4 = vld [vmem:[#allocation15 + $0x4a8] sm:$0xff] }
 0x3ff   : > { %v2651_v10 = vld [vmem:[#allocation15 + $0x60] sm:$0xff] }
 0x400   : > { %v5208_v11 = vpack.c.bf16 %v2651_v10, %v2647_v9  ;;  %v2715_v3 = vld [vmem:[#allocation15 + $0x460] sm:$0xff] }
 0x401   : > { %5129 = vmatpush1.bf16.msra.mxu1 %v5128_v17  ;;  %5193 = vmatpush1.bf16.msra.mxu0 %v5192_v18  ;;  %v5212_v17 = vpack.c.bf16 %v2659_v16, %v2655_v15  ;;  %v2664_v18 = vld [vmem:[#allocation15 + $0x128] sm:$0xff] }
 0x402   : > { %5131 = vmatprep.subr.bf16.mxu1 %v5130_v22  ;;  %5195 = vmatprep.subr.bf16.mxu0 %v5194_v24  ;;  %v5216_v22 = vpack.c.bf16 %v2667_v21, %v2663_v20  ;;  %v2672_v24 = vld [vmem:[#allocation15 + $0x1a8] sm:$0xff] }
 0x403   : > { %v5218_v26 = vpack.c.bf16 %v2676_v25, %v2672_v24 }
 0x405   : > { %5133 = vmatpush1.bf16.msra.mxu1 %v5132_v34  ;;  %5197 = vmatpush1.bf16.msra.mxu0 %v5196_v35  ;;  %v5220_v34 = vpack.c.bf16 %v2675_v30, %v2671_v28  ;;  %v5222_v35 = vpack.c.bf16 %v2684_v32, %v2680_v31  ;;  %v2650_v32 = vld [vmem:[#allocation15 + $0x38] sm:$0xff] }
 0x406   : > { %5135 = vmatprep.subr.bf16.mxu1 %v5134_v41  ;;  %5199 = vmatprep.subr.bf16.mxu0 %v5198_v42  ;;  %v2688_v41 = vld [vmem:[#allocation15 + $0x2a8] sm:$0xff] }
 0x407   : > { %v2692_v42 = vld [vmem:[#allocation15 + $0x2e8] sm:$0xff] }
 0x408   : > { %v5226_v45 = vpack.c.bf16 %v2692_v42, %v2688_v41  ;;  %v6710_v41 = vadd.s32 16, %v6618_v39 }
 0x409   : > { %5137 = vmatpush1.bf16.msra.mxu1 %v5136_v50  ;;  %5201 = vmatpush1.bf16.msra.mxu0 %v5200_v51  ;;  %v5228_v50 = vpack.c.bf16 %v2691_v47, %v2687_v46  ;;  %v5230_v51 = vpack.c.bf16 %v2700_v49, %v2696_v48  ;;  %v2649_v46 = vld [vmem:[#allocation15 + $0x30] sm:$0xff]  ;;  %v2658_v48 = vld [vmem:[#allocation15 + $0xb8] sm:$0xff] }
 0x40a   : > { %5139 = vmatprep.subr.bf16.mxu1 %v5138_v55  ;;  %5203 = vmatprep.subr.bf16.mxu0 %v5202_v33  ;;  %v2699_v55 = vld [vmem:[#allocation15 + $0x360] sm:$0xff]  ;;  %v2704_v33 = vld [vmem:[#allocation15 + $0x3a8] sm:$0xff]  ;;  %vm2310_vm11 = vcmp.eq.s32.totalorder %v6710_v41, %v6654_v8  ;;  %v2653_v47 = vld [vmem:[#allocation15 + $0x70] sm:$0xff]  ;;  %vm2307_vm12 = vcmp.eq.s32.totalorder %v6710_v41, %v6648_v6  ;;  %vm4115_vm7 = vcmp.eq.s32.totalorder %v6710_v41, %v6645_v5 }
 0x40b   : > { %v5232_v58 = vpack.c.bf16 %v2699_v55, %v2695_v52  ;;  %v5234_v59 = vpack.c.bf16 %v2708_v57, %v2704_v33  ;;  %v2662_v49 = vld [vmem:[#allocation15 + $0xf8] sm:$0xff]  ;;  %v2657_v52 = vld [vmem:[#allocation15 + $0xb0] sm:$0xff]  ;;  %v4647_v27 = vsel %vm4115_vm7, 1.0, %v6246_v0 }
 0x40c   : > { %v2661_v55 = vld [vmem:[#allocation15 + $0xf0] sm:$0xff]  ;;  %v2666_v33 = vld [vmem:[#allocation15 + $0x138] sm:$0xff] }
 0x40d   : > { %5141 = vmatpush1.bf16.msra.mxu1 %v5140_v61  ;;  %5205 = vmatpush1.bf16.msra.mxu0 %v5204_v56  ;;  %v2707_v61 = vld [vmem:[#allocation15 + $0x3e0] sm:$0xff]  ;;  %v2712_v56 = vld [vmem:[#allocation15 + $0x428] sm:$0xff]  ;;  %v2670_v57 = vld [vmem:[#allocation15 + $0x178] sm:$0xff] }
 0x40e   : > { %5207 = vmatprep.subr.bf16.mxu0 %v5206_v7  ;;  %v5236_v63 = vpack.c.bf16 %v2707_v61, %v2703_v60  ;;  %v5238_v1 = vpack.c.bf16 %v2716_v62, %v2712_v56  ;;  %v2724_v7 = vld [vmem:[#allocation15 + $0x4e8] sm:$0xff]  ;;  %v2665_v60 = vld [vmem:[#allocation15 + $0x130] sm:$0xff]  ;;  %v2674_v56 = vld [vmem:[#allocation15 + $0x1b8] sm:$0xff] }
 0x40f   : > { %v5242_v10 = vpack.c.bf16 %v2724_v7, %v2720_v4  ;;  %v2669_v61 = vld [vmem:[#allocation15 + $0x170] sm:$0xff]  ;;  %v2678_v62 = vld [vmem:[#allocation15 + $0x1f8] sm:$0xff] }
 0x410   : > { %2201 = vmatmul.mubr.f32.vlgmr.msra.gmra.mrb[6].mxu1 %v1706_v54  ;;  %2298 = vmatmul.mubr.f32.vlgmr.msra.gmra.mrb[10].mxu0 %v2227_v2  ;;  %v5214_v54 = vpack.c.bf16 %v2668_v53, %v2664_v18  ;;  %v2711_v2 = vld [vmem:[#allocation15 + $0x420] sm:$0xff]  ;;  %v2736_v53 = vld [vmem:[#allocation15 + $0x5a8] sm:$0xff]  ;;  %v2677_v4 = vld [vmem:[#allocation15 + $0x1f0] sm:$0xff] }
 0x411   : > { %2385 = vmatprep.mubr.f32.mxu1 %v6246_v0  ;;  %5209 = vmatpush1.bf16.msra.mxu0 %v5208_v11  ;;  %v5240_v9 = vpack.c.bf16 %v2715_v3, %v2711_v2  ;;  %v2719_v11 = vld [vmem:[#allocation15 + $0x4a0] sm:$0xff]  ;;  %v5282_v2 = vpack.c.bf16 %v2678_v62, %v2674_v56  ;;  %v2673_v3 = vld [vmem:[#allocation15 + $0x1b0] sm:$0xff]  ;;  %v2682_v7 = vld [vmem:[#allocation15 + $0x238] sm:$0xff] }
 0x412   : > { %5211 = vmatprep.subr.bf16.mxu0 %v5210_v14  ;;  %v2732_v14 = vld [vmem:[#allocation15 + $0x568] sm:$0xff]  ;;  %v5244_v15 = vpack.c.bf16 %v2723_v12, %v2719_v11  ;;  %v2731_v18 = vld [vmem:[#allocation15 + $0x560] sm:$0xff]  ;;  %v2681_v12 = vld [vmem:[#allocation15 + $0x230] sm:$0xff] }
 0x413   : > { %v5246_v16 = vpack.c.bf16 %v2732_v14, %v2728_v13  ;;  %v2685_v13 = vld [vmem:[#allocation15 + $0x270] sm:$0xff]  ;;  %v2690_v14 = vld [vmem:[#allocation15 + $0x2b8] sm:$0xff] }
 0x414   : > { %v2742_v56 = vld [vmem:[#allocation15 + $0x5f8] sm:$0xff] }
 0x415   : > { %5213 = vmatpush1.bf16.msra.mxu0 %v5212_v17  ;;  %v2727_v17 = vld [vmem:[#allocation15 + $0x520] sm:$0xff] }
 0x416   : > { %5215 = vmatprep.subr.bf16.mxu0 %v5214_v54  ;;  %v2740_v54 = vld [vmem:[#allocation15 + $0x5e8] sm:$0xff]  ;;  %v5248_v20 = vpack.c.bf16 %v2731_v18, %v2727_v17  ;;  %v2689_v18 = vld [vmem:[#allocation15 + $0x2b0] sm:$0xff] }
 0x417   : > { %v5250_v21 = vpack.c.bf16 %v2740_v54, %v2736_v53  ;;  %v2693_v53 = vld [vmem:[#allocation15 + $0x2f0] sm:$0xff]  ;;  %v2698_v54 = vld [vmem:[#allocation15 + $0x338] sm:$0xff] }
 0x419   : > { %5217 = vmatpush1.bf16.msra.mxu0 %v5216_v22  ;;  %v1714_v22 = vld [vmem:[%s7054_s6] sm:$0x3] }
 0x41a   : > { %5219 = vmatprep.subr.bf16.mxu0 %v5218_v26  ;;  %v2215_v24 = vrot.slane %v1714_v22, %v6625_v43  ;;  %v2211_v25 = vrot.slane %v1714_v22, %v6621_v40 }
 0x41d   : > { %5221 = vmatpush1.bf16.msra.mxu0 %v5220_v34  ;;  %v2654_v34 = vld [vmem:[#allocation15 + $0x78] sm:$0xff] }
 0x41e   : > { %5223 = vmatprep.subr.bf16.mxu0 %v5222_v35  ;;  %v5270_v42 = vpack.c.bf16 %v2654_v34, %v2650_v32  ;;  %v2705_v32 = vld [vmem:[#allocation15 + $0x3b0] sm:$0xff] }
 0x41f   : > { %v2709_v34 = vld [vmem:[#allocation15 + $0x3f0] sm:$0xff] }
 0x421   : > { %5225 = vmatpush1.bf16.msra.mxu0 %v5224_v44 }
 0x422   : > { %5227 = vmatprep.subr.bf16.mxu0 %v5226_v45  ;;  %v6721_v45 = vsel %vm2310_vm11, 1.0, %v6246_v0 }
 0x425   : > { %5229 = vmatpush1.bf16.msra.mxu0 %v5228_v50  ;;  %v5272_v50 = vpack.c.bf16 %v2653_v47, %v2649_v46  ;;  %v2717_v46 = vld [vmem:[#allocation15 + $0x470] sm:$0xff]  ;;  %v2722_v47 = vld [vmem:[#allocation15 + $0x4b8] sm:$0xff] }
 0x426   : > { %5231 = vmatprep.subr.bf16.mxu0 %v5230_v51  ;;  %v5274_v51 = vpack.c.bf16 %v2662_v49, %v2658_v48  ;;  %v2726_v48 = vld [vmem:[#allocation15 + $0x4f8] sm:$0xff] }
 0x429   : > { %5233 = vmatpush1.bf16.msra.mxu0 %v5232_v58  ;;  %v5276_v58 = vpack.c.bf16 %v2661_v55, %v2657_v52  ;;  %v2725_v52 = vld [vmem:[#allocation15 + $0x4f0] sm:$0xff]  ;;  %v2730_v55 = vld [vmem:[#allocation15 + $0x538] sm:$0xff] }
 0x42a   : > { %5235 = vmatprep.subr.bf16.mxu0 %v5234_v59  ;;  %v5278_v59 = vpack.c.bf16 %v2670_v57, %v2666_v33  ;;  %v2734_v33 = vld [vmem:[#allocation15 + $0x578] sm:$0xff] }
 0x42d   : > { %5237 = vmatpush1.bf16.msra.mxu0 %v5236_v63  ;;  %v6735_v63 = vsel %vm2307_vm12, 1.0, %v6246_v0 }
 0x42e   : > { %5239 = vmatprep.subr.bf16.mxu0 %v5238_v1  ;;  %v5280_v1 = vpack.c.bf16 %v2669_v61, %v2665_v60  ;;  %v2733_v60 = vld [vmem:[#allocation15 + $0x570] sm:$0xff]  ;;  %v2738_v61 = vld [vmem:[#allocation15 + $0x5b8] sm:$0xff] }
 0x431   : > { %5241 = vmatpush1.bf16.msra.mxu0 %v5240_v9  ;;  %v2686_v9 = vld [vmem:[#allocation15 + $0x278] sm:$0xff] }
 0x432   : > { %5243 = vmatprep.subr.bf16.mxu0 %v5242_v10  ;;  %v5284_v10 = vpack.c.bf16 %v2677_v4, %v2673_v3  ;;  %v5286_v11 = vpack.c.bf16 %v2686_v9, %v2682_v7  ;;  %v2739_v3 = vld [vmem:[#allocation15 + $0x5e0] sm:$0xff]  ;;  %v2737_v4 = vld [vmem:[#allocation15 + $0x5b0] sm:$0xff] }
 0x433   : > { %v2741_v9 = vld [vmem:[#allocation15 + $0x5f0] sm:$0xff] }
 0x435   : > { %5245 = vmatpush1.bf16.msra.mxu0 %v5244_v15  ;;  %v2694_v15 = vld [vmem:[#allocation15 + $0x2f8] sm:$0xff] }
 0x436   : > { %5247 = vmatprep.subr.bf16.mxu0 %v5246_v16  ;;  %v5288_v16 = vpack.c.bf16 %v2685_v13, %v2681_v12  ;;  %v5290_v17 = vpack.c.bf16 %v2694_v15, %v2690_v14  ;;  %v2748_v12 = vld [vmem:[#allocation15 + $0x668] sm:$0xff]  ;;  %v2746_v13 = vld [vmem:[#allocation15 + $0x638] sm:$0xff] }
 0x437   : > { %v2750_v15 = vld [vmem:[#allocation15 + $0x678] sm:$0xff] }
 0x439   : > { %5249 = vmatpush1.bf16.msra.mxu0 %v5248_v20  ;;  %v2702_v20 = vld [vmem:[#allocation15 + $0x378] sm:$0xff] }
 0x43a   : > { %5251 = vmatprep.subr.bf16.mxu0 %v5250_v21  ;;  %v5292_v21 = vpack.c.bf16 %v2693_v53, %v2689_v18  ;;  %v5294_v22 = vpack.c.bf16 %v2702_v20, %v2698_v54  ;;  %v5318_v18 = vpack.c.bf16 %v2750_v15, %v2746_v13  ;;  %v2745_v54 = vld [vmem:[#allocation15 + $0x630] sm:$0xff] }
 0x43b   : > { %v2749_v20 = vld [vmem:[#allocation15 + $0x670] sm:$0xff] }
 0x4e3   : > { %v2202_v26 = vpop.f32.mrb[6].mxu1  ;;  %v2299_v28 = vpop.f32.mrb[10].mxu0 }
 0x4e4   : > { %v2204_v30 = vpop.f32.mrb[7].mxu1  ;;  %v2301_v31 = vpop.f32.mrb[11].mxu0  ;;  %v2304_v36 = vadd.f32 %v2299_v28, %v2211_v25  ;;  %v2218_v44 = vadd.f32 %v2211_v25, %v2202_v26  ;;  %v2701_v25 = vld [vmem:[#allocation15 + $0x370] sm:$0xff]  ;;  %v2706_v26 = vld [vmem:[#allocation15 + $0x3b8] sm:$0xff] }
 0x4e5   : > { %v2305_v35 = vadd.f32 %v2301_v31, %v2215_v24  ;;  %v2219_v38 = vadd.f32 %v2215_v24, %v2204_v30  ;;  %v2697_v24 = vld [vmem:[#allocation15 + $0x330] sm:$0xff]  ;;  %v2710_v28 = vld [vmem:[#allocation15 + $0x3f8] sm:$0xff] }
 0x4e6   : > { %v5296_v30 = vpack.c.bf16 %v2701_v25, %v2697_v24  ;;  %v5298_v31 = vpack.c.bf16 %v2710_v28, %v2706_v26  ;;  %v2756_v24 = vld [vmem:[#allocation15 + $0x6e8] sm:$0xff]  ;;  %v2754_v25 = vld [vmem:[#allocation15 + $0x6b8] sm:$0xff] }
 0x4e7   : > { %2321 = vmatprep.subr.mxu1 %v2305_v35  ;;  %v2714_v35 = vld [vmem:[#allocation15 + $0x438] sm:$0xff] }
 0x4e8   : > { %2322 = vmatpush1.msra.mxu1 %v2304_v36  ;;  %v2718_v36 = vld [vmem:[#allocation15 + $0x478] sm:$0xff] }
 0x4e9   : > { %4625 = vmatmul.mubr.msk.f32.vlgmr.msra.gmra.mrb[8].mxu1 %vm2313_vm10, %v6664_v19  ;;  %2411 = vmatprep.subr.mxu1 %v2219_v38  ;;  %v5300_v38 = vpack.c.bf16 %v2709_v34, %v2705_v32  ;;  %v2758_v28 = vld [vmem:[#allocation15 + $0x6f8] sm:$0xff] }
 0x4ea   : > { %2412 = vmatpush1.msra.mxu1 %v2218_v44  ;;  %2391 = vmatprep.mubr.f32.mxu1 %v6246_v0  ;;  %v2713_v44 = vld [vmem:[#allocation15 + $0x430] sm:$0xff]  ;;  %v5322_v32 = vpack.c.bf16 %v2758_v28, %v2754_v25  ;;  %v2519_v25 = vld [vmem:[#allocation15] sm:$0xff] }
 0x4eb   : > { %5271 = vmatprep.subr.bf16.mxu1 %v5270_v42  ;;  %v5302_v42 = vpack.c.bf16 %v2718_v36, %v2714_v35  ;;  %v5304_v49 = vpack.c.bf16 %v2717_v46, %v2713_v44  ;;  %v2753_v35 = vld [vmem:[#allocation15 + $0x6b0] sm:$0xff]  ;;  %v2764_v44 = vld [vmem:[#allocation15 + $0x768] sm:$0xff]  ;;  %v2762_v46 = vld [vmem:[#allocation15 + $0x738] sm:$0xff] }
 0x4ec   : > { %v2757_v36 = vld [vmem:[#allocation15 + $0x6f0] sm:$0xff] }
 0x4ed   : > { %4626 = vmatmul.mubr.msk.f32.gmra.mrb[10].mxu1 %vm2313_vm10, %v6672_v23 }
 0x4ee   : > { %2397 = vmatprep.mubr.f32.mxu1 %v6246_v0 }
 0x4f1   : > { %4627 = vmatmul.mubr.msk.f32.gmra.mrb[12].mxu1 %vm2313_vm10, %v6721_v45 }
 0x4f2   : > { %2475 = vmatprep.mubr.f32.mxu1 %v6246_v0 }
 0x4f5   : > { %4628 = vmatmul.mubr.msk.f32.vlgmr.msra.gmra.mrb[8].mxu1 %vm2313_vm10, %v6680_v29 }
 0x4f6   : > { %2481 = vmatprep.mubr.f32.mxu1 %v6246_v0  ;;  %5273 = vmatpush1.bf16.msra.mxu1 %v5272_v50  ;;  %v5306_v50 = vpack.c.bf16 %v2726_v48, %v2722_v47  ;;  %v2766_v48 = vld [vmem:[#allocation15 + $0x778] sm:$0xff] }
 0x4f7   : > { %5275 = vmatprep.subr.bf16.mxu1 %v5274_v51  ;;  %v2721_v51 = vld [vmem:[#allocation15 + $0x4b0] sm:$0xff] }
 0x4f8   : > { %v5308_v57 = vpack.c.bf16 %v2725_v52, %v2721_v51  ;;  %v5326_v51 = vpack.c.bf16 %v2766_v48, %v2762_v46  ;;  %v2588_v46 = vld [vmem:[#allocation15 + $0x98] sm:$0xff] }
 0x4f9   : > { %4629 = vmatmul.mubr.msk.f32.gmra.mrb[10].mxu1 %vm2313_vm10, %v6688_v37 }
 0x4fa   : > { %2487 = vmatprep.mubr.f32.mxu1 %v6246_v0  ;;  %5277 = vmatpush1.bf16.msra.mxu1 %v5276_v58  ;;  %v5310_v58 = vpack.c.bf16 %v2734_v33, %v2730_v55  ;;  %v2761_v55 = vld [vmem:[#allocation15 + $0x730] sm:$0xff] }
 0x4fb   : > { %5279 = vmatprep.subr.bf16.mxu1 %v5278_v59  ;;  %v2729_v59 = vld [vmem:[#allocation15 + $0x530] sm:$0xff] }
 0x4fc   : > { %v5312_v62 = vpack.c.bf16 %v2733_v60, %v2729_v59  ;;  %v2765_v33 = vld [vmem:[#allocation15 + $0x770] sm:$0xff]  ;;  %v2772_v59 = vld [vmem:[#allocation15 + $0x7e8] sm:$0xff]  ;;  %v2770_v60 = vld [vmem:[#allocation15 + $0x7b8] sm:$0xff] }
 0x4fd   : > { %4630 = vmatmul.mubr.msk.f32.gmra.mrb[12].mxu1 %vm2313_vm10, %v6735_v63 }
 0x4fe   : > { %5281 = vmatpush1.bf16.msra.mxu1 %v5280_v1  ;;  %v5314_v1 = vpack.c.bf16 %v2742_v56, %v2738_v61  ;;  %v2774_v56 = vld [vmem:[#allocation15 + $0x7f8] sm:$0xff] }
 0x4ff   : > { %5283 = vmatprep.subr.bf16.mxu1 %v5282_v2  ;;  %v2735_v2 = vld [vmem:[#allocation15 + $0x5a0] sm:$0xff] }
 0x500   : > { %v5252_v7 = vpack.c.bf16 %v2739_v3, %v2735_v2  ;;  %v5330_v2 = vpack.c.bf16 %v2774_v56, %v2770_v60  ;;  %v2587_v60 = vld [vmem:[#allocation15 + $0x90] sm:$0xff]  ;;  %v2528_v56 = vld [vmem:[#allocation15 + $0x108] sm:$0xff] }
 0x502   : > { %5285 = vmatpush1.bf16.msra.mxu1 %v5284_v10  ;;  %v5316_v10 = vpack.c.bf16 %v2741_v9, %v2737_v4  ;;  %5253 = vmatpush1.bf16.msra.mxu0 %v5252_v7  ;;  %v2769_v4 = vld [vmem:[#allocation15 + $0x7b0] sm:$0xff] }
 0x503   : > { %5287 = vmatprep.subr.bf16.mxu1 %v5286_v11  ;;  %v2744_v11 = vld [vmem:[#allocation15 + $0x628] sm:$0xff]  ;;  %v2773_v7 = vld [vmem:[#allocation15 + $0x7f0] sm:$0xff] }
 0x504   : > { %v5254_v14 = vpack.c.bf16 %v2748_v12, %v2744_v11  ;;  %v5332_v9 = vpack.c.bf16 %v2773_v7, %v2769_v4  ;;  %v2522_v11 = vld [vmem:[#allocation15 + $0x48] sm:$0xff]  ;;  %v2584_v12 = vld [vmem:[#allocation15 + $0x18] sm:$0xff] }
 0x506   : > { %5289 = vmatpush1.bf16.msra.mxu1 %v5288_v16  ;;  %v2743_v16 = vld [vmem:[#allocation15 + $0x620] sm:$0xff]  ;;  %5255 = vmatprep.subr.bf16.mxu0 %v5254_v14  ;;  %v2586_v14 = vld [vmem:[#allocation15 + $0x58] sm:$0xff] }
 0x507   : > { %5291 = vmatprep.subr.bf16.mxu1 %v5290_v17  ;;  %v2747_v17 = vld [vmem:[#allocation15 + $0x660] sm:$0xff]  ;;  %v5398_v15 = vpack.c.bf16 %v2586_v14, %v2584_v12 }
 0x508   : > { %v5256_v53 = vpack.c.bf16 %v2747_v17, %v2743_v16  ;;  %v2529_v14 = vld [vmem:[#allocation15 + $0x140] sm:$0xff] }
 0x50a   : > { %5293 = vmatpush1.bf16.msra.mxu1 %v5292_v21  ;;  %v5320_v21 = vpack.c.bf16 %v2749_v20, %v2745_v54  ;;  %5257 = vmatpush1.bf16.msra.mxu0 %v5256_v53 }
 0x50b   : > { %5295 = vmatprep.subr.bf16.mxu1 %v5294_v22  ;;  %v2752_v22 = vld [vmem:[#allocation15 + $0x6a8] sm:$0xff] }
 0x50c   : > { %v5258_v26 = vpack.c.bf16 %v2756_v24, %v2752_v22 }
 0x50e   : > { %5297 = vmatpush1.bf16.msra.mxu1 %v5296_v30  ;;  %v2751_v30 = vld [vmem:[#allocation15 + $0x6a0] sm:$0xff]  ;;  %5259 = vmatprep.subr.bf16.mxu0 %v5258_v26 }
 0x50f   : > { %5299 = vmatprep.subr.bf16.mxu1 %v5298_v31  ;;  %v2755_v31 = vld [vmem:[#allocation15 + $0x6e0] sm:$0xff] }
 0x510   : > { %v5260_v34 = vpack.c.bf16 %v2755_v31, %v2751_v30  ;;  %v2521_v30 = vld [vmem:[#allocation15 + $0x40] sm:$0xff]  ;;  %v2583_v31 = vld [vmem:[#allocation15 + $0x10] sm:$0xff] }
 0x512   : > { %5301 = vmatpush1.bf16.msra.mxu1 %v5300_v38  ;;  %v5324_v38 = vpack.c.bf16 %v2757_v36, %v2753_v35  ;;  %5261 = vmatpush1.bf16.msra.mxu0 %v5260_v34  ;;  %v2524_v36 = vld [vmem:[#allocation15 + $0x88] sm:$0xff] }
 0x513   : > { %5303 = vmatprep.subr.bf16.mxu1 %v5302_v42  ;;  %v2760_v42 = vld [vmem:[#allocation15 + $0x728] sm:$0xff] }
 0x514   : > { %v5262_v47 = vpack.c.bf16 %v2764_v44, %v2760_v42 }
 0x516   : > { %5305 = vmatpush1.bf16.msra.mxu1 %v5304_v49  ;;  %v2759_v49 = vld [vmem:[#allocation15 + $0x720] sm:$0xff]  ;;  %5263 = vmatprep.subr.bf16.mxu0 %v5262_v47  ;;  %v2590_v47 = vld [vmem:[#allocation15 + $0xd8] sm:$0xff] }
 0x517   : > { %5307 = vmatprep.subr.bf16.mxu1 %v5306_v50  ;;  %v2763_v50 = vld [vmem:[#allocation15 + $0x760] sm:$0xff] }
 0x518   : > { %v5264_v52 = vpack.c.bf16 %v2763_v50, %v2759_v49 }
 0x51a   : > { %5309 = vmatpush1.bf16.msra.mxu1 %v5308_v57  ;;  %v5328_v57 = vpack.c.bf16 %v2765_v33, %v2761_v55  ;;  %5265 = vmatpush1.bf16.msra.mxu0 %v5264_v52  ;;  %v2523_v55 = vld [vmem:[#allocation15 + $0x80] sm:$0xff] }
 0x51b   : > { %5311 = vmatprep.subr.bf16.mxu1 %v5310_v58  ;;  %v2768_v58 = vld [vmem:[#allocation15 + $0x7a8] sm:$0xff]  ;;  %v2525_v33 = vld [vmem:[#allocation15 + $0xc0] sm:$0xff] }
 0x51c   : > { %v5266_v61 = vpack.c.bf16 %v2772_v59, %v2768_v58  ;;  %v5402_v59 = vpack.c.bf16 %v2590_v47, %v2588_v46  ;;  %v5340_v4 = vpack.c.bf16 %v2525_v33, %v2523_v55  ;;  %v2536_v55 = vld [vmem:[#allocation15 + $0x208] sm:$0xff] }
 0x51d   : > { %v2538_v33 = vld [vmem:[#allocation15 + $0x248] sm:$0xff] }
 0x51e   : > { %5313 = vmatpush1.bf16.msra.mxu1 %v5312_v62  ;;  %v2767_v62 = vld [vmem:[#allocation15 + $0x7a0] sm:$0xff]  ;;  %5267 = vmatprep.subr.bf16.mxu0 %v5266_v61  ;;  %v2589_v61 = vld [vmem:[#allocation15 + $0xd0] sm:$0xff] }
 0x51f   : > { %5315 = vmatprep.subr.bf16.mxu1 %v5314_v1  ;;  %v2771_v1 = vld [vmem:[#allocation15 + $0x7e0] sm:$0xff]  ;;  %v5404_v7 = vpack.c.bf16 %v2589_v61, %v2587_v60 }
 0x520   : > { %v5268_v3 = vpack.c.bf16 %v2771_v1, %v2767_v62  ;;  %v2530_v1 = vld [vmem:[#allocation15 + $0x148] sm:$0xff]  ;;  %v2535_v60 = vld [vmem:[#allocation15 + $0x200] sm:$0xff] }
 0x521   : > { %v5342_v12 = vpack.c.bf16 %v2530_v1, %v2528_v56  ;;  %v2537_v61 = vld [vmem:[#allocation15 + $0x240] sm:$0xff]  ;;  %v5350_v56 = vpack.c.bf16 %v2538_v33, %v2536_v55  ;;  %v2599_v1 = vld [vmem:[#allocation15 + $0x210] sm:$0xff] }
 0x522   : > { %5317 = vmatpush1.bf16.msra.mxu1 %v5316_v10  ;;  %5269 = vmatpush1.bf16.msra.mxu0 %v5268_v3  ;;  %v2520_v10 = vld [vmem:[#allocation15 + $0x8] sm:$0xff]  ;;  %v2594_v3 = vld [vmem:[#allocation15 + $0x158] sm:$0xff]  ;;  %v2549_v55 = vld [vmem:[#allocation15 + $0x3c0] sm:$0xff] }
 0x523   : > { %5319 = vmatprep.subr.bf16.mxu1 %v5318_v18  ;;  %v5334_v13 = vpack.c.bf16 %v2522_v11, %v2520_v10  ;;  %v2527_v10 = vld [vmem:[#allocation15 + $0x100] sm:$0xff] }
 0x525   : > { %5335 = vmatprep.subr.bf16.mxu0 %v5334_v13 }
 0x526   : > { %5321 = vmatpush1.bf16.msra.mxu1 %v5320_v21 }
 0x527   : > { %5323 = vmatprep.subr.bf16.mxu1 %v5322_v32  ;;  %v2585_v32 = vld [vmem:[#allocation15 + $0x50] sm:$0xff] }
 0x528   : > { %v5400_v52 = vpack.c.bf16 %v2585_v32, %v2583_v31  ;;  %v2596_v31 = vld [vmem:[#allocation15 + $0x198] sm:$0xff] }
 0x529   : > { %v2598_v32 = vld [vmem:[#allocation15 + $0x1d8] sm:$0xff] }
 0x52a   : > { %5325 = vmatpush1.bf16.msra.mxu1 %v5324_v38  ;;  %v2526_v38 = vld [vmem:[#allocation15 + $0xc8] sm:$0xff] }
 0x52b   : > { %5327 = vmatprep.subr.bf16.mxu1 %v5326_v51  ;;  %v5336_v51 = vpack.c.bf16 %v2521_v30, %v2519_v25  ;;  %v5338_v58 = vpack.c.bf16 %v2526_v38, %v2524_v36  ;;  %v2532_v25 = vld [vmem:[#allocation15 + $0x188] sm:$0xff]  ;;  %v5344_v36 = vpack.c.bf16 %v2529_v14, %v2527_v10  ;;  %v2539_v10 = vld [vmem:[#allocation15 + $0x280] sm:$0xff]  ;;  %v2603_v14 = vld [vmem:[#allocation15 + $0x290] sm:$0xff] }
 0x52c   : > { %v2534_v30 = vld [vmem:[#allocation15 + $0x1c8] sm:$0xff] }
 0x52d   : > { %v5346_v47 = vpack.c.bf16 %v2534_v30, %v2532_v25  ;;  %v2610_v25 = vld [vmem:[#allocation15 + $0x358] sm:$0xff]  ;;  %v2543_v30 = vld [vmem:[#allocation15 + $0x300] sm:$0xff] }
 0x52e   : > { %5329 = vmatpush1.bf16.msra.mxu1 %v5328_v57 }
 0x52f   : > { %5331 = vmatprep.subr.bf16.mxu1 %v5330_v2  ;;  %v2592_v2 = vld [vmem:[#allocation15 + $0x118] sm:$0xff] }
 0x530   : > { %v5406_v13 = vpack.c.bf16 %v2594_v3, %v2592_v2  ;;  %v2601_v2 = vld [vmem:[#allocation15 + $0x250] sm:$0xff]  ;;  %v2540_v3 = vld [vmem:[#allocation15 + $0x288] sm:$0xff] }
 0x532   : > { %5333 = vmatpush1.bf16.msra.mxu1 %v5332_v9 }
 0x533   : > { %5399 = vmatprep.subr.bf16.mxu1 %v5398_v15  ;;  %v2591_v15 = vld [vmem:[#allocation15 + $0x110] sm:$0xff] }
 0x5c8   : > { %v6739_v16 = vpop.f32.mrb[8].mxu1 }
 0x5c9   : > { %v2494_v17 = vmax.f32 %v6739_v16, 0.0  ;;  %v6742_v18 = vpop.f32.mrb[9].mxu1  ;;  %v3533_v16 = vld [vmem:[#allocation17 + $0x20] sm:$0xff] }
 0x5ca   : > { %v2495_v53 = vmax.f32 %v6742_v18, 0.0  ;;  %v5352_v18 = vpack.c.bf16 %v2537_v61, %v2535_v60  ;;  %v2616_v60 = vld [vmem:[#allocation15 + $0x418] sm:$0xff] }
 0x5cb   : > { %2500 = vst [vmem:[#allocation4] sm:$0xff] %v2494_v17  ;;  %v2618_v61 = vld [vmem:[#allocation15 + $0x458] sm:$0xff] }
 0x5cc   : > { %2501 = vst [vmem:[#allocation4 + $0x8] sm:$0xff] %v2495_v53  ;;  %v2483_v54 = vpop.f32.mrb[10].mxu1 }
 0x5cd   : > { %v6749_v20 = vmax.f32 %v2483_v54, 0.0  ;;  %v2485_v21 = vpop.f32.mrb[11].mxu1 }
 0x5ce   : > { %v6751_v22 = vmax.f32 %v2485_v21, 0.0 }
 0x5cf   : > { %v2782_v50 = vrot.slane %v6749_v20, 1 }
 0x5d0   : > { %v2489_v24 = vpop.f32.mrb[12].mxu1  ;;  %v2785_v49 = vrot.slane %v6751_v22, 1 }
 0x5d1   : > { %v2498_v26 = vmax.f32 %v2489_v24, 0.0  ;;  %v2491_v28 = vpop.f32.mrb[13].mxu1  ;;  %v2593_v24 = vld [vmem:[#allocation15 + $0x150] sm:$0xff] }
 0x5d2   : > { %v2499_v34 = vmax.f32 %v2491_v28, 0.0  ;;  %v2511_v35 = vld [vmem:[#allocation4] sm:$0xfe]  ;;  %v5408_v38 = vpack.c.bf16 %v2593_v24, %v2591_v15 }
 0x5d3   : > { %2504 = vst [vmem:[#allocation4 + $0x20] sm:$0x3] %v2498_v26  ;;  %v2512_v42 = vld [vmem:[#allocation4 + $0x8] sm:$0xfe]  ;;  %v2781_v44 = vrot.slane %v2511_v35, 1  ;;  %v3049_v35 = vrot.slane %v6751_v22, 2 }
 0x5d4   : > { %2505 = vst [vmem:[#allocation4 + $0x28] sm:$0x3] %v2499_v34  ;;  %v2784_v48 = vrot.slane %v2512_v42, 1  ;;  %v2516_v9 = vld [vmem:[#allocation4 + $0x8] sm:$0xfc]  ;;  %v2605_v15 = vld [vmem:[#allocation15 + $0x2d0] sm:$0xff] }
 0x5d5   : > { %v2783_v62 = vsel %vm1985_vm8, %v2781_v44, %v2782_v50  ;;  %v3048_v28 = vrot.slane %v2516_v9, 2  ;;  %v2531_v42 = vld [vmem:[#allocation15 + $0x180] sm:$0xff]  ;;  %v2606_v9 = vld [vmem:[#allocation15 + $0x2d8] sm:$0xff] }
 0x5d6   : > { %v2786_v57 = vsel %vm1985_vm8, %v2784_v48, %v2785_v49  ;;  %v2533_v44 = vld [vmem:[#allocation15 + $0x1c0] sm:$0xff]  ;;  %v5410_v48 = vpack.c.bf16 %v2598_v32, %v2596_v31  ;;  %v2608_v24 = vld [vmem:[#allocation15 + $0x318] sm:$0xff] }
 0x5d7   : > { %2859 = vmatprep.mubr.f32.mxu0 %v2786_v57  ;;  %2936 = vmatprep.mubr.f32.mxu1 %v2786_v57  ;;  %v2600_v57 = vld [vmem:[#allocation15 + $0x218] sm:$0xff]  ;;  %v2545_v31 = vld [vmem:[#allocation15 + $0x340] sm:$0xff] }
 0x5d8   : > { %2860 = vmatmul.mubr.f32.vlgmr.msra.gmra.mrb[12].mxu0 %v2783_v62  ;;  %2937 = vmatmul.mubr.f32.vlgmr.msra.gmra.mrb[14].mxu1 %v2783_v62 }
 0x5d9   : > { %5337 = vmatpush1.bf16.msra.mxu0 %v5336_v51  ;;  %5401 = vmatpush1.bf16.msra.mxu1 %v5400_v52  ;;  %v2595_v51 = vld [vmem:[#allocation15 + $0x190] sm:$0xff] }
 0x5da   : > { %5339 = vmatprep.subr.bf16.mxu0 %v5338_v58  ;;  %5403 = vmatprep.subr.bf16.mxu1 %v5402_v59  ;;  %v2513_v11 = vld [vmem:[#allocation4 + $0x20] sm:$0x1]  ;;  %v2602_v58 = vld [vmem:[#allocation15 + $0x258] sm:$0xff] }
 0x5db   : > { %v2514_v54 = vld [vmem:[#allocation4 + $0x28] sm:$0x1]  ;;  %v2787_v21 = vrot.slane %v2513_v11, 1  ;;  %v2597_v52 = vld [vmem:[#allocation15 + $0x1d0] sm:$0xff]  ;;  %v5414_v62 = vpack.c.bf16 %v2602_v58, %v2600_v57  ;;  %v2541_v11 = vld [vmem:[#allocation15 + $0x2c0] sm:$0xff] }
 0x5dc   : > { %v2789_v26 = vrot.slane %v2514_v54, 1  ;;  %v5412_v59 = vpack.c.bf16 %v2597_v52, %v2595_v51  ;;  %v2544_v54 = vld [vmem:[#allocation15 + $0x308] sm:$0xff]  ;;  %v2547_v52 = vld [vmem:[#allocation15 + $0x380] sm:$0xff]  ;;  %v2611_v57 = vld [vmem:[#allocation15 + $0x390] sm:$0xff] }
 0x5dd   : > { %5341 = vmatpush1.bf16.msra.mxu0 %v5340_v4  ;;  %5405 = vmatpush1.bf16.msra.mxu1 %v5404_v7  ;;  %v2788_v46 = vsel %vm1985_vm8, %v2782_v50, %v2787_v21  ;;  %v5348_v50 = vpack.c.bf16 %v2533_v44, %v2531_v42  ;;  %v2542_v4 = vld [vmem:[#allocation15 + $0x2c8] sm:$0xff]  ;;  %v2604_v7 = vld [vmem:[#allocation15 + $0x298] sm:$0xff]  ;;  %v2613_v58 = vld [vmem:[#allocation15 + $0x3d0] sm:$0xff] }
 0x5de   : > { %v2790_v34 = vsel %vm1985_vm8, %v2785_v49, %v2789_v26  ;;  %5343 = vmatprep.subr.bf16.mxu0 %v5342_v12  ;;  %5407 = vmatprep.subr.bf16.mxu1 %v5406_v13  ;;  %v3050_v49 = vsel %vm2224_vm9, %v3048_v28, %v3049_v35  ;;  %v5354_v12 = vpack.c.bf16 %v2542_v4, %v2540_v3  ;;  %v2546_v21 = vld [vmem:[#allocation15 + $0x348] sm:$0xff] }
 0x5df   : > { %2865 = vmatprep.mubr.f32.mxu0 %v2790_v34  ;;  %2942 = vmatprep.mubr.f32.mxu1 %v2790_v34  ;;  %v5418_v13 = vpack.c.bf16 %v2606_v9, %v2604_v7  ;;  %v5356_v26 = vpack.c.bf16 %v2541_v11, %v2539_v10  ;;  %v5420_v28 = vpack.c.bf16 %v2605_v15, %v2603_v14  ;;  %v2548_v42 = vld [vmem:[#allocation15 + $0x388] sm:$0xff]  ;;  %v2615_v7 = vld [vmem:[#allocation15 + $0x410] sm:$0xff]  ;;  %v2620_v10 = vld [vmem:[#allocation15 + $0x498] sm:$0xff] }
 0x5e0   : > { %2866 = vmatmul.mubr.f32.gmra.mrb[14].mxu0 %v2788_v46  ;;  %2943 = vmatmul.mubr.f32.gmra.mrb[16].mxu1 %v2788_v46  ;;  %v5358_v32 = vpack.c.bf16 %v2546_v21, %v2544_v54  ;;  %v5422_v34 = vpack.c.bf16 %v2610_v25, %v2608_v24  ;;  %v2550_v44 = vld [vmem:[#allocation15 + $0x3c8] sm:$0xff]  ;;  %v2612_v46 = vld [vmem:[#allocation15 + $0x398] sm:$0xff]  ;;  %v5430_v4 = vpack.c.bf16 %v2618_v61, %v2616_v60  ;;  %v2617_v9 = vld [vmem:[#allocation15 + $0x450] sm:$0xff] }
 0x5e1   : > { %3013 = vmatprep.mubr.f32.mxu0 %v2495_v53  ;;  %3123 = vmatprep.mubr.f32.mxu1 %v3050_v49  ;;  %v5416_v53 = vpack.c.bf16 %v2601_v2, %v2599_v1  ;;  %v5362_v49 = vpack.c.bf16 %v2550_v44, %v2548_v42  ;;  %v2551_v1 = vld [vmem:[#allocation15 + $0x400] sm:$0xff]  ;;  %v2622_v11 = vld [vmem:[#allocation15 + $0x4d8] sm:$0xff]  ;;  %v2619_v24 = vld [vmem:[#allocation15 + $0x490] sm:$0xff] }
 0x5e2   : > { %5345 = vmatpush1.bf16.msra.mxu0 %v5344_v36  ;;  %5409 = vmatpush1.bf16.msra.mxu1 %v5408_v38  ;;  %v2607_v36 = vld [vmem:[#allocation15 + $0x310] sm:$0xff]  ;;  %v2553_v2 = vld [vmem:[#allocation15 + $0x440] sm:$0xff]  ;;  %v5434_v21 = vpack.c.bf16 %v2622_v11, %v2620_v10 }
 0x5e3   : > { %5347 = vmatprep.subr.bf16.mxu0 %v5346_v47  ;;  %5411 = vmatprep.subr.bf16.mxu1 %v5410_v48  ;;  %v2609_v38 = vld [vmem:[#allocation15 + $0x350] sm:$0xff]  ;;  %v2614_v47 = vld [vmem:[#allocation15 + $0x3d8] sm:$0xff]  ;;  %v5360_v48 = vpack.c.bf16 %v2545_v31, %v2543_v30  ;;  %v2555_v14 = vld [vmem:[#allocation15 + $0x480] sm:$0xff] }
 0x5e4   : > { %v5424_v51 = vpack.c.bf16 %v2609_v38, %v2607_v36  ;;  %v5426_v33 = vpack.c.bf16 %v2614_v47, %v2612_v46  ;;  %v2557_v15 = vld [vmem:[#allocation15 + $0x4c0] sm:$0xff]  ;;  %v2621_v25 = vld [vmem:[#allocation15 + $0x4d0] sm:$0xff]  ;;  %v2624_v30 = vld [vmem:[#allocation15 + $0x518] sm:$0xff] }
 0x5e5   : > { %v2626_v31 = vld [vmem:[#allocation15 + $0x558] sm:$0xff]  ;;  %v2559_v36 = vld [vmem:[#allocation15 + $0x500] sm:$0xff]  ;;  %v2623_v46 = vld [vmem:[#allocation15 + $0x510] sm:$0xff] }
 0x5e6   : > { %5349 = vmatpush1.bf16.msra.mxu0 %v5348_v50  ;;  %5413 = vmatpush1.bf16.msra.mxu1 %v5412_v59  ;;  %v2552_v50 = vld [vmem:[#allocation15 + $0x408] sm:$0xff]  ;;  %v2561_v38 = vld [vmem:[#allocation15 + $0x540] sm:$0xff]  ;;  %v5438_v44 = vpack.c.bf16 %v2626_v31, %v2624_v30  ;;  %v2625_v47 = vld [vmem:[#allocation15 + $0x550] sm:$0xff] }
 0x5e7   : > { %5351 = vmatprep.subr.bf16.mxu0 %v5350_v56  ;;  %5415 = vmatprep.subr.bf16.mxu1 %v5414_v62  ;;  %v2554_v59 = vld [vmem:[#allocation15 + $0x448] sm:$0xff]  ;;  %v5364_v56 = vpack.c.bf16 %v2549_v55, %v2547_v52  ;;  %v5428_v62 = vpack.c.bf16 %v2613_v58, %v2611_v57  ;;  %v2628_v52 = vld [vmem:[#allocation15 + $0x598] sm:$0xff]  ;;  %v2563_v57 = vld [vmem:[#allocation15 + $0x580] sm:$0xff] }
 0x5e8   : > { %v5366_v3 = vpack.c.bf16 %v2554_v59, %v2552_v50  ;;  %v2630_v55 = vld [vmem:[#allocation15 + $0x5d8] sm:$0xff]  ;;  %v2565_v58 = vld [vmem:[#allocation15 + $0x5c0] sm:$0xff]  ;;  %v2627_v60 = vld [vmem:[#allocation15 + $0x590] sm:$0xff] }
 0x5e9   : > { %v5442_v59 = vpack.c.bf16 %v2630_v55, %v2628_v52  ;;  %v2629_v61 = vld [vmem:[#allocation15 + $0x5d0] sm:$0xff] }
 0x5ea   : > { %5353 = vmatpush1.bf16.msra.mxu0 %v5352_v18  ;;  %5417 = vmatpush1.bf16.msra.mxu1 %v5416_v53  ;;  %v2556_v18 = vld [vmem:[#allocation15 + $0x488] sm:$0xff]  ;;  %v2631_v10 = vld [vmem:[#allocation15 + $0x610] sm:$0xff] }
 0x5eb   : > { %5355 = vmatprep.subr.bf16.mxu0 %v5354_v12  ;;  %5419 = vmatprep.subr.bf16.mxu1 %v5418_v13  ;;  %v2558_v53 = vld [vmem:[#allocation15 + $0x4c8] sm:$0xff]  ;;  %v5368_v12 = vpack.c.bf16 %v2553_v2, %v2551_v1  ;;  %v5432_v13 = vpack.c.bf16 %v2617_v9, %v2615_v7  ;;  %v2632_v1 = vld [vmem:[#allocation15 + $0x618] sm:$0xff]  ;;  %v2567_v7 = vld [vmem:[#allocation15 + $0x600] sm:$0xff] }
 0x5ec   : > { %v5370_v54 = vpack.c.bf16 %v2558_v53, %v2556_v18  ;;  %v2634_v2 = vld [vmem:[#allocation15 + $0x658] sm:$0xff]  ;;  %v2569_v9 = vld [vmem:[#allocation15 + $0x640] sm:$0xff]  ;;  %v2633_v11 = vld [vmem:[#allocation15 + $0x650] sm:$0xff] }
 0x5ed   : > { %v5446_v53 = vpack.c.bf16 %v2634_v2, %v2632_v1  ;;  %v2635_v30 = vld [vmem:[#allocation15 + $0x690] sm:$0xff] }
 0x5ee   : > { %5357 = vmatpush1.bf16.msra.mxu0 %v5356_v26  ;;  %5421 = vmatpush1.bf16.msra.mxu1 %v5420_v28  ;;  %v2560_v26 = vld [vmem:[#allocation15 + $0x508] sm:$0xff]  ;;  %v2637_v31 = vld [vmem:[#allocation15 + $0x6d0] sm:$0xff] }
 0x5ef   : > { %5359 = vmatprep.subr.bf16.mxu0 %v5358_v32  ;;  %5423 = vmatprep.subr.bf16.mxu1 %v5422_v34  ;;  %v2562_v28 = vld [vmem:[#allocation15 + $0x548] sm:$0xff]  ;;  %v5372_v32 = vpack.c.bf16 %v2557_v15, %v2555_v14  ;;  %v5436_v34 = vpack.c.bf16 %v2621_v25, %v2619_v24  ;;  %v2636_v14 = vld [vmem:[#allocation15 + $0x698] sm:$0xff]  ;;  %v2571_v24 = vld [vmem:[#allocation15 + $0x680] sm:$0xff] }
 0x5f0   : > { %v5374_v42 = vpack.c.bf16 %v2562_v28, %v2560_v26  ;;  %v2638_v15 = vld [vmem:[#allocation15 + $0x6d8] sm:$0xff]  ;;  %v2573_v25 = vld [vmem:[#allocation15 + $0x6c0] sm:$0xff]  ;;  %v2639_v52 = vld [vmem:[#allocation15 + $0x710] sm:$0xff] }
 0x5f1   : > { %v5450_v28 = vpack.c.bf16 %v2638_v15, %v2636_v14  ;;  %v2641_v55 = vld [vmem:[#allocation15 + $0x750] sm:$0xff] }
 0x5f2   : > { %5361 = vmatpush1.bf16.msra.mxu0 %v5360_v48  ;;  %5425 = vmatpush1.bf16.msra.mxu1 %v5424_v51  ;;  %v2564_v48 = vld [vmem:[#allocation15 + $0x588] sm:$0xff]  ;;  %v2643_v1 = vld [vmem:[#allocation15 + $0x790] sm:$0xff] }
 0x5f3   : > { %5363 = vmatprep.subr.bf16.mxu0 %v5362_v49  ;;  %5427 = vmatprep.subr.bf16.mxu1 %v5426_v33  ;;  %v2566_v51 = vld [vmem:[#allocation15 + $0x5c8] sm:$0xff]  ;;  %v5376_v49 = vpack.c.bf16 %v2561_v38, %v2559_v36  ;;  %v5440_v33 = vpack.c.bf16 %v2625_v47, %v2623_v46  ;;  %v2640_v36 = vld [vmem:[#allocation15 + $0x718] sm:$0xff]  ;;  %v2575_v46 = vld [vmem:[#allocation15 + $0x700] sm:$0xff] }
 0x5f4   : > { %v5378_v50 = vpack.c.bf16 %v2566_v51, %v2564_v48  ;;  %v2642_v38 = vld [vmem:[#allocation15 + $0x758] sm:$0xff]  ;;  %v2577_v47 = vld [vmem:[#allocation15 + $0x740] sm:$0xff]  ;;  %v2645_v2 = vld [vmem:[#allocation15 + $0x7d0] sm:$0xff] }
 0x5f5   : > { %v5454_v51 = vpack.c.bf16 %v2642_v38, %v2640_v36  ;;  %v3549_v36 = vld [vmem:[#allocation17 + $0x120] sm:$0xff] }
 0x5f6   : > { %5365 = vmatpush1.bf16.msra.mxu0 %v5364_v56  ;;  %5429 = vmatpush1.bf16.msra.mxu1 %v5428_v62  ;;  %v2568_v56 = vld [vmem:[#allocation15 + $0x608] sm:$0xff]  ;;  %v3553_v38 = vld [vmem:[#allocation17 + $0x160] sm:$0xff] }
 0x5f7   : > { %5367 = vmatprep.subr.bf16.mxu0 %v5366_v3  ;;  %5431 = vmatprep.subr.bf16.mxu1 %v5430_v4  ;;  %v2570_v62 = vld [vmem:[#allocation15 + $0x648] sm:$0xff]  ;;  %v5380_v3 = vpack.c.bf16 %v2565_v58, %v2563_v57  ;;  %v5444_v4 = vpack.c.bf16 %v2629_v61, %v2627_v60  ;;  %v2644_v57 = vld [vmem:[#allocation15 + $0x798] sm:$0xff]  ;;  %v2579_v60 = vld [vmem:[#allocation15 + $0x780] sm:$0xff] }
 0x5f8   : > { %v5382_v18 = vpack.c.bf16 %v2570_v62, %v2568_v56  ;;  %v2646_v58 = vld [vmem:[#allocation15 + $0x7d8] sm:$0xff]  ;;  %v2581_v62 = vld [vmem:[#allocation15 + $0x7c0] sm:$0xff] }
 0x5f9   : > { %v5458_v56 = vpack.c.bf16 %v2646_v58, %v2644_v57  ;;  %v3565_v57 = vld [vmem:[#allocation17 + $0x220] sm:$0xff] }
 0x5fa   : > { %5369 = vmatpush1.bf16.msra.mxu0 %v5368_v12  ;;  %5433 = vmatpush1.bf16.msra.mxu1 %v5432_v13  ;;  %v2572_v12 = vld [vmem:[#allocation15 + $0x688] sm:$0xff]  ;;  %v3569_v58 = vld [vmem:[#allocation17 + $0x260] sm:$0xff] }
 0x5fb   : > { %5371 = vmatprep.subr.bf16.mxu0 %v5370_v54  ;;  %5435 = vmatprep.subr.bf16.mxu1 %v5434_v21  ;;  %v2574_v13 = vld [vmem:[#allocation15 + $0x6c8] sm:$0xff]  ;;  %v5384_v54 = vpack.c.bf16 %v2569_v9, %v2567_v7  ;;  %v5448_v21 = vpack.c.bf16 %v2633_v11, %v2631_v10  ;;  %v5460_v7 = vpack.c.bf16 %v2645_v2, %v2643_v1  ;;  %v2518_v9 = vld [vmem:[#allocation4 + $0x28] sm:$0x3]  ;;  %v2517_v10 = vld [vmem:[#allocation4 + $0x20] sm:$0x3]  ;;  %v3046_v11 = vrot.slane %v6749_v20, 2 }
 0x5fc   : > { %v5386_v26 = vpack.c.bf16 %v2574_v13, %v2572_v12  ;;  %v3051_v13 = vrot.slane %v2517_v10, 2  ;;  %v3582_v1 = vld [vmem:[#allocation17 + $0x328] sm:$0xff] }
 0x5fd   : > { %v3586_v2 = vld [vmem:[#allocation17 + $0x368] sm:$0xff] }
 0x5fe   : > { %5373 = vmatpush1.bf16.msra.mxu0 %v5372_v32  ;;  %5437 = vmatpush1.bf16.msra.mxu1 %v5436_v34  ;;  %v2576_v32 = vld [vmem:[#allocation15 + $0x708] sm:$0xff]  ;;  %v3052_v15 = vsel %vm2224_vm9, %v3046_v11, %v3051_v13  ;;  %v3593_v13 = vld [vmem:[#allocation17 + $0x3e0] sm:$0xff] }
 0x5ff   : > { %5375 = vmatprep.subr.bf16.mxu0 %v5374_v42  ;;  %5439 = vmatprep.subr.bf16.mxu1 %v5438_v44  ;;  %v2578_v34 = vld [vmem:[#allocation15 + $0x748] sm:$0xff]  ;;  %v5388_v42 = vpack.c.bf16 %v2573_v25, %v2571_v24  ;;  %v5452_v44 = vpack.c.bf16 %v2637_v31, %v2635_v30  ;;  %v3545_v30 = vld [vmem:[#allocation17 + $0xe0] sm:$0xff] }
 0x600   : > { %v5390_v48 = vpack.c.bf16 %v2578_v34, %v2576_v32  ;;  %v3550_v32 = vld [vmem:[#allocation17 + $0x128] sm:$0xff] }
 0x601   : > { %v3554_v34 = vld [vmem:[#allocation17 + $0x168] sm:$0xff] }
 0x602   : > { %5377 = vmatpush1.bf16.msra.mxu0 %v5376_v49  ;;  %5441 = vmatpush1.bf16.msra.mxu1 %v5440_v33  ;;  %v2580_v49 = vld [vmem:[#allocation15 + $0x788] sm:$0xff] }
 0x603   : > { %5379 = vmatprep.subr.bf16.mxu0 %v5378_v50  ;;  %5443 = vmatprep.subr.bf16.mxu1 %v5442_v59  ;;  %v2582_v33 = vld [vmem:[#allocation15 + $0x7c8] sm:$0xff]  ;;  %v5392_v50 = vpack.c.bf16 %v2577_v47, %v2575_v46  ;;  %v5456_v59 = vpack.c.bf16 %v2641_v55, %v2639_v52 }
 0x604   : > { %v5394_v61 = vpack.c.bf16 %v2582_v33, %v2580_v49  ;;  %v3562_v46 = vld [vmem:[#allocation17 + $0x1e8] sm:$0xff] }
 0x605   : > { %v3566_v52 = vld [vmem:[#allocation17 + $0x228] sm:$0xff] }
 0x606   : > { %5381 = vmatpush1.bf16.msra.mxu0 %v5380_v3  ;;  %5445 = vmatpush1.bf16.msra.mxu1 %v5444_v4  ;;  %v2515_v3 = vld [vmem:[#allocation4] sm:$0xfc]  ;;  %v5396_v4 = vpack.c.bf16 %v2581_v62, %v2579_v60  ;;  %v3570_v55 = vld [vmem:[#allocation17 + $0x268] sm:$0xff]  ;;  %v5488_v60 = vpack.c.bf16 %v3569_v58, %v3565_v57  ;;  %v3577_v62 = vld [vmem:[#allocation17 + $0x2e0] sm:$0xff] }
 0x607   : > { %5383 = vmatprep.subr.bf16.mxu0 %v5382_v18  ;;  %5447 = vmatprep.subr.bf16.mxu1 %v5446_v53  ;;  %v3045_v18 = vrot.slane %v2515_v3, 2  ;;  %v3053_v53 = vrot.slane %v2518_v9, 2  ;;  %v5486_v33 = vpack.c.bf16 %v3570_v55, %v3566_v52  ;;  %v3585_v9 = vld [vmem:[#allocation17 + $0x360] sm:$0xff] }
 0x609   : > { %v3047_v12 = vsel %vm2224_vm9, %v3045_v18, %v3046_v11  ;;  %v3054_v14 = vsel %vm2224_vm9, %v3049_v35, %v3053_v53  ;;  %v3590_v18 = vld [vmem:[#allocation17 + $0x3a8] sm:$0xff] }
 0x60a   : > { %5385 = vmatpush1.bf16.msra.mxu0 %v5384_v54  ;;  %5449 = vmatpush1.bf16.msra.mxu1 %v5448_v21  ;;  %v3534_v54 = vld [vmem:[#allocation17 + $0x28] sm:$0xff] }
 0x60b   : > { %5387 = vmatprep.subr.bf16.mxu0 %v5386_v26  ;;  %5451 = vmatprep.subr.bf16.mxu1 %v5450_v28  ;;  %v3538_v21 = vld [vmem:[#allocation17 + $0x68] sm:$0xff] }
 0x60c   : > { %v5470_v24 = vpack.c.bf16 %v3538_v21, %v3534_v54  ;;  %v3542_v26 = vld [vmem:[#allocation17 + $0xa8] sm:$0xff] }
 0x60d   : > { %v3546_v28 = vld [vmem:[#allocation17 + $0xe8] sm:$0xff] }
 0x60e   : > { %5389 = vmatpush1.bf16.msra.mxu0 %v5388_v42  ;;  %5453 = vmatpush1.bf16.msra.mxu1 %v5452_v44  ;;  %v5474_v35 = vpack.c.bf16 %v3546_v28, %v3542_v26  ;;  %v5480_v42 = vpack.c.bf16 %v3553_v38, %v3549_v36  ;;  %v3558_v44 = vld [vmem:[#allocation17 + $0x1a8] sm:$0xff]  ;;  %v3617_v36 = vld [vmem:[#allocation17 + $0x560] sm:$0xff] }
 0x60f   : > { %5391 = vmatprep.subr.bf16.mxu0 %v5390_v48  ;;  %5455 = vmatprep.subr.bf16.mxu1 %v5454_v51  ;;  %v5482_v47 = vpack.c.bf16 %v3562_v46, %v3558_v44  ;;  %v3557_v48 = vld [vmem:[#allocation17 + $0x1a0] sm:$0xff]  ;;  %v3594_v53 = vld [vmem:[#allocation17 + $0x3e8] sm:$0xff] }
 0x610   : > { %v3561_v51 = vld [vmem:[#allocation17 + $0x1e0] sm:$0xff]  ;;  %v5498_v11 = vpack.c.bf16 %v3594_v53, %v3590_v18  ;;  %v3622_v38 = vld [vmem:[#allocation17 + $0x5a8] sm:$0xff] }
 0x611   : > { %v5484_v49 = vpack.c.bf16 %v3561_v51, %v3557_v48 }
 0x612   : > { %5393 = vmatpush1.bf16.msra.mxu0 %v5392_v50  ;;  %5457 = vmatpush1.bf16.msra.mxu1 %v5456_v59  ;;  %v3574_v50 = vld [vmem:[#allocation17 + $0x2a8] sm:$0xff] }
 0x613   : > { %5395 = vmatprep.subr.bf16.mxu0 %v5394_v61  ;;  %5459 = vmatprep.subr.bf16.mxu1 %v5458_v56  ;;  %v3578_v59 = vld [vmem:[#allocation17 + $0x2e8] sm:$0xff]  ;;  %v3573_v56 = vld [vmem:[#allocation17 + $0x2a0] sm:$0xff] }
 0x614   : > { %v5490_v61 = vpack.c.bf16 %v3578_v59, %v3574_v50  ;;  %v5492_v3 = vpack.c.bf16 %v3577_v62, %v3573_v56 }
 0x616   : > { %5397 = vmatpush1.bf16.msra.mxu0 %v5396_v4  ;;  %5461 = vmatpush1.bf16.msra.mxu1 %v5460_v7  ;;  %v5494_v4 = vpack.c.bf16 %v3586_v2, %v3582_v1  ;;  %v3581_v7 = vld [vmem:[#allocation17 + $0x320] sm:$0xff] }
 0x617   : > { %5471 = vmatprep.subr.bf16.mxu1 %v5470_v24  ;;  %v5496_v10 = vpack.c.bf16 %v3585_v9, %v3581_v7  ;;  %v3597_v24 = vld [vmem:[#allocation17 + $0x420] sm:$0xff] }
 0x619   : > { %3014 = vmatmul.mubr.f32.vlgmr.msra.gmra.mrb[12].mxu0 %v2494_v17  ;;  %3124 = vmatmul.mubr.f32.vlgmr.msra.gmra.mrb[14].mxu1 %v3047_v12  ;;  %v3537_v17 = vld [vmem:[#allocation17 + $0x60] sm:$0xff] }
 0x61a   : > { %3019 = vmatprep.mubr.f32.mxu0 %v6751_v22  ;;  %3129 = vmatprep.mubr.f32.mxu1 %v3054_v14  ;;  %v5472_v25 = vpack.c.bf16 %v3537_v17, %v3533_v16  ;;  %v3541_v22 = vld [vmem:[#allocation17 + $0xa0] sm:$0xff]  ;;  %v3598_v14 = vld [vmem:[#allocation17 + $0x428] sm:$0xff] }
 0x61b   : > { %v5476_v31 = vpack.c.bf16 %v3545_v30, %v3541_v22  ;;  %v3589_v12 = vld [vmem:[#allocation17 + $0x3a0] sm:$0xff]  ;;  %v3606_v17 = vld [vmem:[#allocation17 + $0x4a8] sm:$0xff] }
 0x61c   : > { %5473 = vmatpush1.bf16.msra.mxu1 %v5472_v25  ;;  %v5500_v54 = vpack.c.bf16 %v3593_v13, %v3589_v12  ;;  %v3601_v16 = vld [vmem:[#allocation17 + $0x460] sm:$0xff]  ;;  %v3610_v25 = vld [vmem:[#allocation17 + $0x4e8] sm:$0xff]  ;;  %v6785_v13 = vadd.s32 24, %v6618_v39 }
 0x61d   : > { %3020 = vmatmul.mubr.f32.gmra.mrb[14].mxu0 %v6749_v20  ;;  %3130 = vmatmul.mubr.f32.gmra.mrb[16].mxu1 %v3052_v15  ;;  %v5478_v20 = vpack.c.bf16 %v3554_v34, %v3550_v32  ;;  %v3602_v15 = vld [vmem:[#allocation17 + $0x468] sm:$0xff]  ;;  %v5504_v26 = vpack.c.bf16 %v3601_v16, %v3597_v24  ;;  %v5506_v28 = vpack.c.bf16 %v3610_v25, %v3606_v17  ;;  %v3609_v22 = vld [vmem:[#allocation17 + $0x4e0] sm:$0xff]  ;;  %v3548_v24 = vld [vmem:[#allocation17 + $0xf8] sm:$0xff] }
 0x61e   : > { %3230 = vmatprep.mubr.f32.mxu0 %v6246_v0  ;;  %5475 = vmatprep.subr.bf16.mxu1 %v5474_v35  ;;  %v5502_v21 = vpack.c.bf16 %v3602_v15, %v3598_v14  ;;  %v3605_v35 = vld [vmem:[#allocation17 + $0x4a0] sm:$0xff]  ;;  %v3614_v30 = vld [vmem:[#allocation17 + $0x528] sm:$0xff]  ;;  %vm3148_vm13 = vcmp.eq.s32.totalorder %v6785_v13, %v6654_v8  ;;  %v6793_v14 = vadd.s32 32, %v6618_v39  ;;  %v3535_v15 = vld [vmem:[#allocation17 + $0x30] sm:$0xff]  ;;  %vm3142_vm15 = vcmp.eq.s32.totalorder %v6785_v13, %v6648_v6 }
 0x61f   : > { %v5508_v32 = vpack.c.bf16 %v3609_v22, %v3605_v35  ;;  %v3543_v17 = vld [vmem:[#allocation17 + $0xb0] sm:$0xff] }
 0x620   : > { %5477 = vmatpush1.bf16.msra.mxu1 %v5476_v31  ;;  %v3618_v31 = vld [vmem:[#allocation17 + $0x568] sm:$0xff]  ;;  %vm3149_vm14 = vcmp.eq.s32.totalorder %v6793_v14, %v6654_v8  ;;  %v3547_v25 = vld [vmem:[#allocation17 + $0xf0] sm:$0xff]  ;;  %v3556_v8 = vld [vmem:[#allocation17 + $0x178] sm:$0xff]  ;;  %vm3143_vm1 = vcmp.eq.s32.totalorder %v6793_v14, %v6648_v6 }
 0x621   : > { %5479 = vmatprep.subr.bf16.mxu1 %v5478_v20  ;;  %v5510_v34 = vpack.c.bf16 %v3618_v31, %v3614_v30  ;;  %v3613_v20 = vld [vmem:[#allocation17 + $0x520] sm:$0xff]  ;;  %v3551_v22 = vld [vmem:[#allocation17 + $0x130] sm:$0xff]  ;;  %v3560_v31 = vld [vmem:[#allocation17 + $0x1b8] sm:$0xff] }
 0x622   : > { %v5512_v44 = vpack.c.bf16 %v3617_v36, %v3613_v20  ;;  %v3555_v30 = vld [vmem:[#allocation17 + $0x170] sm:$0xff] }
 0x623   : > { %v3559_v36 = vld [vmem:[#allocation17 + $0x1b0] sm:$0xff] }
 0x624   : > { %5481 = vmatpush1.bf16.msra.mxu1 %v5480_v42  ;;  %v3626_v42 = vld [vmem:[#allocation17 + $0x5e8] sm:$0xff] }
 0x625   : > { %5483 = vmatprep.subr.bf16.mxu1 %v5482_v47  ;;  %v5514_v46 = vpack.c.bf16 %v3626_v42, %v3622_v38  ;;  %v2506_v47 = vld [vmem:[%s7087_s26] sm:$0x3]  ;;  %v3563_v38 = vld [vmem:[#allocation17 + $0x1f0] sm:$0xff]  ;;  %v3568_v42 = vld [vmem:[#allocation17 + $0x238] sm:$0xff]  ;;  %s6248_s26 = smov [#allocation18]  }
 0x626   : > { %v3030_v52 = vrot.slane %v2506_v47, %v6621_v40  ;;  %s6161_s12 = sshll.u32 %s6248_s26, 4  ;;  %s6162_s12 = int_to_ptr.vmem [resolvable:$false] %s6161_s12 }
 0x627   : > { %s6163_s14 = scalar_lea.vmem %s6162_s12, 4096  ;;  %p6164_p1 = scmp.lt.s32.totalorder %s7002_s24, %s6162_s12 }
 0x628   : > { %5485 = vmatpush1.bf16.msra.mxu1 %v5484_v49  ;;  %p6165_p3 = scmp.lt.s32.totalorder %s6163_s14, %s6157_s23 }
 0x629   : > { %5487 = vmatprep.subr.bf16.mxu1 %v5486_v33  ;;  %v3034_v33 = vrot.slane %v2506_v47, %v6625_v43  ;;  %v5548_v47 = vpack.c.bf16 %v3563_v38, %v3559_v36  ;;  %v3625_v36 = vld [vmem:[#allocation17 + $0x5e0] sm:$0xff]  ;;  %v3623_v38 = vld [vmem:[#allocation17 + $0x5b0] sm:$0xff] }
 0x62a   : > { %p6166_p2 = por %p6165_p3, %p6164_p1 }
 0x62c   : > { %5489 = vmatpush1.bf16.msra.mxu1 %v5488_v60  ;;  %p6167_p0 = pnand %p6166_p2, %p6160_p13 }
 0x62d   : > { %5491 = vmatprep.subr.bf16.mxu1 %v5490_v61 }
 0x630   : > { %5493 = vmatpush1.bf16.msra.mxu1 %v5492_v3 }
 0x631   : > { %5495 = vmatprep.subr.bf16.mxu1 %v5494_v4 }
 0x634   : > { %5497 = vmatpush1.bf16.msra.mxu1 %v5496_v10  ;;  %v3536_v10 = vld [vmem:[#allocation17 + $0x38] sm:$0xff] }
 0x635   : > { %5499 = vmatprep.subr.bf16.mxu1 %v5498_v11  ;;  %v3540_v11 = vld [vmem:[#allocation17 + $0x78] sm:$0xff] }
 0x636   : > { %v5534_v12 = vpack.c.bf16 %v3540_v11, %v3536_v10  ;;  %v3600_v10 = vld [vmem:[#allocation17 + $0x438] sm:$0xff] }
 0x637   : > { %v3604_v11 = vld [vmem:[#allocation17 + $0x478] sm:$0xff] }
 0x638   : > { %5501 = vmatpush1.bf16.msra.mxu1 %v5500_v54  ;;  %v3539_v54 = vld [vmem:[#allocation17 + $0x70] sm:$0xff] }
 0x639   : > { %5503 = vmatprep.subr.bf16.mxu1 %v5502_v21  ;;  %v3544_v21 = vld [vmem:[#allocation17 + $0xb8] sm:$0xff] }
 0x63a   : > { %v5538_v16 = vpack.c.bf16 %v3548_v24, %v3544_v21  ;;  %v3612_v21 = vld [vmem:[#allocation17 + $0x4f8] sm:$0xff] }
 0x63c   : > { %5505 = vmatpush1.bf16.msra.mxu1 %v5504_v26  ;;  %v3552_v26 = vld [vmem:[#allocation17 + $0x138] sm:$0xff] }
 0x63d   : > { %5507 = vmatprep.subr.bf16.mxu1 %v5506_v28  ;;  %v5540_v28 = vpack.c.bf16 %v3547_v25, %v3543_v17  ;;  %v5542_v35 = vpack.c.bf16 %v3556_v8, %v3552_v26  ;;  %v3611_v17 = vld [vmem:[#allocation17 + $0x4f0] sm:$0xff]  ;;  %v3616_v25 = vld [vmem:[#allocation17 + $0x538] sm:$0xff] }
 0x63e   : > { %v3620_v26 = vld [vmem:[#allocation17 + $0x578] sm:$0xff] }
 0x640   : > { %5509 = vmatpush1.bf16.msra.mxu1 %v5508_v32  ;;  %v3564_v32 = vld [vmem:[#allocation17 + $0x1f8] sm:$0xff] }
 0x641   : > { %5511 = vmatprep.subr.bf16.mxu1 %v5510_v34  ;;  %v5544_v34 = vpack.c.bf16 %v3555_v30, %v3551_v22  ;;  %v5546_v20 = vpack.c.bf16 %v3564_v32, %v3560_v31  ;;  %v3619_v22 = vld [vmem:[#allocation17 + $0x570] sm:$0xff]  ;;  %v3624_v30 = vld [vmem:[#allocation17 + $0x5b8] sm:$0xff] }
 0x642   : > { %v3628_v31 = vld [vmem:[#allocation17 + $0x5f8] sm:$0xff] }
 0x644   : > { %5513 = vmatpush1.bf16.msra.mxu1 %v5512_v44  ;;  %v3572_v44 = vld [vmem:[#allocation17 + $0x278] sm:$0xff] }
 0x645   : > { %5515 = vmatprep.subr.bf16.mxu1 %v5514_v46  ;;  %v6818_v46 = vsel %vm3142_vm15, 1.0, %v6246_v0 }
 0x6ec   : > { %v3015_v48 = vpop.f32.mrb[12].mxu0  ;;  %v3125_v51 = vpop.f32.mrb[14].mxu1 }
 0x6ed   : > { %v3017_v55 = vpop.f32.mrb[13].mxu0  ;;  %v3127_v49 = vpop.f32.mrb[15].mxu1  ;;  %v3037_v50 = vadd.f32 %v3030_v52, %v3015_v48  ;;  %v3136_v59 = vadd.f32 %v3125_v51, %v3030_v52  ;;  %v5550_v48 = vpack.c.bf16 %v3572_v44, %v3568_v42  ;;  %v3567_v51 = vld [vmem:[#allocation17 + $0x230] sm:$0xff] }
 0x6ee   : > { %v3038_v1 = vadd.f32 %v3034_v33, %v3017_v55  ;;  %v3137_v2 = vadd.f32 %v3127_v49, %v3034_v33  ;;  %v3576_v55 = vld [vmem:[#allocation17 + $0x2b8] sm:$0xff]  ;;  %v3627_v44 = vld [vmem:[#allocation17 + $0x5f0] sm:$0xff] }
 0x6ef   : > { %v3580_v49 = vld [vmem:[#allocation17 + $0x2f8] sm:$0xff] }
 0x6f0   : > { %v3021_v57 = vpop.f32.mrb[14].mxu0  ;;  %v3131_v58 = vpop.f32.mrb[16].mxu1 }
 0x6f1   : > { %v3039_v60 = vadd.f32 %v3030_v52, %v3021_v57  ;;  %v3138_v61 = vadd.f32 %v3131_v58, %v3030_v52  ;;  %v3023_v56 = vpop.f32.mrb[15].mxu0  ;;  %v3133_v62 = vpop.f32.mrb[17].mxu1  ;;  %v3571_v52 = vld [vmem:[#allocation17 + $0x270] sm:$0xff]  ;;  %v5554_v58 = vpack.c.bf16 %v3580_v49, %v3576_v55  ;;  %v3636_v49 = vld [vmem:[#allocation17 + $0x678] sm:$0xff] }
 0x6f2   : > { %v3040_v3 = vadd.f32 %v3034_v33, %v3023_v56  ;;  %v3139_v4 = vadd.f32 %v3133_v62, %v3034_v33  ;;  %v6826_v33 = vsel %vm3143_vm1, 1.0, %v6246_v0  ;;  %v5552_v57 = vpack.c.bf16 %v3571_v52, %v3567_v51  ;;  %v3634_v51 = vld [vmem:[#allocation17 + $0x668] sm:$0xff]  ;;  %v3632_v52 = vld [vmem:[#allocation17 + $0x638] sm:$0xff] }
 0x6f3   : > { %v5468_v7 = vpack.c.bf16 %v3039_v60, %v3037_v50  ;;  %v5464_v9 = vpack.c.bf16 %v3138_v61, %v3136_v59  ;;  %v3575_v50 = vld [vmem:[#allocation17 + $0x2b0] sm:$0xff]  ;;  %v3584_v60 = vld [vmem:[#allocation17 + $0x338] sm:$0xff] }
 0x6f4   : > { %v5466_v18 = vpack.c.bf16 %v3040_v3, %v3038_v1  ;;  %v5462_v53 = vpack.c.bf16 %v3139_v4, %v3137_v2  ;;  %v3579_v59 = vld [vmem:[#allocation17 + $0x2f0] sm:$0xff]  ;;  %v3588_v61 = vld [vmem:[#allocation17 + $0x378] sm:$0xff] }
 0x6f5   : > { %v5556_v56 = vpack.c.bf16 %v3579_v59, %v3575_v50  ;;  %v5558_v62 = vpack.c.bf16 %v3588_v61, %v3584_v60  ;;  %v3583_v1 = vld [vmem:[#allocation17 + $0x330] sm:$0xff]  ;;  %v3592_v3 = vld [vmem:[#allocation17 + $0x3b8] sm:$0xff]  ;;  %v5582_v50 = vpack.c.bf16 %v3636_v49, %v3632_v52 }
 0x6f6   : > { %5463 = vmatprep.subr.bf16.mxu0 %v5462_v53  ;;  %v3587_v2 = vld [vmem:[#allocation17 + $0x370] sm:$0xff]  ;;  %v3596_v4 = vld [vmem:[#allocation17 + $0x3f8] sm:$0xff] }
 0x6f7   : > { %5465 = vmatpush1.bf16.msra.mxu0 %v5464_v9  ;;  %v5562_v9 = vpack.c.bf16 %v3596_v4, %v3592_v3  ;;  %v3595_v53 = vld [vmem:[#allocation17 + $0x3f0] sm:$0xff]  ;;  %v3644_v4 = vld [vmem:[#allocation17 + $0x6f8] sm:$0xff] }
 0x6f8   : > { %5467 = vmatprep.subr.bf16.mxu0 %v5466_v18  ;;  %v3591_v18 = vld [vmem:[#allocation17 + $0x3b0] sm:$0xff] }
 0x6f9   : > { %v3631_v60 = vld [vmem:[#allocation17 + $0x630] sm:$0xff] }
 0x6fa   : > { %4635 = vmatmul.mubr.msk.f32.vlgmr.msra.gmra.mrb[16].mxu0 %vm543_vm0, %v6664_v19  ;;  %v4633_v19 = vsel %vm3148_vm13, 1.0, %v6246_v0  ;;  %v3635_v61 = vld [vmem:[#allocation17 + $0x670] sm:$0xff] }
 0x6fb   : > { %5469 = vmatpush1.bf16.msra.mxu0 %v5468_v7  ;;  %3236 = vmatprep.mubr.f32.mxu0 %v6246_v0  ;;  %v5560_v7 = vpack.c.bf16 %v3587_v2, %v3583_v1  ;;  %v3642_v1 = vld [vmem:[#allocation17 + $0x6e8] sm:$0xff]  ;;  %v3640_v2 = vld [vmem:[#allocation17 + $0x6b8] sm:$0xff] }
 0x6fc   : > { %5535 = vmatprep.subr.bf16.mxu0 %v5534_v12  ;;  %v5564_v12 = vpack.c.bf16 %v3595_v53, %v3591_v18  ;;  %v5586_v18 = vpack.c.bf16 %v3644_v4, %v3640_v2  ;;  %v3405_v4 = vld [vmem:[#allocation17] sm:$0xff] }
 0x6fe   : > { %4636 = vmatmul.mubr.msk.f32.gmra.mrb[18].mxu0 %vm543_vm0, %v6672_v23  ;;  %v4634_v23 = vsel %vm3149_vm14, 1.0, %v6246_v0 }
 0x6ff   : > { %3242 = vmatprep.mubr.f32.mxu0 %v6246_v0 }
 0x702   : > { %4637 = vmatmul.mubr.msk.f32.gmra.mrb[20].mxu0 %vm543_vm0, %v6721_v45  ;;  %v5536_v45 = vpack.c.bf16 %v3539_v54, %v3535_v15  ;;  %v3603_v15 = vld [vmem:[#allocation17 + $0x470] sm:$0xff]  ;;  %v3608_v54 = vld [vmem:[#allocation17 + $0x4b8] sm:$0xff] }
 0x703   : > { %3248 = vmatprep.mubr.f32.mxu0 %v6246_v0 }
 0x706   : > { %4638 = vmatmul.mubr.msk.f32.gmra.mrb[22].mxu0 %vm543_vm0, %v4633_v19  ;;  %v5566_v19 = vpack.c.bf16 %v3604_v11, %v3600_v10  ;;  %v3639_v10 = vld [vmem:[#allocation17 + $0x6b0] sm:$0xff] }
 0x707   : > { %3254 = vmatprep.mubr.f32.mxu0 %v6246_v0  ;;  %v3643_v11 = vld [vmem:[#allocation17 + $0x6f0] sm:$0xff] }
 0x70a   : > { %4639 = vmatmul.mubr.msk.f32.gmra.mrb[24].mxu0 %vm543_vm0, %v4634_v23  ;;  %v3599_v23 = vld [vmem:[#allocation17 + $0x430] sm:$0xff] }
 0x70b   : > { %3337 = vmatprep.mubr.f32.mxu0 %v6246_v0  ;;  %v5568_v24 = vpack.c.bf16 %v3603_v15, %v3599_v23  ;;  %v3650_v23 = vld [vmem:[#allocation17 + $0x768] sm:$0xff]  ;;  %v3648_v15 = vld [vmem:[#allocation17 + $0x738] sm:$0xff] }
 0x70e   : > { %4640 = vmatmul.mubr.msk.f32.vlgmr.msra.gmra.mrb[16].mxu0 %vm543_vm0, %v6680_v29 }
 0x70f   : > { %3343 = vmatprep.mubr.f32.mxu0 %v6246_v0  ;;  %5537 = vmatpush1.bf16.msra.mxu0 %v5536_v45  ;;  %v5570_v45 = vpack.c.bf16 %v3612_v21, %v3608_v54  ;;  %v3652_v21 = vld [vmem:[#allocation17 + $0x778] sm:$0xff] }
 0x710   : > { %5539 = vmatprep.subr.bf16.mxu0 %v5538_v16  ;;  %v3607_v16 = vld [vmem:[#allocation17 + $0x4b0] sm:$0xff] }
 0x711   : > { %v5572_v8 = vpack.c.bf16 %v3611_v17, %v3607_v16  ;;  %v5590_v16 = vpack.c.bf16 %v3652_v21, %v3648_v15 }
 0x712   : > { %4641 = vmatmul.mubr.msk.f32.gmra.mrb[18].mxu0 %vm543_vm0, %v6688_v37 }
 0x713   : > { %3349 = vmatprep.mubr.f32.mxu0 %v6246_v0  ;;  %5541 = vmatpush1.bf16.msra.mxu0 %v5540_v28  ;;  %v5574_v28 = vpack.c.bf16 %v3620_v26, %v3616_v25  ;;  %v3647_v25 = vld [vmem:[#allocation17 + $0x730] sm:$0xff] }
 0x714   : > { %5543 = vmatprep.subr.bf16.mxu0 %v5542_v35  ;;  %v3615_v35 = vld [vmem:[#allocation17 + $0x530] sm:$0xff] }
 0x715   : > { %v5576_v32 = vpack.c.bf16 %v3619_v22, %v3615_v35  ;;  %v3651_v26 = vld [vmem:[#allocation17 + $0x770] sm:$0xff]  ;;  %v3658_v35 = vld [vmem:[#allocation17 + $0x7e8] sm:$0xff]  ;;  %v3656_v22 = vld [vmem:[#allocation17 + $0x7b8] sm:$0xff] }
 0x716   : > { %4642 = vmatmul.mubr.msk.f32.gmra.mrb[20].mxu0 %vm543_vm0, %v6735_v63 }
 0x717   : > { %3355 = vmatprep.mubr.f32.mxu0 %v6246_v0  ;;  %5545 = vmatpush1.bf16.msra.mxu0 %v5544_v34  ;;  %v5578_v34 = vpack.c.bf16 %v3628_v31, %v3624_v30  ;;  %v3660_v31 = vld [vmem:[#allocation17 + $0x7f8] sm:$0xff] }
 0x718   : > { %5547 = vmatprep.subr.bf16.mxu0 %v5546_v20  ;;  %v3621_v20 = vld [vmem:[#allocation17 + $0x5a0] sm:$0xff] }
 0x719   : > { %v5516_v42 = vpack.c.bf16 %v3625_v36, %v3621_v20  ;;  %v5594_v20 = vpack.c.bf16 %v3660_v31, %v3656_v22  ;;  %v3411_v22 = vld [vmem:[#allocation17 + $0xc0] sm:$0xff] }
 0x71a   : > { %4643 = vmatmul.mubr.msk.f32.gmra.mrb[22].mxu0 %vm543_vm0, %v6818_v46 }
 0x71b   : > { %3361 = vmatprep.mubr.f32.mxu0 %v6246_v0  ;;  %5549 = vmatpush1.bf16.msra.mxu0 %v5548_v47  ;;  %v5580_v47 = vpack.c.bf16 %v3627_v44, %v3623_v38  ;;  %v3655_v38 = vld [vmem:[#allocation17 + $0x7b0] sm:$0xff] }
 0x71c   : > { %5551 = vmatprep.subr.bf16.mxu0 %v5550_v48  ;;  %5517 = vmatpush1.bf16.msra.mxu1 %v5516_v42  ;;  %v3630_v48 = vld [vmem:[#allocation17 + $0x628] sm:$0xff]  ;;  %v3659_v42 = vld [vmem:[#allocation17 + $0x7f0] sm:$0xff] }
 0x71d   : > { %v5518_v55 = vpack.c.bf16 %v3634_v51, %v3630_v48  ;;  %v5596_v44 = vpack.c.bf16 %v3659_v42, %v3655_v38  ;;  %v3408_v48 = vld [vmem:[#allocation17 + $0x48] sm:$0xff]  ;;  %v3470_v51 = vld [vmem:[#allocation17 + $0x18] sm:$0xff] }
 0x71e   : > { %4644 = vmatmul.mubr.msk.f32.gmra.mrb[24].mxu0 %vm543_vm0, %v6826_v33 }
 0x71f   : > { %5553 = vmatpush1.bf16.msra.mxu0 %v5552_v57  ;;  %v3629_v57 = vld [vmem:[#allocation17 + $0x620] sm:$0xff]  ;;  %5519 = vmatprep.subr.bf16.mxu1 %v5518_v55  ;;  %v3472_v55 = vld [vmem:[#allocation17 + $0x58] sm:$0xff] }
 0x720   : > { %5555 = vmatprep.subr.bf16.mxu0 %v5554_v58  ;;  %v3633_v58 = vld [vmem:[#allocation17 + $0x660] sm:$0xff]  ;;  %v5662_v49 = vpack.c.bf16 %v3472_v55, %v3470_v51  ;;  %v3416_v51 = vld [vmem:[#allocation17 + $0x148] sm:$0xff]  ;;  %v3480_v55 = vld [vmem:[#allocation17 + $0x158] sm:$0xff] }
 0x721   : > { %v5520_v59 = vpack.c.bf16 %v3633_v58, %v3629_v57 }
 0x723   : > { %5557 = vmatpush1.bf16.msra.mxu0 %v5556_v56  ;;  %v5584_v56 = vpack.c.bf16 %v3635_v61, %v3631_v60  ;;  %5521 = vmatpush1.bf16.msra.mxu1 %v5520_v59 }
 0x724   : > { %5559 = vmatprep.subr.bf16.mxu0 %v5558_v62  ;;  %v3638_v62 = vld [vmem:[#allocation17 + $0x6a8] sm:$0xff] }
 0x725   : > { %v5522_v3 = vpack.c.bf16 %v3642_v1, %v3638_v62 }
 0x727   : > { %5561 = vmatpush1.bf16.msra.mxu0 %v5560_v7  ;;  %v3637_v7 = vld [vmem:[#allocation17 + $0x6a0] sm:$0xff]  ;;  %5523 = vmatprep.subr.bf16.mxu1 %v5522_v3 }
 0x728   : > { %5563 = vmatprep.subr.bf16.mxu0 %v5562_v9  ;;  %v3641_v9 = vld [vmem:[#allocation17 + $0x6e0] sm:$0xff] }
 0x729   : > { %v5524_v53 = vpack.c.bf16 %v3641_v9, %v3637_v7  ;;  %v3407_v7 = vld [vmem:[#allocation17 + $0x40] sm:$0xff] }
 0x72a   : > { %v5600_v21 = vpack.c.bf16 %v3407_v7, %v3405_v4  ;;  %v3413_v4 = vld [vmem:[#allocation17 + $0x100] sm:$0xff] }
 0x72b   : > { %5565 = vmatpush1.bf16.msra.mxu0 %v5564_v12  ;;  %v5588_v12 = vpack.c.bf16 %v3643_v11, %v3639_v10  ;;  %5525 = vmatpush1.bf16.msra.mxu1 %v5524_v53  ;;  %v3469_v53 = vld [vmem:[#allocation17 + $0x10] sm:$0xff]  ;;  %v3415_v7 = vld [vmem:[#allocation17 + $0x140] sm:$0xff] }
 0x72c   : > { %5567 = vmatprep.subr.bf16.mxu0 %v5566_v19  ;;  %v3646_v19 = vld [vmem:[#allocation17 + $0x728] sm:$0xff]  ;;  %v3471_v10 = vld [vmem:[#allocation17 + $0x50] sm:$0xff] }
 0x72d   : > { %v5526_v54 = vpack.c.bf16 %v3650_v23, %v3646_v19  ;;  %v3410_v19 = vld [vmem:[#allocation17 + $0x88] sm:$0xff] }
 0x72f   : > { %5569 = vmatpush1.bf16.msra.mxu0 %v5568_v24  ;;  %v3645_v24 = vld [vmem:[#allocation17 + $0x720] sm:$0xff]  ;;  %5527 = vmatprep.subr.bf16.mxu1 %v5526_v54 }
 0x730   : > { %5571 = vmatprep.subr.bf16.mxu0 %v5570_v45  ;;  %v3649_v45 = vld [vmem:[#allocation17 + $0x760] sm:$0xff] }
 0x731   : > { %v5528_v17 = vpack.c.bf16 %v3649_v45, %v3645_v24  ;;  %v3412_v24 = vld [vmem:[#allocation17 + $0xc8] sm:$0xff]  ;;  %v3474_v45 = vld [vmem:[#allocation17 + $0x98] sm:$0xff] }
 0x733   : > { %5573 = vmatpush1.bf16.msra.mxu0 %v5572_v8  ;;  %v5592_v8 = vpack.c.bf16 %v3651_v26, %v3647_v25  ;;  %5529 = vmatpush1.bf16.msra.mxu1 %v5528_v17 }
 0x734   : > { %5575 = vmatprep.subr.bf16.mxu0 %v5574_v28  ;;  %v3654_v28 = vld [vmem:[#allocation17 + $0x7a8] sm:$0xff] }
 0x735   : > { %v5530_v30 = vpack.c.bf16 %v3658_v35, %v3654_v28  ;;  %v3409_v35 = vld [vmem:[#allocation17 + $0x80] sm:$0xff] }
 0x737   : > { %5577 = vmatpush1.bf16.msra.mxu0 %v5576_v32  ;;  %v3653_v32 = vld [vmem:[#allocation17 + $0x7a0] sm:$0xff]  ;;  %5531 = vmatprep.subr.bf16.mxu1 %v5530_v30 }
 0x738   : > { %5579 = vmatprep.subr.bf16.mxu0 %v5578_v34  ;;  %v3657_v34 = vld [vmem:[#allocation17 + $0x7e0] sm:$0xff] }
 0x739   : > { %v5532_v36 = vpack.c.bf16 %v3657_v34, %v3653_v32  ;;  %v3473_v32 = vld [vmem:[#allocation17 + $0x90] sm:$0xff] }
 0x73a   : > { %v3475_v34 = vld [vmem:[#allocation17 + $0xd0] sm:$0xff] }
 0x73b   : > { %5581 = vmatpush1.bf16.msra.mxu0 %v5580_v47  ;;  %5533 = vmatpush1.bf16.msra.mxu1 %v5532_v36  ;;  %v3406_v47 = vld [vmem:[#allocation17 + $0x8] sm:$0xff]  ;;  %v5602_v36 = vpack.c.bf16 %v3412_v24, %v3410_v19  ;;  %v3484_v24 = vld [vmem:[#allocation17 + $0x1d8] sm:$0xff] }
 0x73c   : > { %5583 = vmatprep.subr.bf16.mxu0 %v5582_v50  ;;  %v5598_v52 = vpack.c.bf16 %v3408_v48, %v3406_v47  ;;  %v5604_v48 = vpack.c.bf16 %v3411_v22, %v3409_v35 }
 0x73e   : > { %5599 = vmatprep.subr.bf16.mxu1 %v5598_v52  ;;  %v3478_v52 = vld [vmem:[#allocation17 + $0x118] sm:$0xff] }
 0x73f   : > { %5585 = vmatpush1.bf16.msra.mxu0 %v5584_v56 }
 0x740   : > { %5587 = vmatprep.subr.bf16.mxu0 %v5586_v18 }
 0x743   : > { %5589 = vmatpush1.bf16.msra.mxu0 %v5588_v12 }
 0x744   : > { %5591 = vmatprep.subr.bf16.mxu0 %v5590_v16  ;;  %v3476_v16 = vld [vmem:[#allocation17 + $0xd8] sm:$0xff] }
 0x745   : > { %v5666_v38 = vpack.c.bf16 %v3476_v16, %v3474_v45  ;;  %v5608_v16 = vpack.c.bf16 %v3415_v7, %v3413_v4  ;;  %v3487_v4 = vld [vmem:[#allocation17 + $0x250] sm:$0xff]  ;;  %v3426_v7 = vld [vmem:[#allocation17 + $0x288] sm:$0xff] }
 0x747   : > { %5593 = vmatpush1.bf16.msra.mxu0 %v5592_v8  ;;  %v5664_v8 = vpack.c.bf16 %v3471_v10, %v3469_v53  ;;  %v3477_v53 = vld [vmem:[#allocation17 + $0x110] sm:$0xff] }
 0x748   : > { %5595 = vmatprep.subr.bf16.mxu0 %v5594_v20  ;;  %v3479_v10 = vld [vmem:[#allocation17 + $0x150] sm:$0xff] }
 0x74b   : > { %5597 = vmatpush1.bf16.msra.mxu0 %v5596_v44  ;;  %v3414_v44 = vld [vmem:[#allocation17 + $0x108] sm:$0xff] }
 0x74c   : > { %5663 = vmatprep.subr.bf16.mxu0 %v5662_v49  ;;  %v5606_v19 = vpack.c.bf16 %v3416_v51, %v3414_v44  ;;  %v3421_v51 = vld [vmem:[#allocation17 + $0x200] sm:$0xff] }
 0x7e1   : > { %v6830_v57 = vpop.f32.mrb[16].mxu0 }
 0x7e2   : > { %v3368_v58 = vmax.f32 %v6830_v57, 0.0  ;;  %v6833_v50 = vpop.f32.mrb[17].mxu0 }
 0x7e3   : > { %v3369_v59 = vmax.f32 %v6833_v50, 0.0 }
 0x7e4   : > { %3378 = vst [vmem:[#allocation5] sm:$0xff] %v3368_v58 }
 0x7e5   : > { %3379 = vst [vmem:[#allocation5 + $0x8] sm:$0xff] %v3369_v59  ;;  %v3345_v60 = vpop.f32.mrb[18].mxu0 }
 0x7e6   : > { %v6840_v61 = vmax.f32 %v3345_v60, 0.0  ;;  %v3347_v56 = vpop.f32.mrb[19].mxu0 }
 0x7e7   : > { %v6842_v62 = vmax.f32 %v3347_v56, 0.0 }
 0x7e8   : > { %v3672_v26 = vrot.slane %v6840_v61, 1 }
 0x7e9   : > { %v3351_v1 = vpop.f32.mrb[20].mxu0  ;;  %v3675_v54 = vrot.slane %v6842_v62, 1 }
 0x7ea   : > { %v6844_v2 = vmax.f32 %v3351_v1, 0.0  ;;  %v3353_v3 = vpop.f32.mrb[21].mxu0  ;;  %v5668_v1 = vpack.c.bf16 %v3475_v34, %v3473_v32  ;;  %v3483_v32 = vld [vmem:[#allocation17 + $0x1d0] sm:$0xff]  ;;  %v3422_v34 = vld [vmem:[#allocation17 + $0x208] sm:$0xff] }
 0x7eb   : > { %v6846_v9 = vmax.f32 %v3353_v3, 0.0  ;;  %v3397_v18 = vld [vmem:[#allocation5] sm:$0xfe] }
 0x7ec   : > { %v3398_v11 = vld [vmem:[#allocation5 + $0x8] sm:$0xfe]  ;;  %v3671_v12 = vrot.slane %v3397_v18, 1  ;;  %v3677_v42 = vrot.slane %v6844_v2, 1 }
 0x7ed   : > { %v3357_v23 = vpop.f32.mrb[22].mxu0  ;;  %v3674_v15 = vrot.slane %v3398_v11, 1  ;;  %v3679_v28 = vrot.slane %v6846_v9, 1  ;;  %v3418_v11 = vld [vmem:[#allocation17 + $0x188] sm:$0xff] }
 0x7ee   : > { %v6849_v17 = vmax.f32 %v3357_v23, 0.0  ;;  %v3359_v25 = vpop.f32.mrb[23].mxu0  ;;  %v3673_v20 = vsel %vm1985_vm8, %v3671_v12, %v3672_v26  ;;  %v3678_v12 = vsel %vm1985_vm8, %v3672_v26, %v3677_v42  ;;  %v5670_v23 = vpack.c.bf16 %v3480_v55, %v3478_v52  ;;  %v3419_v26 = vld [vmem:[#allocation17 + $0x1c0] sm:$0xff] }
 0x7ef   : > { %v6853_v30 = vmax.f32 %v3359_v25, 0.0  ;;  %v3676_v31 = vsel %vm1985_vm8, %v3674_v15, %v3675_v54  ;;  %v3680_v56 = vsel %vm1985_vm8, %v3675_v54, %v3679_v28  ;;  %v3420_v54 = vld [vmem:[#allocation17 + $0x1c8] sm:$0xff]  ;;  %v5672_v25 = vpack.c.bf16 %v3479_v10, %v3477_v53 }
 0x7f0   : > { %3761 = vmatprep.mubr.f32.mxu1 %v3676_v31  ;;  %3850 = vmatprep.mubr.f32.mxu0 %v3676_v31  ;;  %v3681_v15 = vrot.slane %v6849_v17, 1  ;;  %v5610_v35 = vpack.c.bf16 %v3420_v54, %v3418_v11  ;;  %v3481_v31 = vld [vmem:[#allocation17 + $0x190] sm:$0xff]  ;;  %v3428_v10 = vld [vmem:[#allocation17 + $0x2c8] sm:$0xff]  ;;  %v3490_v11 = vld [vmem:[#allocation17 + $0x298] sm:$0xff] }
 0x7f1   : > { %v3363_v47 = vpop.f32.mrb[24].mxu0  ;;  %3762 = vmatmul.mubr.f32.vlgmr.msra.gmra.mrb[18].mxu1 %v3673_v20  ;;  %3851 = vmatmul.mubr.f32.vlgmr.msra.gmra.mrb[26].mxu0 %v3673_v20  ;;  %v3683_v3 = vrot.slane %v6853_v30, 1 }
 0x7f2   : > { %v3376_v49 = vmax.f32 %v3363_v47, 0.0  ;;  %v3365_v60 = vpop.f32.mrb[25].mxu0  ;;  %5601 = vmatpush1.bf16.msra.mxu1 %v5600_v21  ;;  %5665 = vmatpush1.bf16.msra.mxu0 %v5664_v8  ;;  %v3482_v21 = vld [vmem:[#allocation17 + $0x198] sm:$0xff]  ;;  %v3417_v8 = vld [vmem:[#allocation17 + $0x180] sm:$0xff]  ;;  %v3682_v20 = vsel %vm1985_vm8, %v3677_v42, %v3681_v15  ;;  %v5676_v47 = vpack.c.bf16 %v3483_v32, %v3481_v31  ;;  %v3432_v31 = vld [vmem:[#allocation17 + $0x348] sm:$0xff] }
 0x7f3   : > { %v3377_v18 = vmax.f32 %v3365_v60, 0.0  ;;  %3767 = vmatprep.mubr.f32.mxu1 %v3680_v56  ;;  %3856 = vmatprep.mubr.f32.mxu0 %v3680_v56  ;;  %v3684_v45 = vsel %vm1985_vm8, %v3679_v28, %v3683_v3  ;;  %v5674_v22 = vpack.c.bf16 %v3484_v24, %v3482_v21  ;;  %v3488_v28 = vld [vmem:[#allocation17 + $0x258] sm:$0xff]  ;;  %v5612_v44 = vpack.c.bf16 %v3419_v26, %v3417_v8  ;;  %v3423_v60 = vld [vmem:[#allocation17 + $0x240] sm:$0xff]  ;;  %v3485_v56 = vld [vmem:[#allocation17 + $0x210] sm:$0xff] }
 0x7f4   : > { %3386 = vst [vmem:[#allocation5 + $0x40] sm:$0x3] %v3376_v49  ;;  %5603 = vmatprep.subr.bf16.mxu1 %v5602_v36  ;;  %5667 = vmatprep.subr.bf16.mxu0 %v5666_v38  ;;  %v3424_v36 = vld [vmem:[#allocation17 + $0x248] sm:$0xff]  ;;  %v3486_v38 = vld [vmem:[#allocation17 + $0x218] sm:$0xff]  ;;  %v5616_v54 = vpack.c.bf16 %v3423_v60, %v3421_v51  ;;  %v5680_v21 = vpack.c.bf16 %v3487_v4, %v3485_v56  ;;  %v3425_v24 = vld [vmem:[#allocation17 + $0x280] sm:$0xff] }
 0x7f5   : > { %3387 = vst [vmem:[#allocation5 + $0x48] sm:$0x3] %v3377_v18  ;;  %3768 = vmatmul.mubr.f32.gmra.mrb[20].mxu1 %v3678_v12  ;;  %3857 = vmatmul.mubr.f32.gmra.mrb[28].mxu0 %v3678_v12  ;;  %v5614_v55 = vpack.c.bf16 %v3424_v36, %v3422_v34  ;;  %v5678_v49 = vpack.c.bf16 %v3488_v28, %v3486_v38  ;;  %v3492_v12 = vld [vmem:[#allocation17 + $0x2d8] sm:$0xff]  ;;  %v3489_v26 = vld [vmem:[#allocation17 + $0x290] sm:$0xff]  ;;  %v3429_v36 = vld [vmem:[#allocation17 + $0x300] sm:$0xff] }
 0x7f6   : > { %5605 = vmatpush1.bf16.msra.mxu1 %v5604_v48  ;;  %5669 = vmatpush1.bf16.msra.mxu0 %v5668_v1  ;;  %v3402_v48 = vld [vmem:[#allocation5 + $0x8] sm:$0xfc]  ;;  %v5682_v8 = vpack.c.bf16 %v3492_v12, %v3490_v11  ;;  %v3494_v32 = vld [vmem:[#allocation17 + $0x318] sm:$0xff]  ;;  %v3431_v38 = vld [vmem:[#allocation17 + $0x340] sm:$0xff] }
 0x7f7   : > { %3773 = vmatprep.mubr.f32.mxu1 %v3684_v45  ;;  %3862 = vmatprep.mubr.f32.mxu0 %v3684_v45  ;;  %v3990_v53 = vrot.slane %v3402_v48, 2  ;;  %v3427_v45 = vld [vmem:[#allocation17 + $0x2c0] sm:$0xff]  ;;  %v3496_v34 = vld [vmem:[#allocation17 + $0x358] sm:$0xff]  ;;  %v3495_v48 = vld [vmem:[#allocation17 + $0x350] sm:$0xff]  ;;  %v5624_v50 = vpack.c.bf16 %v3431_v38, %v3429_v36 }
 0x7f8   : > { %5607 = vmatprep.subr.bf16.mxu1 %v5606_v19  ;;  %5671 = vmatprep.subr.bf16.mxu0 %v5670_v23  ;;  %v3991_v23 = vrot.slane %v6842_v62, 2  ;;  %v3434_v51 = vld [vmem:[#allocation17 + $0x388] sm:$0xff]  ;;  %v3433_v60 = vld [vmem:[#allocation17 + $0x380] sm:$0xff]  ;;  %v3497_v4 = vld [vmem:[#allocation17 + $0x390] sm:$0xff] }
 0x7f9   : > { %3774 = vmatmul.mubr.f32.gmra.mrb[22].mxu1 %v3682_v20  ;;  %3863 = vmatmul.mubr.f32.gmra.mrb[30].mxu0 %v3682_v20  ;;  %v3435_v56 = vld [vmem:[#allocation17 + $0x3c0] sm:$0xff]  ;;  %v3504_v11 = vld [vmem:[#allocation17 + $0x458] sm:$0xff]  ;;  %v3505_v36 = vld [vmem:[#allocation17 + $0x490] sm:$0xff] }
 0x7fa   : > { %5609 = vmatpush1.bf16.msra.mxu1 %v5608_v16  ;;  %5673 = vmatpush1.bf16.msra.mxu0 %v5672_v25  ;;  %v5618_v25 = vpack.c.bf16 %v3428_v10, %v3426_v7  ;;  %v3499_v7 = vld [vmem:[#allocation17 + $0x3d0] sm:$0xff]  ;;  %v3502_v10 = vld [vmem:[#allocation17 + $0x418] sm:$0xff]  ;;  %v5628_v12 = vpack.c.bf16 %v3435_v56, %v3433_v60 }
 0x7fb   : > { %5611 = vmatprep.subr.bf16.mxu1 %v5610_v35  ;;  %5675 = vmatprep.subr.bf16.mxu0 %v5674_v22  ;;  %v3399_v52 = vld [vmem:[#allocation5 + $0x40] sm:$0x1]  ;;  %v3491_v35 = vld [vmem:[#allocation17 + $0x2d0] sm:$0xff]  ;;  %v3430_v22 = vld [vmem:[#allocation17 + $0x308] sm:$0xff] }
 0x7fc   : > { %v3400_v1 = vld [vmem:[#allocation5 + $0x48] sm:$0x1]  ;;  %v3685_v42 = vrot.slane %v3399_v52, 1  ;;  %v5684_v20 = vpack.c.bf16 %v3491_v35, %v3489_v26  ;;  %v5622_v28 = vpack.c.bf16 %v3432_v31, %v3430_v22  ;;  %v3506_v35 = vld [vmem:[#allocation17 + $0x498] sm:$0xff]  ;;  %v3507_v38 = vld [vmem:[#allocation17 + $0x4d0] sm:$0xff] }
 0x7fd   : > { %v3687_v18 = vrot.slane %v3400_v1, 1  ;;  %v3436_v52 = vld [vmem:[#allocation17 + $0x3c8] sm:$0xff]  ;;  %v3508_v22 = vld [vmem:[#allocation17 + $0x4d8] sm:$0xff]  ;;  %v3509_v60 = vld [vmem:[#allocation17 + $0x510] sm:$0xff] }
 0x7fe   : > { %5613 = vmatpush1.bf16.msra.mxu1 %v5612_v44  ;;  %5677 = vmatpush1.bf16.msra.mxu0 %v5676_v47  ;;  %v3686_v16 = vsel %vm1985_vm8, %v3681_v15, %v3685_v42  ;;  %v5620_v15 = vpack.c.bf16 %v3427_v45, %v3425_v24  ;;  %v5686_v44 = vpack.c.bf16 %v3496_v34, %v3494_v32  ;;  %v3493_v47 = vld [vmem:[#allocation17 + $0x310] sm:$0xff]  ;;  %v3444_v26 = vld [vmem:[#allocation17 + $0x4c8] sm:$0xff]  ;;  %v3441_v32 = vld [vmem:[#allocation17 + $0x480] sm:$0xff] }
 0x7ff   : > { %v3688_v19 = vsel %vm1985_vm8, %v3683_v3, %v3687_v18  ;;  %5615 = vmatprep.subr.bf16.mxu1 %v5614_v55  ;;  %5679 = vmatprep.subr.bf16.mxu0 %v5678_v49  ;;  %v3992_v3 = vsel %vm2224_vm9, %v3990_v53, %v3991_v23  ;;  %v3498_v55 = vld [vmem:[#allocation17 + $0x398] sm:$0xff]  ;;  %v5626_v1 = vpack.c.bf16 %v3436_v52, %v3434_v51  ;;  %v3438_v18 = vld [vmem:[#allocation17 + $0x408] sm:$0xff]  ;;  %v3443_v34 = vld [vmem:[#allocation17 + $0x4c0] sm:$0xff] }
 0x800   : > { %3779 = vmatprep.mubr.f32.mxu1 %v3688_v19  ;;  %3868 = vmatprep.mubr.f32.mxu0 %v3688_v19  ;;  %v3500_v49 = vld [vmem:[#allocation17 + $0x3d8] sm:$0xff]  ;;  %v3440_v53 = vld [vmem:[#allocation17 + $0x448] sm:$0xff]  ;;  %v5692_v19 = vpack.c.bf16 %v3499_v7, %v3497_v4  ;;  %v5694_v45 = vpack.c.bf16 %v3504_v11, %v3502_v10  ;;  %v5636_v51 = vpack.c.bf16 %v3443_v34, %v3441_v32  ;;  %v3511_v56 = vld [vmem:[#allocation17 + $0x550] sm:$0xff] }
 0x801   : > { %3780 = vmatmul.mubr.f32.gmra.mrb[24].mxu1 %v3686_v16  ;;  %3869 = vmatmul.mubr.f32.gmra.mrb[32].mxu0 %v3686_v16  ;;  %v5690_v42 = vpack.c.bf16 %v3500_v49, %v3498_v55  ;;  %v5630_v24 = vpack.c.bf16 %v3440_v53, %v3438_v18  ;;  %v3501_v16 = vld [vmem:[#allocation17 + $0x410] sm:$0xff]  ;;  %v5700_v52 = vpack.c.bf16 %v3507_v38, %v3505_v36  ;;  %v3445_v55 = vld [vmem:[#allocation17 + $0x500] sm:$0xff]  ;;  %v3514_v4 = vld [vmem:[#allocation17 + $0x598] sm:$0xff] }
 0x802   : > { %3939 = vmatprep.mubr.f32.mxu1 %v3369_v59  ;;  %4077 = vmatprep.mubr.f32.mxu0 %v3992_v3  ;;  %v5688_v59 = vpack.c.bf16 %v3495_v48, %v3493_v47  ;;  %v3510_v47 = vld [vmem:[#allocation17 + $0x518] sm:$0xff]  ;;  %v3447_v49 = vld [vmem:[#allocation17 + $0x540] sm:$0xff]  ;;  %v5704_v53 = vpack.c.bf16 %v3511_v56, %v3509_v60  ;;  %v3517_v32 = vld [vmem:[#allocation17 + $0x610] sm:$0xff]  ;;  %vm4116_vm8 = vcmp.eq.s32.totalorder %v6785_v13, %v6645_v5 }
 0x803   : > { %5617 = vmatpush1.bf16.msra.mxu1 %v5616_v54  ;;  %5681 = vmatpush1.bf16.msra.mxu0 %v5680_v21  ;;  %v3437_v54 = vld [vmem:[#allocation17 + $0x400] sm:$0xff]  ;;  %v3512_v48 = vld [vmem:[#allocation17 + $0x558] sm:$0xff]  ;;  %v5640_v18 = vpack.c.bf16 %v3447_v49, %v3445_v55  ;;  %v3519_v34 = vld [vmem:[#allocation17 + $0x650] sm:$0xff] }
 0x804   : > { %5619 = vmatprep.subr.bf16.mxu1 %v5618_v25  ;;  %5683 = vmatprep.subr.bf16.mxu0 %v5682_v8  ;;  %v3439_v21 = vld [vmem:[#allocation17 + $0x440] sm:$0xff]  ;;  %v3503_v25 = vld [vmem:[#allocation17 + $0x450] sm:$0xff]  ;;  %v3442_v8 = vld [vmem:[#allocation17 + $0x488] sm:$0xff] }
 0x805   : > { %v5632_v3 = vpack.c.bf16 %v3439_v21, %v3437_v54  ;;  %v5696_v31 = vpack.c.bf16 %v3503_v25, %v3501_v16  ;;  %v3516_v7 = vld [vmem:[#allocation17 + $0x5d8] sm:$0xff]  ;;  %v3449_v10 = vld [vmem:[#allocation17 + $0x580] sm:$0xff]  ;;  %v3513_v54 = vld [vmem:[#allocation17 + $0x590] sm:$0xff] }
 0x806   : > { %v3451_v11 = vld [vmem:[#allocation17 + $0x5c0] sm:$0xff]  ;;  %v3515_v21 = vld [vmem:[#allocation17 + $0x5d0] sm:$0xff]  ;;  %v3518_v16 = vld [vmem:[#allocation17 + $0x618] sm:$0xff] }
 0x807   : > { %5621 = vmatpush1.bf16.msra.mxu1 %v5620_v15  ;;  %5685 = vmatpush1.bf16.msra.mxu0 %v5684_v20  ;;  %v5634_v15 = vpack.c.bf16 %v3444_v26, %v3442_v8  ;;  %v5698_v20 = vpack.c.bf16 %v3508_v22, %v3506_v35  ;;  %v3520_v25 = vld [vmem:[#allocation17 + $0x658] sm:$0xff]  ;;  %v5644_v8 = vpack.c.bf16 %v3451_v11, %v3449_v10  ;;  %v3453_v35 = vld [vmem:[#allocation17 + $0x600] sm:$0xff]  ;;  %v3521_v55 = vld [vmem:[#allocation17 + $0x690] sm:$0xff] }
 0x808   : > { %5623 = vmatprep.subr.bf16.mxu1 %v5622_v28  ;;  %5687 = vmatprep.subr.bf16.mxu0 %v5686_v44  ;;  %v3446_v28 = vld [vmem:[#allocation17 + $0x508] sm:$0xff]  ;;  %v5708_v26 = vpack.c.bf16 %v3515_v21, %v3513_v54  ;;  %v3455_v22 = vld [vmem:[#allocation17 + $0x640] sm:$0xff]  ;;  %v3522_v36 = vld [vmem:[#allocation17 + $0x698] sm:$0xff] }
 0x809   : > { %v3448_v44 = vld [vmem:[#allocation17 + $0x548] sm:$0xff]  ;;  %v3524_v38 = vld [vmem:[#allocation17 + $0x6d8] sm:$0xff]  ;;  %v3523_v49 = vld [vmem:[#allocation17 + $0x6d0] sm:$0xff] }
 0x80a   : > { %v3526_v60 = vld [vmem:[#allocation17 + $0x718] sm:$0xff]  ;;  %v3525_v10 = vld [vmem:[#allocation17 + $0x710] sm:$0xff] }
 0x80b   : > { %5625 = vmatpush1.bf16.msra.mxu1 %v5624_v50  ;;  %5689 = vmatpush1.bf16.msra.mxu0 %v5688_v59  ;;  %v5638_v50 = vpack.c.bf16 %v3448_v44, %v3446_v28  ;;  %v5702_v59 = vpack.c.bf16 %v3512_v48, %v3510_v47  ;;  %v5648_v28 = vpack.c.bf16 %v3455_v22, %v3453_v35  ;;  %v3457_v47 = vld [vmem:[#allocation17 + $0x680] sm:$0xff]  ;;  %v3528_v56 = vld [vmem:[#allocation17 + $0x758] sm:$0xff]  ;;  %v3527_v11 = vld [vmem:[#allocation17 + $0x750] sm:$0xff] }
 0x80c   : > { %5627 = vmatprep.subr.bf16.mxu1 %v5626_v1  ;;  %5691 = vmatprep.subr.bf16.mxu0 %v5690_v42  ;;  %v3450_v1 = vld [vmem:[#allocation17 + $0x588] sm:$0xff]  ;;  %v5712_v44 = vpack.c.bf16 %v3519_v34, %v3517_v32  ;;  %v3459_v48 = vld [vmem:[#allocation17 + $0x6c0] sm:$0xff]  ;;  %v3530_v54 = vld [vmem:[#allocation17 + $0x798] sm:$0xff] }
 0x80d   : > { %v3452_v42 = vld [vmem:[#allocation17 + $0x5c8] sm:$0xff]  ;;  %v3532_v21 = vld [vmem:[#allocation17 + $0x7d8] sm:$0xff]  ;;  %v3529_v35 = vld [vmem:[#allocation17 + $0x790] sm:$0xff] }
 0x80e   : > { %v3531_v22 = vld [vmem:[#allocation17 + $0x7d0] sm:$0xff] }
 0x80f   : > { %5629 = vmatpush1.bf16.msra.mxu1 %v5628_v12  ;;  %5693 = vmatpush1.bf16.msra.mxu0 %v5692_v19  ;;  %v5642_v12 = vpack.c.bf16 %v3452_v42, %v3450_v1  ;;  %v5706_v19 = vpack.c.bf16 %v3516_v7, %v3514_v4  ;;  %v5652_v1 = vpack.c.bf16 %v3459_v48, %v3457_v47  ;;  %v3461_v4 = vld [vmem:[#allocation17 + $0x700] sm:$0xff]  ;;  %v3404_v47 = vld [vmem:[#allocation5 + $0x48] sm:$0x3] }
 0x810   : > { %5631 = vmatprep.subr.bf16.mxu1 %v5630_v24  ;;  %5695 = vmatprep.subr.bf16.mxu0 %v5694_v45  ;;  %v3454_v24 = vld [vmem:[#allocation17 + $0x608] sm:$0xff]  ;;  %v5716_v42 = vpack.c.bf16 %v3523_v49, %v3521_v55  ;;  %v3463_v7 = vld [vmem:[#allocation17 + $0x740] sm:$0xff]  ;;  %v5724_v32 = vpack.c.bf16 %v3531_v22, %v3529_v35  ;;  %v6910_v35 = vadd.s32 40, %v6618_v39 }
 0x811   : > { %v3456_v45 = vld [vmem:[#allocation17 + $0x648] sm:$0xff] }
 0x812   : > { %vm4137_vm0 = vcmp.eq.s32.totalorder %v6910_v35, %v6648_v6  ;;  %vm4118_vm10 = vcmp.eq.s32.totalorder %v6910_v35, %v6645_v5 }
 0x813   : > { %5633 = vmatpush1.bf16.msra.mxu1 %v5632_v3  ;;  %5697 = vmatpush1.bf16.msra.mxu0 %v5696_v31  ;;  %v5646_v3 = vpack.c.bf16 %v3456_v45, %v3454_v24  ;;  %v5710_v31 = vpack.c.bf16 %v3520_v25, %v3518_v16  ;;  %v5656_v24 = vpack.c.bf16 %v3463_v7, %v3461_v4  ;;  %v3465_v16 = vld [vmem:[#allocation17 + $0x780] sm:$0xff] }
 0x814   : > { %5635 = vmatprep.subr.bf16.mxu1 %v5634_v15  ;;  %5699 = vmatprep.subr.bf16.mxu0 %v5698_v20  ;;  %v3458_v15 = vld [vmem:[#allocation17 + $0x688] sm:$0xff]  ;;  %v5720_v45 = vpack.c.bf16 %v3527_v11, %v3525_v10 }
 0x815   : > { %v3460_v20 = vld [vmem:[#allocation17 + $0x6c8] sm:$0xff] }
 0x817   : > { %5637 = vmatpush1.bf16.msra.mxu1 %v5636_v51  ;;  %5701 = vmatpush1.bf16.msra.mxu0 %v5700_v52  ;;  %v5650_v51 = vpack.c.bf16 %v3460_v20, %v3458_v15  ;;  %v5714_v52 = vpack.c.bf16 %v3524_v38, %v3522_v36  ;;  %v3995_v15 = vrot.slane %v6846_v9, 2  ;;  %v3988_v20 = vrot.slane %v6840_v61, 2 }
 0x818   : > { %5639 = vmatprep.subr.bf16.mxu1 %v5638_v50  ;;  %5703 = vmatprep.subr.bf16.mxu0 %v5702_v59  ;;  %v3462_v50 = vld [vmem:[#allocation17 + $0x708] sm:$0xff]  ;;  %v3993_v38 = vrot.slane %v6844_v2, 2 }
 0x819   : > { %v3464_v59 = vld [vmem:[#allocation17 + $0x748] sm:$0xff] }
 0x81a   : > { %v3994_v48 = vsel %vm2224_vm9, %v3988_v20, %v3993_v38 }
 0x81b   : > { %5641 = vmatpush1.bf16.msra.mxu1 %v5640_v18  ;;  %5705 = vmatpush1.bf16.msra.mxu0 %v5704_v53  ;;  %v5654_v18 = vpack.c.bf16 %v3464_v59, %v3462_v50  ;;  %v5718_v53 = vpack.c.bf16 %v3528_v56, %v3526_v60 }
 0x81c   : > { %5643 = vmatprep.subr.bf16.mxu1 %v5642_v12  ;;  %5707 = vmatprep.subr.bf16.mxu0 %v5706_v19  ;;  %v3466_v12 = vld [vmem:[#allocation17 + $0x788] sm:$0xff] }
 0x81d   : > { %v3468_v19 = vld [vmem:[#allocation17 + $0x7c8] sm:$0xff] }
 0x81e   : > { %v5658_v25 = vpack.c.bf16 %v3468_v19, %v3466_v12 }
 0x81f   : > { %5645 = vmatpush1.bf16.msra.mxu1 %v5644_v8  ;;  %5709 = vmatpush1.bf16.msra.mxu0 %v5708_v26  ;;  %v5722_v8 = vpack.c.bf16 %v3532_v21, %v3530_v54  ;;  %v3467_v26 = vld [vmem:[#allocation17 + $0x7c0] sm:$0xff] }
 0x820   : > { %5647 = vmatprep.subr.bf16.mxu1 %v5646_v3  ;;  %5711 = vmatprep.subr.bf16.mxu0 %v5710_v31  ;;  %v3401_v3 = vld [vmem:[#allocation5] sm:$0xfc]  ;;  %v5660_v31 = vpack.c.bf16 %v3467_v26, %v3465_v16 }
 0x821   : > { %v3987_v34 = vrot.slane %v3401_v3, 2 }
 0x823   : > { %5649 = vmatpush1.bf16.msra.mxu1 %v5648_v28  ;;  %5713 = vmatpush1.bf16.msra.mxu0 %v5712_v44  ;;  %v3989_v36 = vsel %vm2224_vm9, %v3987_v34, %v3988_v20  ;;  %v3996_v28 = vsel %vm2224_vm9, %v3991_v23, %v3995_v15  ;;  %v3999_v44 = vrot.slane %v6853_v30, 2 }
 0x824   : > { %5651 = vmatprep.subr.bf16.mxu1 %v5650_v51  ;;  %5715 = vmatprep.subr.bf16.mxu0 %v5714_v52  ;;  %v3997_v51 = vrot.slane %v6849_v17, 2  ;;  %v3403_v52 = vld [vmem:[#allocation5 + $0x40] sm:$0x3] }
 0x825   : > { %v4000_v57 = vsel %vm2224_vm9, %v3995_v15, %v3999_v44  ;;  %v4001_v55 = vrot.slane %v3403_v52, 2  ;;  %v4112_v52 = vadd.s32 56, %v6618_v39 }
 0x826   : > { %v3998_v23 = vsel %vm2224_vm9, %v3993_v38, %v3997_v51 }
 0x827   : > { %5653 = vmatpush1.bf16.msra.mxu1 %v5652_v1  ;;  %5717 = vmatpush1.bf16.msra.mxu0 %v5716_v42  ;;  %vm4139_vm4 = vcmp.eq.s32.totalorder %v4112_v52, %v6648_v6  ;;  %vm4120_vm12 = vcmp.eq.s32.totalorder %v4112_v52, %v6645_v5 }
 0x828   : > { %5655 = vmatprep.subr.bf16.mxu1 %v5654_v18  ;;  %5719 = vmatprep.subr.bf16.mxu0 %v5718_v53 }
 0x82b   : > { %5657 = vmatpush1.bf16.msra.mxu1 %v5656_v24  ;;  %5721 = vmatpush1.bf16.msra.mxu0 %v5720_v45 }
 0x82c   : > { %5659 = vmatprep.subr.bf16.mxu1 %v5658_v25  ;;  %5723 = vmatprep.subr.bf16.mxu0 %v5722_v8 }
 0x82f   : > { %5661 = vmatpush1.bf16.msra.mxu1 %v5660_v31  ;;  %5725 = vmatpush1.bf16.msra.mxu0 %v5724_v32 }
 0x832   : > { %3940 = vmatmul.mubr.f32.vlgmr.msra.gmra.mrb[18].mxu1 %v3368_v58  ;;  %4078 = vmatmul.mubr.f32.vlgmr.msra.gmra.mrb[26].mxu0 %v3989_v36  ;;  %v4003_v58 = vrot.slane %v3404_v47, 2 }
 0x833   : > { %3945 = vmatprep.mubr.f32.mxu1 %v6842_v62  ;;  %4083 = vmatprep.mubr.f32.mxu0 %v3996_v28 }
 0x834   : > { %v4004_v62 = vsel %vm2224_vm9, %v3999_v44, %v4003_v58  ;;  %v4653_v58 = vsel %vm4137_vm0, 1.0, %v6246_v0 }
 0x836   : > { %3946 = vmatmul.mubr.f32.gmra.mrb[20].mxu1 %v6840_v61  ;;  %4084 = vmatmul.mubr.f32.gmra.mrb[28].mxu0 %v3994_v48  ;;  %v4002_v61 = vsel %vm2224_vm9, %v3997_v51, %v4001_v55  ;;  %vm4117_vm9 = vcmp.eq.s32.totalorder %v6793_v14, %v6645_v5  ;;  %v4652_v14 = vsel %vm4120_vm12, 1.0, %v6246_v0 }
 0x837   : > { %3951 = vmatprep.mubr.f32.mxu1 %v6846_v9  ;;  %4089 = vmatprep.mubr.f32.mxu0 %v4000_v57  ;;  %v3388_v9 = vld [vmem:[%s7088_s8] sm:$0x3]  ;;  %v4111_v57 = vadd.s32 48, %v6618_v39  ;;  %v4646_v39 = vsel %vm4114_vm6, 1.0, %v6246_v0  ;;  %v4649_v41 = vsel %vm4117_vm9, 1.0, %v6246_v0 }
 0x838   : > { %v3968_v50 = vrot.slane %v3388_v9, %v6621_v40  ;;  %v3972_v60 = vrot.slane %v3388_v9, %v6625_v43 }
 0x839   : > { %vm4138_vm3 = vcmp.eq.s32.totalorder %v4111_v57, %v6648_v6  ;;  %v4645_v6 = vsel %vm4113_vm5, 1.0, %v6246_v0  ;;  %vm4119_vm11 = vcmp.eq.s32.totalorder %v4111_v57, %v6645_v5 }
 0x83a   : > { %3952 = vmatmul.mubr.f32.gmra.mrb[22].mxu1 %v6844_v2  ;;  %4090 = vmatmul.mubr.f32.gmra.mrb[30].mxu0 %v3998_v23  ;;  %v4654_v23 = vsel %vm4138_vm3, 1.0, %v6246_v0  ;;  %v4651_v13 = vsel %vm4119_vm11, 1.0, %v6246_v0 }
 0x83b   : > { %3957 = vmatprep.mubr.f32.mxu1 %v6853_v30  ;;  %4095 = vmatprep.mubr.f32.mxu0 %v4004_v62 }
 0x83e   : > { %3958 = vmatmul.mubr.f32.gmra.mrb[24].mxu1 %v6849_v17  ;;  %4096 = vmatmul.mubr.f32.gmra.mrb[32].mxu0 %v4002_v61 }
 0x83f   : > { %4260 = vmatprep.mubr.f32.mxu1 %v6246_v0  ;;  %4230 = vmatprep.mubr.f32.mxu0 %v6246_v0 }
 0x905   : > { %v3941_v2 = vpop.f32.mrb[18].mxu1  ;;  %v4079_v49 = vpop.f32.mrb[26].mxu0 }
 0x906   : > { %v3943_v59 = vpop.f32.mrb[19].mxu1  ;;  %v4081_v30 = vpop.f32.mrb[27].mxu0  ;;  %v3975_v17 = vadd.f32 %v3968_v50, %v3941_v2  ;;  %v4102_v42 = vadd.f32 %v4079_v49, %v3968_v50 }
 0x907   : > { %v3976_v10 = vadd.f32 %v3972_v60, %v3943_v59  ;;  %v4103_v11 = vadd.f32 %v4081_v30, %v3972_v60 }
 0x909   : > { %v3947_v56 = vpop.f32.mrb[20].mxu1  ;;  %v4085_v1 = vpop.f32.mrb[28].mxu0 }
 0x90a   : > { %v3977_v4 = vadd.f32 %v3968_v50, %v3947_v56  ;;  %v4104_v7 = vadd.f32 %v4085_v1, %v3968_v50  ;;  %v3949_v18 = vpop.f32.mrb[21].mxu1  ;;  %v4087_v53 = vpop.f32.mrb[29].mxu0 }
 0x90b   : > { %v3978_v12 = vadd.f32 %v3972_v60, %v3949_v18  ;;  %v4105_v19 = vadd.f32 %v4087_v53, %v3972_v60 }
 0x90c   : > { %v5736_v54 = vpack.c.bf16 %v3977_v4, %v3975_v17  ;;  %v5728_v21 = vpack.c.bf16 %v4104_v7, %v4102_v42 }
 0x90d   : > { %v5734_v24 = vpack.c.bf16 %v3978_v12, %v3976_v10  ;;  %v5726_v40 = vpack.c.bf16 %v4105_v19, %v4103_v11  ;;  %v3953_v45 = vpop.f32.mrb[22].mxu1  ;;  %v4091_v16 = vpop.f32.mrb[30].mxu0 }
 0x90e   : > { %v3955_v25 = vpop.f32.mrb[23].mxu1  ;;  %v4093_v43 = vpop.f32.mrb[31].mxu0  ;;  %v3979_v22 = vadd.f32 %v3968_v50, %v3953_v45  ;;  %v4106_v3 = vadd.f32 %v4091_v16, %v3968_v50 }
 0x90f   : > { %5727 = vmatprep.subr.bf16.mxu0 %v5726_v40  ;;  %5742 = vmatprep.subr.bf16.mxu1 %v5726_v40  ;;  %v3980_v20 = vadd.f32 %v3972_v60, %v3955_v25  ;;  %v4107_v36 = vadd.f32 %v4093_v43, %v3972_v60 }
 0x910   : > { %5729 = vmatpush1.bf16.msra.mxu0 %v5728_v21  ;;  %5744 = vmatpush1.bf16.msra.mxu1 %v5728_v21 }
 0x911   : > { %v3959_v8 = vpop.f32.mrb[24].mxu1  ;;  %v4097_v26 = vpop.f32.mrb[32].mxu0 }
 0x912   : > { %v3981_v31 = vadd.f32 %v3968_v50, %v3959_v8  ;;  %v4108_v32 = vadd.f32 %v4097_v26, %v3968_v50  ;;  %v3961_v34 = vpop.f32.mrb[25].mxu1  ;;  %v4099_v15 = vpop.f32.mrb[33].mxu0 }
 0x913   : > { %v3982_v38 = vadd.f32 %v3972_v60, %v3961_v34  ;;  %v4109_v28 = vadd.f32 %v4099_v15, %v3972_v60 }
 0x914   : > { %v5740_v44 = vpack.c.bf16 %v3981_v31, %v3979_v22  ;;  %v5732_v47 = vpack.c.bf16 %v4108_v32, %v4106_v3 }
 0x915   : > { %v5738_v48 = vpack.c.bf16 %v3982_v38, %v3980_v20  ;;  %v5730_v51 = vpack.c.bf16 %v4109_v28, %v4107_v36 }
 0x917   : > { %5731 = vmatprep.subr.bf16.mxu0 %v5730_v51  ;;  %5743 = vmatprep.subr.bf16.mxu1 %v5730_v51 }
 0x918   : > { %5733 = vmatpush1.bf16.msra.mxu0 %v5732_v47  ;;  %5745 = vmatpush1.bf16.msra.mxu1 %v5732_v47 }
 0x919   : > { %5735 = vmatprep.subr.bf16.mxu1 %v5734_v24 }
 0x91b   : > { %4661 = vmatmul.mubr.msk.f32.vlgmr.msra.gmra.mrb[26].mxu1 %vm4146_vm2, %v4653_v58  ;;  %4656 = vmatmul.mubr.msk.f32.vlgmr.msra.gmra.mrb[34].mxu0 %vm4146_vm2, %v6680_v29  ;;  %v4655_v29 = vsel %vm4139_vm4, 1.0, %v6246_v0 }
 0x91c   : > { %5737 = vmatpush1.bf16.msra.mxu1 %v5736_v54  ;;  %4266 = vmatprep.mubr.f32.mxu1 %v6246_v0 }
 0x91d   : > { %5739 = vmatprep.subr.bf16.mxu1 %v5738_v48  ;;  %4236 = vmatprep.mubr.f32.mxu0 %v6246_v0 }
 0x91f   : > { %4662 = vmatmul.mubr.msk.f32.gmra.mrb[28].mxu1 %vm4146_vm2, %v4654_v23  ;;  %4657 = vmatmul.mubr.msk.f32.gmra.mrb[36].mxu0 %vm4146_vm2, %v6688_v37  ;;  %v4648_v37 = vsel %vm4116_vm8, 1.0, %v6246_v0 }
 0x920   : > { %5741 = vmatpush1.bf16.msra.mxu1 %v5740_v44  ;;  %4272 = vmatprep.mubr.f32.mxu1 %v6246_v0 }
 0x921   : > { %4242 = vmatprep.mubr.f32.mxu0 %v6246_v0 }
 0x923   : > { %4663 = vmatmul.mubr.msk.f32.gmra.mrb[30].mxu1 %vm4146_vm2, %v4655_v29  ;;  %4658 = vmatmul.mubr.msk.f32.gmra.mrb[38].mxu0 %vm4146_vm2, %v6735_v63  ;;  %v4650_v63 = vsel %vm4118_vm10, 1.0, %v6246_v0 }
 0x924   : > { %4367 = vmatprep.mubr.f32.mxu1 %v6246_v0  ;;  %4248 = vmatprep.mubr.f32.mxu0 %v6246_v0 }
 0x927   : > { %4664 = vmatmul.mubr.msk.f32.vlgmr.msra.gmra.mrb[32].mxu1 %vm4146_vm2, %v4645_v6  ;;  %4659 = vmatmul.mubr.msk.f32.gmra.mrb[40].mxu0 %vm4146_vm2, %v6818_v46 }
 0x928   : > { %4373 = vmatprep.mubr.f32.mxu1 %v6246_v0  ;;  %4254 = vmatprep.mubr.f32.mxu0 %v6246_v0 }
 0x92b   : > { %4665 = vmatmul.mubr.msk.f32.gmra.mrb[34].mxu1 %vm4146_vm2, %v4646_v39  ;;  %4660 = vmatmul.mubr.msk.f32.gmra.mrb[42].mxu0 %vm4146_vm2, %v6826_v33 }
 0x92c   : > { %4379 = vmatprep.mubr.f32.mxu1 %v6246_v0 }
 0x92f   : > { %4666 = vmatmul.mubr.msk.f32.gmra.mrb[36].mxu1 %vm4146_vm2, %v4647_v27 }
 0x930   : > { %4385 = vmatprep.mubr.f32.mxu1 %v6246_v0 }
 0x933   : > { %4667 = vmatmul.mubr.msk.f32.gmra.mrb[38].mxu1 %vm4146_vm2, %v4648_v37 }
 0x934   : > { %4391 = vmatprep.mubr.f32.mxu1 %v6246_v0 }
 0x937   : > { %4668 = vmatmul.mubr.msk.f32.gmra.mrb[40].mxu1 %vm4146_vm2, %v4649_v41 }
 0x938   : > { %4397 = vmatprep.mubr.f32.mxu1 %v6246_v0 }
 0x93b   : > { %4669 = vmatmul.mubr.msk.f32.gmra.mrb[26].mxu1 %vm4146_vm2, %v4650_v63 }
 0x93c   : > { %4403 = vmatprep.mubr.f32.mxu1 %v6246_v0 }
 0x93f   : > { %4670 = vmatmul.mubr.msk.f32.gmra.mrb[28].mxu1 %vm4146_vm2, %v4651_v13 }
 0x940   : > { %4409 = vmatprep.mubr.f32.mxu1 %v6246_v0 }
 0x943   : > { %4671 = vmatmul.mubr.msk.f32.gmra.mrb[30].mxu1 %vm4146_vm2, %v4652_v14 }
 0x9ee   : > { %v4232_v46 = vpop.f32.mrb[34].mxu0 }
 0x9ef   : > { %v4234_v33 = vpop.f32.mrb[35].mxu0 }
 0x9f2   : > { %v4238_v55 = vpop.f32.mrb[36].mxu0 }
 0x9f3   : > { %v4240_v62 = vpop.f32.mrb[37].mxu0 }
 0x9f6   : > { %v4244_v61 = vpop.f32.mrb[38].mxu0 }
 0x9f7   : > { %v4246_v9 = vpop.f32.mrb[39].mxu0 }
 0x9fa   : > { %v4369_v2 = vpop.f32.mrb[32].mxu1  ;;  %v4250_v49 = vpop.f32.mrb[40].mxu0 }
 0x9fb   : > { %v4370_v50 = vadd.f32 %v4369_v2, %v4232_v46  ;;  %v4371_v59 = vpop.f32.mrb[33].mxu1  ;;  %v4252_v5 = vpop.f32.mrb[41].mxu0 }
 0x9fc   : > { %v4372_v30 = vadd.f32 %v4371_v59, %v4234_v33 }
 0x9fd   : > { %5927 = vtanh.f32 %v4370_v50 }
 0x9fe   : > { %5929 = vtanh.f32 %v4372_v30  ;;  %v4375_v60 = vpop.f32.mrb[34].mxu1  ;;  %v4256_v56 = vpop.f32.mrb[42].mxu0 }
 0x9ff   : > { %v4376_v0 = vadd.f32 %v4375_v60, %v4238_v55  ;;  %v4377_v1 = vpop.f32.mrb[35].mxu1  ;;  %v4258_v17 = vpop.f32.mrb[43].mxu0 }
 0xa00   : > { %v4378_v42 = vadd.f32 %v4377_v1, %v4240_v62 }
 0xa01   : > { %5931 = vtanh.f32 %v4376_v0 }
 0xa02   : > { %5933 = vtanh.f32 %v4378_v42  ;;  %v4381_v4 = vpop.f32.mrb[36].mxu1 }
 0xa03   : > { %v4382_v7 = vadd.f32 %v4381_v4, %v4244_v61  ;;  %v4383_v18 = vpop.f32.mrb[37].mxu1 }
 0xa04   : > { %v4384_v53 = vadd.f32 %v4383_v18, %v4246_v9 }
 0xa05   : > { %5935 = vtanh.f32 %v4382_v7 }
 0xa06   : > { %5937 = vtanh.f32 %v4384_v53  ;;  %v4387_v10 = vpop.f32.mrb[38].mxu1 }
 0xa07   : > { %v5928_v11 = vpop.eup %5927  ;;  %v4388_v12 = vadd.f32 %v4387_v10, %v4250_v49  ;;  %v4389_v19 = vpop.f32.mrb[39].mxu1 }
 0xa08   : > { %v5930_v54 = vpop.eup %5929  ;;  %4432 = vst [vmem:[%s6979_s25] sm:$0xff] %v5928_v11  ;;  %v4390_v21 = vadd.f32 %v4389_v19, %v4252_v5 }
 0xa09   : > { %4433 = vst [vmem:[%s6979_s25 + $0x8] sm:$0xff] %v5930_v54  ;;  %5939 = vtanh.f32 %v4388_v12 }
 0xa0a   : > { %5941 = vtanh.f32 %v4390_v21  ;;  %v4393_v24 = vpop.f32.mrb[40].mxu1 }
 0xa0b   : > { %v5932_v40 = vpop.eup %5931  ;;  %v4395_v45 = vpop.f32.mrb[41].mxu1  ;;  %v4394_v16 = vadd.f32 %v4393_v24, %v4256_v56 }
 0xa0c   : > { %v5934_v25 = vpop.eup %5933  ;;  %4434 = vst [vmem:[%s6979_s25 + $0x10] sm:$0xff] %v5932_v40  ;;  %v4396_v43 = vadd.f32 %v4395_v45, %v4258_v17 }
 0xa0d   : > { %4435 = vst [vmem:[%s6979_s25 + $0x18] sm:$0xff] %v5934_v25  ;;  %5943 = vtanh.f32 %v4394_v16 }
 0xa0e   : > { %v4399_v8 = vpop.f32.mrb[26].mxu1  ;;  %5945 = vtanh.f32 %v4396_v43 }
 0xa0f   : > { %v5936_v26 = vpop.eup %5935  ;;  %5947 = vtanh.f32 %v4399_v8  ;;  %v4401_v35 = vpop.f32.mrb[27].mxu1 }
 0xa10   : > { %v5938_v22 = vpop.eup %5937  ;;  %4436 = vst [vmem:[%s6979_s25 + $0x20] sm:$0xff] %v5936_v26  ;;  %5949 = vtanh.f32 %v4401_v35 }
 0xa11   : > { %4437 = vst [vmem:[%s6979_s25 + $0x28] sm:$0xff] %v5938_v22 }
 0xa12   : > { %v4405_v3 = vpop.f32.mrb[28].mxu1 }
 0xa13   : > { %v5940_v31 = vpop.eup %5939  ;;  %5951 = vtanh.f32 %v4405_v3  ;;  %v4407_v32 = vpop.f32.mrb[29].mxu1 }
 0xa14   : > { %v5942_v34 = vpop.eup %5941  ;;  %4438 = vst [vmem:[%s6979_s25 + $0x30] sm:$0xff] %v5940_v31  ;;  %5953 = vtanh.f32 %v4407_v32 }
 0xa15   : > { %4439 = vst [vmem:[%s6979_s25 + $0x38] sm:$0xff] %v5942_v34 }
 0xa16   : > { %v4411_v15 = vpop.f32.mrb[30].mxu1 }
 0xa17   : > { %v5944_v20 = vpop.eup %5943  ;;  %5955 = vtanh.f32 %v4411_v15  ;;  %v4413_v36 = vpop.f32.mrb[31].mxu1 }
 0xa18   : > { %v5946_v38 = vpop.eup %5945  ;;  %4440 = vst [vmem:[%s6979_s25 + $0x40] sm:$0xff] %v5944_v20  ;;  %5957 = vtanh.f32 %v4413_v36 }
 0xa19   : > { %v5948_v28 = vpop.eup %5947  ;;  %4441 = vst [vmem:[%s6979_s25 + $0x48] sm:$0xff] %v5946_v38 }
 0xa1a   : > { %v5950_v44 = vpop.eup %5949  ;;  %4442 = vst [vmem:[%s6979_s25 + $0x50] sm:$0xff] %v5948_v28 }
 0xa1b   : > { %4443 = vst [vmem:[%s6979_s25 + $0x58] sm:$0xff] %v5950_v44 }
 0xa1d   : > { %v5952_v47 = vpop.eup %5951 }
 0xa1e   : > { %v5954_v48 = vpop.eup %5953  ;;  %4444 = vst [vmem:[%s6979_s25 + $0x60] sm:$0xff] %v5952_v47 }
 0xa1f   : > { %4445 = vst [vmem:[%s6979_s25 + $0x68] sm:$0xff] %v5954_v48 }
 0xa21   : > { %v5956_v51 = vpop.eup %5955 }
 0xa22   : > { %v5958_v57 = vpop.eup %5957  ;;  %4446 = vst [vmem:[%s6979_s25 + $0x70] sm:$0xff] %v5956_v51 }
 0xa23   : > { %4447 = vst [vmem:[%s6979_s25 + $0x78] sm:$0xff] %v5958_v57 }
 0xa24   : > { %6170 = shalt.err (!%p6167_p0)
}
 0xa25   : > { %s6171_s8 = scalar_lea.hbm %s7000_s11, 2048  ;;  %s6175_s13 = scalar_lea.hbm %s7089_s22, 4096 }
 0xa26   : > { %p6172_p4 = scmp.ne.s32.totalorder %s7000_s11, %s6171_s8  ;;  %p6176_p8 = scmp.lt.u32.totalorder %s7000_s11, %s7089_s22 }
 0xa27   : > { %p6177_p5 = scmp.lt.u32.totalorder %s6175_s13, %s6171_s8  ;;  %p6179_p6 = scmp.lt.u32.totalorder %s6171_s8, %s7000_s11 }
 0xa28   : > { %p6173_p10 = pnand %p6172_p4, %p7090_p9 }
 0xa29   : > { %p6178_p7 = por %p6177_p5, %p6176_p8 }
 0xa2a   : > { %p6174_p11 = pneg %p6173_p10 }
 0xa2b   : > { %p6180_p12 = por %p6179_p6, %p6178_p7 }
 0xa2d   : > { %p6181_p13 = pnand %p6180_p12, %p6174_p11 }
 0xa2f   : > { %6184 = shalt.err (!%p6181_p13)
}
 0xa30   : > { %s6249_s23 = smov 256   ;;  %s6250_s26 = smov 16  }
 0xa31   : > { %5840 = dma.vmem_to_hbm [thread:$0]  (%p7090_p9), %s7002_s24, 2048, %s7000_s11, %s4449_s27, %s6249_s23, %s6249_s23, %s6250_s26  }
 0xa32 PF: > { %s4477_s12 = sand.u32 1, %s6223_s17   ;;  %p7091_p1 = scmp.ne.s32.totalorder %s7076_s15, 0 }
 0xa33   : > { %p7092_p3 = scmp.ge.s32.totalorder %s6235_s20, 2  ;;  %s4478_s14 = scalar_lea.sflag [#allocation8], %s4477_s12 }
 0xa35   : > { %p5866_p2 = pnand %p7092_p3, %p7091_p1 }
 0xa37   : > { %6218 = dma.done.wait (!%p5866_p2), %s4478_s14, 2048  }
 0xa38   : > { %6220 = vsyncadd (!%p5866_p2), %s4478_s14, 4294965248  ;;  %p27_p0 = scmp.ge.s32.totalorder %s6502_s16, 4   ;;  %s7093_s17 = smov %s6227_s18 }
 0xa39   : > { %s7094_s18 = smov %s6231_s19  ;;  %s7095_s19 = smov %s6513_s1 }
 0xa3a   : > { %s7096_s20 = smov %s6502_s16  ;;  %29 = sbr.rel (!%p27_p0) target bundleno = 13 (0xd), region = 138 }
 0xa41   :  { %4483 = vsyncpa [#allocation7], 1 }
 0xa42   :  { %4485 = vsyncpa [#allocation7 + $0x1], 1 }
 0xa43   :  { %4486 = vsyncpa [#allocation10], 1 }
 0xa44   :  { %4487 = vsyncpa [#allocation13], 1 }
 0xa45   :  { %4488 = vsyncpa [#allocation16], 1 }
 0xa46   :  { %4489 = vsyncpa [#allocation8], 1 }
 0xa47   :  { %4491 = vsyncpa [#allocation8 + $0x1], 1 }

</bundles_post_ra>
